<compile_context>
chip_gen: v7x
topology: tpu7x:2x2x1
jax: 0.10.0
libtpu: 0.0.40
codegen_flags: <defaults>
</compile_context>

<pallas_src>
import functools
import math

import jax
import jax.numpy as jnp
from jax import lax
from jax.experimental import pallas as pl
from jax.experimental.pallas import tpu as pltpu

E_PAD = 128    # padded embedding width (lane-dense)
E2_PAD = 128   # padded embeddings_layer_neurons // 2
NC_PAD = 128   # padded num_classes (sliced back in the wrapper)


# ----------------------------------------------------------------------------
# Fused per-batch kernel: pose embed -> 2 transformer layers -> head
# ----------------------------------------------------------------------------
def fused_kernel(*refs, num_heads, head_dim, e_real, timesteps):
    (x_ref, pe_ref, wf_ref, bf_ref) = refs[:4]
    l1 = refs[4:20]
    l2 = refs[20:36]
    (convw_ref, w2_ref, b2_ref, wc_ref, bc_ref, o_ref) = refs[36:42]

    T = timesteps
    inv_e = 1.0 / float(e_real)
    scale = 1.0 / math.sqrt(head_dim)
    bf16 = jnp.bfloat16

    pe = pe_ref[...]                                     # (T, E_PAD), padded lanes zero

    # ---- TimeDistributed pose model: flatten + Linear + ReLU per frame ------
    # TODO(synk): pose_model is an injected arbitrary nn.Module; synthesized here as
    # flatten + Linear(C*H*W -> E) + ReLU applied per frame.
    emb = jnp.dot(x_ref[...].astype(bf16), wf_ref[...],
                  preferred_element_type=jnp.float32)
    emb = jnp.maximum(emb + bf_ref[...], 0.0)            # (T, E_PAD), padded lanes stay 0

    def layer_norm(h, g, b):
        # Padded lanes of h are exactly zero, so lane sums equal sums over the real E
        # lanes; var = E[h^2] - mean^2 removes the masked-subtraction path entirely.
        mean = jnp.sum(h, axis=-1, keepdims=True) * inv_e
        msq = jnp.sum(h * h, axis=-1, keepdims=True) * inv_e
        var = msq - mean * mean
        return (h - mean) * lax.rsqrt(var + 1e-5) * g + b   # zero-padded g/b keep pads 0

    def encoder_layer(x2d, p):
        (wq, bq, wk, bk, wv, bv, wo, bo,
         g1, be1, f1w, f1b, f2w, f2b, g2, be2) = p
        # positional_encoding=True on BOTH Transformer_layers in the reference model,
        # so PE is (correctly) added at the start of each layer.
        xp = x2d + pe
        xp_bf = xp.astype(bf16)

        # Head-sliced weights (prepared host-side): no masks, no lane slicing, no concat.
        proj = jnp.zeros((T, E_PAD), jnp.float32)
        for h in range(num_heads):                       # static unroll over heads
            qh = jnp.dot(xp_bf, wq[h], preferred_element_type=jnp.float32) + bq[h]
            kh = jnp.dot(xp_bf, wk[h], preferred_element_type=jnp.float32) + bk[h]
            vh = jnp.dot(xp_bf, wv[h], preferred_element_type=jnp.float32) + bv[h]
            s = lax.dot_general(qh, kh, (((1,), (1,)), ((), ())),
                                preferred_element_type=jnp.float32) * scale   # (T, T)
            s = s - jnp.max(s, axis=-1, keepdims=True)
            pr = jnp.exp(s)
            pr = pr * pl.reciprocal(jnp.sum(pr, axis=-1, keepdims=True), approx=True)
            oh = jnp.dot(pr, vh, preferred_element_type=jnp.float32)          # (T, dh)
            proj = proj + jnp.dot(oh.astype(bf16), wo[h],
                                  preferred_element_type=jnp.float32)
        h1 = layer_norm(proj + bo[...] + xp, g1[...], be1[...])      # Add & Norm 1

        f = jnp.dot(h1.astype(bf16), f1w[...],
                    preferred_element_type=jnp.float32) + f1b[...]
        f = jnp.maximum(f, 0.0)                                      # Dropout = identity
        f = jnp.dot(f.astype(bf16), f2w[...],
                    preferred_element_type=jnp.float32) + f2b[...]
        return layer_norm(f + h1, g2[...], be2[...])                 # Add & Norm 2

    e1 = encoder_layer(emb, l1)
    e2 = encoder_layer(e1, l2)

    # ---- Head: Conv1d(T,1,1) pooling == per-batch weighted sum over T -------
    pooled = jnp.sum(e2 * convw_ref[...], axis=0, keepdims=True)     # (1, E_PAD)
    hid = jnp.tanh(jnp.dot(pooled.astype(bf16), w2_ref[...],
                           preferred_element_type=jnp.float32) + b2_ref[...])
    out = jnp.dot(hid.astype(bf16), wc_ref[...],
                  preferred_element_type=jnp.float32) + bc_ref[...]  # (1, NC_PAD)
    o_ref[0] = out


# ----------------------------------------------------------------------------
# Parameter construction (deterministic, synthetic), padding / folding
# ----------------------------------------------------------------------------
def sinusoidal_pe(T, E):
    pos = jnp.arange(T, dtype=jnp.float32)[:, None]
    div = jnp.exp(jnp.arange(0, E, 2, dtype=jnp.float32) * (-math.log(10000.0) / E))
    pe = jnp.zeros((T, E), jnp.float32)
    pe = pe.at[:, 0::2].set(jnp.sin(pos * div))
    pe = pe.at[:, 1::2].set(jnp.cos(pos * div))
    return pe


def make_transformer_params(key, E):
    ks = jax.random.split(key, 12)
    s = 0.05
    n = lambda k, shp: jax.random.normal(k, shp, jnp.float32) * s
    return (
        n(ks[0], (E, E)), n(ks[1], (1, E)),    # wq, bq
        n(ks[2], (E, E)), n(ks[3], (1, E)),    # wk, bk
        n(ks[4], (E, E)), n(ks[5], (1, E)),    # wv, bv
        n(ks[6], (E, E)), n(ks[7], (1, E)),    # wo, bo
        jnp.ones((1, E), jnp.float32), jnp.zeros((1, E), jnp.float32),   # ln1 gamma/beta
        n(ks[8], (E, E)), n(ks[9], (1, E)),    # ff linear 1
        n(ks[10], (E, E)), n(ks[11], (1, E)),  # ff linear 2
        jnp.ones((1, E), jnp.float32), jnp.zeros((1, E), jnp.float32),   # ln2 gamma/beta
    )


def make_params(key, C, H, W, E, T, num_classes):
    F = C * H * W
    ks = jax.random.split(key, 8)
    s = 0.05
    n = lambda k, shp: jax.random.normal(k, shp, jnp.float32) * s
    return {
        "wf": n(ks[0], (F, E)), "bf": n(ks[1], (1, E)),
        "pe": sinusoidal_pe(T, E),
        "t1": make_transformer_params(ks[2], E),
        "t2": make_transformer_params(ks[3], E),
        "convw": n(ks[4], (T, 1)), "convb": jnp.zeros((1, 1), jnp.float32),
        "w2": n(ks[5], (E, E // 2)), "b2": jnp.zeros((1, E // 2), jnp.float32),
        "bng": jnp.ones((1, E // 2), jnp.float32),
        "bnb": jnp.zeros((1, E // 2), jnp.float32),
        "bnm": jnp.zeros((1, E // 2), jnp.float32),
        "bnv": jnp.ones((1, E // 2), jnp.float32),
        "wc": n(ks[6], (E // 2, num_classes)), "bc": n(ks[7], (1, num_classes)),
    }


def _pad2(a, rows, cols):
    out = jnp.zeros((rows, cols), jnp.float32)
    return out.at[:a.shape[0], :a.shape[1]].set(a)


def prepare_inputs(p, T, E, num_heads):
    dh = E // num_heads
    F = p["wf"].shape[0]
    bf16 = jnp.bfloat16

    wf = _pad2(p["wf"], F, E_PAD).astype(bf16)
    bfb = _pad2(p["bf"], 1, E_PAD)
    pe = _pad2(p["pe"], T, E_PAD)                          # (T, E_PAD)

    def per_head_in(w):        # (E, E) -> (H, E_PAD, dh): head-sliced output columns
        wp = _pad2(w, E_PAD, E)
        return jnp.stack([wp[:, h * dh:(h + 1) * dh]
                          for h in range(num_heads)], 0).astype(bf16)

    def per_head_bias(b):      # (1, E) -> (H, 1, dh) f32
        return jnp.stack([b[:, h * dh:(h + 1) * dh] for h in range(num_heads)], 0)

    def per_head_out(w):       # (E, E) -> (H, dh, E_PAD): head-sliced input rows
        wp = _pad2(w, E, E_PAD)
        return jnp.stack([wp[h * dh:(h + 1) * dh, :]
                          for h in range(num_heads)], 0).astype(bf16)

    def pad_layer(t):
        (wq, bq, wk, bk, wv, bv, wo, bo, g1, be1, f1w, f1b, f2w, f2b, g2, be2) = t
        return (per_head_in(wq), per_head_bias(bq),
                per_head_in(wk), per_head_bias(bk),
                per_head_in(wv), per_head_bias(bv),
                per_head_out(wo), _pad2(bo, 1, E_PAD),
                _pad2(g1, 1, E_PAD), _pad2(be1, 1, E_PAD),
                _pad2(f1w, E_PAD, E_PAD).astype(bf16), _pad2(f1b, 1, E_PAD),
                _pad2(f2w, E_PAD, E_PAD).astype(bf16), _pad2(f2b, 1, E_PAD),
                _pad2(g2, 1, E_PAD), _pad2(be2, 1, E_PAD))

    l1 = pad_layer(p["t1"])
    l2 = pad_layer(p["t2"])

    convw = p["convw"].astype(jnp.float32)                 # (T, 1) pooling weights

    # Fold BatchNorm1d (eval, running stats) and the Conv1d bias into squeeze_layer_2.
    s = p["bng"] / jnp.sqrt(p["bnv"] + 1e-5)
    w2_eff = p["w2"] * s
    b2_eff = (p["b2"] - p["bnm"]) * s + p["bnb"]
    b2_eff = b2_eff + p["convb"][0, 0] * jnp.sum(w2_eff, axis=0, keepdims=True)
    w2 = _pad2(w2_eff, E_PAD, E2_PAD).astype(bf16)
    b2 = _pad2(b2_eff, 1, E2_PAD)
    wc = _pad2(p["wc"], E2_PAD, NC_PAD).astype(bf16)
    bc = _pad2(p["bc"], 1, NC_PAD)

    return (pe, wf, bfb) + l1 + l2 + (convw, w2, b2, wc, bc)


# ----------------------------------------------------------------------------
# End-to-end forward: ONE pallas_call, parallel batch grid
# ----------------------------------------------------------------------------
def forward(x, inputs, *, e_real, num_heads, num_classes):
    B, T, C, H, W = x.shape
    F = C * H * W
    dh = e_real // num_heads
    x_flat = x.reshape(B * T, F).astype(jnp.float32)   # f32 in HBM; cast to bf16 in-kernel

    kern = functools.partial(fused_kernel, num_heads=num_heads, head_dim=dh,
                             e_real=e_real, timesteps=T)

    const_specs = [pl.BlockSpec(a.shape, lambda b, _nd=a.ndim: (0,) * _nd)
                   for a in inputs]
    in_specs = [pl.BlockSpec((T, F), lambda b: (b, 0))] + const_specs
    out_spec = pl.BlockSpec((1, 1, NC_PAD), lambda b: (b, 0, 0))

    flops = B * (
        2 * T * F * E_PAD
        + 2 * (num_heads * (3 * 2 * T * E_PAD * dh + 2 * 2 * T * T * dh
                            + 2 * T * dh * E_PAD)
               + 2 * 2 * T * E_PAD * E_PAD)
        + 2 * T * E_PAD + 2 * E_PAD * E2_PAD + 2 * E2_PAD * NC_PAD)
    transcendentals = B * (2 * num_heads * (T * T + T) + E2_PAD)
    bytes_accessed = int(x_flat.size * x_flat.dtype.itemsize
                         + sum(int(a.size) * a.dtype.itemsize for a in inputs)
                         + B * NC_PAD * 4)

    out = pl.pallas_call(
        kern,
        out_shape=jax.ShapeDtypeStruct((B, 1, NC_PAD), jnp.float32),
        grid_spec=pltpu.PrefetchScalarGridSpec(
            num_scalar_prefetch=0,
            grid=(B,),
            in_specs=in_specs,
            out_specs=out_spec),
        compiler_params=pltpu.CompilerParams(
            dimension_semantics=("parallel",),
            vmem_limit_bytes=4 * 1024 * 1024),
        cost_estimate=pl.CostEstimate(flops=int(flops),
                                      transcendentals=int(transcendentals),
                                      bytes_accessed=bytes_accessed),
    )(x_flat, *inputs)
    return out[:, 0, :num_classes]


if __name__ == "__main__":
    B, T, C, H, W = 2, 8, 4, 16, 16
    E, HEADS, NUM_CLASSES = 32, 4, 3

    key = jax.random.PRNGKey(0)
    k_params, k_x = jax.random.split(key)
    params = make_params(k_params, C, H, W, E, T, NUM_CLASSES)
    fused_inputs = prepare_inputs(params, T, E, HEADS)
    x = jax.random.normal(k_x, (B, T, C, H, W), jnp.float32)

    logits = forward(x, fused_inputs, e_real=E, num_heads=HEADS,
                     num_classes=NUM_CLASSES)
    logits = jax.block_until_ready(logits)
    assert logits.shape == (B, NUM_CLASSES), logits.shape
    assert bool(jnp.all(jnp.isfinite(logits)))
    print("KERNEL_OK")
</pallas_src>

<mosaic_0001>
module attributes {stable_mosaic.version = 11 : i64} {
  func.func @fused_kernel(%arg0: i32, %arg1: memref<8x1024xf32, #tpu.memory_space<vmem>>, %arg2: memref<8x128xf32, #tpu.memory_space<vmem>>, %arg3: memref<1024x128xbf16, #tpu.memory_space<vmem>>, %arg4: memref<1x128xf32, #tpu.memory_space<vmem>>, %arg5: memref<4x128x8xbf16, #tpu.memory_space<vmem>>, %arg6: memref<4x1x8xf32, #tpu.memory_space<vmem>>, %arg7: memref<4x128x8xbf16, #tpu.memory_space<vmem>>, %arg8: memref<4x1x8xf32, #tpu.memory_space<vmem>>, %arg9: memref<4x128x8xbf16, #tpu.memory_space<vmem>>, %arg10: memref<4x1x8xf32, #tpu.memory_space<vmem>>, %arg11: memref<4x8x128xbf16, #tpu.memory_space<vmem>>, %arg12: memref<1x128xf32, #tpu.memory_space<vmem>>, %arg13: memref<1x128xf32, #tpu.memory_space<vmem>>, %arg14: memref<1x128xf32, #tpu.memory_space<vmem>>, %arg15: memref<128x128xbf16, #tpu.memory_space<vmem>>, %arg16: memref<1x128xf32, #tpu.memory_space<vmem>>, %arg17: memref<128x128xbf16, #tpu.memory_space<vmem>>, %arg18: memref<1x128xf32, #tpu.memory_space<vmem>>, %arg19: memref<1x128xf32, #tpu.memory_space<vmem>>, %arg20: memref<1x128xf32, #tpu.memory_space<vmem>>, %arg21: memref<4x128x8xbf16, #tpu.memory_space<vmem>>, %arg22: memref<4x1x8xf32, #tpu.memory_space<vmem>>, %arg23: memref<4x128x8xbf16, #tpu.memory_space<vmem>>, %arg24: memref<4x1x8xf32, #tpu.memory_space<vmem>>, %arg25: memref<4x128x8xbf16, #tpu.memory_space<vmem>>, %arg26: memref<4x1x8xf32, #tpu.memory_space<vmem>>, %arg27: memref<4x8x128xbf16, #tpu.memory_space<vmem>>, %arg28: memref<1x128xf32, #tpu.memory_space<vmem>>, %arg29: memref<1x128xf32, #tpu.memory_space<vmem>>, %arg30: memref<1x128xf32, #tpu.memory_space<vmem>>, %arg31: memref<128x128xbf16, #tpu.memory_space<vmem>>, %arg32: memref<1x128xf32, #tpu.memory_space<vmem>>, %arg33: memref<128x128xbf16, #tpu.memory_space<vmem>>, %arg34: memref<1x128xf32, #tpu.memory_space<vmem>>, %arg35: memref<1x128xf32, #tpu.memory_space<vmem>>, %arg36: memref<1x128xf32, #tpu.memory_space<vmem>>, %arg37: memref<8x1xf32, #tpu.memory_space<vmem>>, %arg38: memref<128x128xbf16, #tpu.memory_space<vmem>>, %arg39: memref<1x128xf32, #tpu.memory_space<vmem>>, %arg40: memref<128x128xbf16, #tpu.memory_space<vmem>>, %arg41: memref<1x128xf32, #tpu.memory_space<vmem>>, %arg42: memref<1x1x128xf32, #tpu.memory_space<vmem>>) attributes {dimension_semantics = [#tpu.dimension_semantics<parallel>], iteration_bounds = array<i64: 2>, scalar_prefetch = 0 : i64, scratch_operands = 0 : i64, tpu.core_type = #tpu.core_type<tc>, window_params = [{transform_indices = @transform_0, window_bounds = array<i64: 8, 1024>}, {pipeline_mode = #tpu.pipeline_mode<synchronous>, transform_indices = @transform_1, window_bounds = array<i64: 8, 128>}, {pipeline_mode = #tpu.pipeline_mode<synchronous>, transform_indices = @transform_2, window_bounds = array<i64: 1024, 128>}, {pipeline_mode = #tpu.pipeline_mode<synchronous>, transform_indices = @transform_3, window_bounds = array<i64: 1, 128>}, {pipeline_mode = #tpu.pipeline_mode<synchronous>, transform_indices = @transform_4, window_bounds = array<i64: 4, 128, 8>}, {pipeline_mode = #tpu.pipeline_mode<synchronous>, transform_indices = @transform_5, window_bounds = array<i64: 4, 1, 8>}, {pipeline_mode = #tpu.pipeline_mode<synchronous>, transform_indices = @transform_6, window_bounds = array<i64: 4, 128, 8>}, {pipeline_mode = #tpu.pipeline_mode<synchronous>, transform_indices = @transform_7, window_bounds = array<i64: 4, 1, 8>}, {pipeline_mode = #tpu.pipeline_mode<synchronous>, transform_indices = @transform_8, window_bounds = array<i64: 4, 128, 8>}, {pipeline_mode = #tpu.pipeline_mode<synchronous>, transform_indices = @transform_9, window_bounds = array<i64: 4, 1, 8>}, {pipeline_mode = #tpu.pipeline_mode<synchronous>, transform_indices = @transform_10, window_bounds = array<i64: 4, 8, 128>}, {pipeline_mode = #tpu.pipeline_mode<synchronous>, transform_indices = @transform_11, window_bounds = array<i64: 1, 128>}, {pipeline_mode = #tpu.pipeline_mode<synchronous>, transform_indices = @transform_12, window_bounds = array<i64: 1, 128>}, {pipeline_mode = #tpu.pipeline_mode<synchronous>, transform_indices = @transform_13, window_bounds = array<i64: 1, 128>}, {pipeline_mode = #tpu.pipeline_mode<synchronous>, transform_indices = @transform_14, window_bounds = array<i64: 128, 128>}, {pipeline_mode = #tpu.pipeline_mode<synchronous>, transform_indices = @transform_15, window_bounds = array<i64: 1, 128>}, {pipeline_mode = #tpu.pipeline_mode<synchronous>, transform_indices = @transform_16, window_bounds = array<i64: 128, 128>}, {pipeline_mode = #tpu.pipeline_mode<synchronous>, transform_indices = @transform_17, window_bounds = array<i64: 1, 128>}, {pipeline_mode = #tpu.pipeline_mode<synchronous>, transform_indices = @transform_18, window_bounds = array<i64: 1, 128>}, {pipeline_mode = #tpu.pipeline_mode<synchronous>, transform_indices = @transform_19, window_bounds = array<i64: 1, 128>}, {pipeline_mode = #tpu.pipeline_mode<synchronous>, transform_indices = @transform_20, window_bounds = array<i64: 4, 128, 8>}, {pipeline_mode = #tpu.pipeline_mode<synchronous>, transform_indices = @transform_21, window_bounds = array<i64: 4, 1, 8>}, {pipeline_mode = #tpu.pipeline_mode<synchronous>, transform_indices = @transform_22, window_bounds = array<i64: 4, 128, 8>}, {pipeline_mode = #tpu.pipeline_mode<synchronous>, transform_indices = @transform_23, window_bounds = array<i64: 4, 1, 8>}, {pipeline_mode = #tpu.pipeline_mode<synchronous>, transform_indices = @transform_24, window_bounds = array<i64: 4, 128, 8>}, {pipeline_mode = #tpu.pipeline_mode<synchronous>, transform_indices = @transform_25, window_bounds = array<i64: 4, 1, 8>}, {pipeline_mode = #tpu.pipeline_mode<synchronous>, transform_indices = @transform_26, window_bounds = array<i64: 4, 8, 128>}, {pipeline_mode = #tpu.pipeline_mode<synchronous>, transform_indices = @transform_27, window_bounds = array<i64: 1, 128>}, {pipeline_mode = #tpu.pipeline_mode<synchronous>, transform_indices = @transform_28, window_bounds = array<i64: 1, 128>}, {pipeline_mode = #tpu.pipeline_mode<synchronous>, transform_indices = @transform_29, window_bounds = array<i64: 1, 128>}, {pipeline_mode = #tpu.pipeline_mode<synchronous>, transform_indices = @transform_30, window_bounds = array<i64: 128, 128>}, {pipeline_mode = #tpu.pipeline_mode<synchronous>, transform_indices = @transform_31, window_bounds = array<i64: 1, 128>}, {pipeline_mode = #tpu.pipeline_mode<synchronous>, transform_indices = @transform_32, window_bounds = array<i64: 128, 128>}, {pipeline_mode = #tpu.pipeline_mode<synchronous>, transform_indices = @transform_33, window_bounds = array<i64: 1, 128>}, {pipeline_mode = #tpu.pipeline_mode<synchronous>, transform_indices = @transform_34, window_bounds = array<i64: 1, 128>}, {pipeline_mode = #tpu.pipeline_mode<synchronous>, transform_indices = @transform_35, window_bounds = array<i64: 1, 128>}, {pipeline_mode = #tpu.pipeline_mode<synchronous>, transform_indices = @transform_36, window_bounds = array<i64: 8, 1>}, {pipeline_mode = #tpu.pipeline_mode<synchronous>, transform_indices = @transform_37, window_bounds = array<i64: 128, 128>}, {pipeline_mode = #tpu.pipeline_mode<synchronous>, transform_indices = @transform_38, window_bounds = array<i64: 1, 128>}, {pipeline_mode = #tpu.pipeline_mode<synchronous>, transform_indices = @transform_39, window_bounds = array<i64: 128, 128>}, {pipeline_mode = #tpu.pipeline_mode<synchronous>, transform_indices = @transform_40, window_bounds = array<i64: 1, 128>}, {transform_indices = @transform_41, window_bounds = array<i64: 1, 1, 128>}]} {
    %c0 = arith.constant 0 : index
    %c0_0 = arith.constant 0 : index
    %0 = vector.load %arg2[%c0, %c0_0] : memref<8x128xf32, #tpu.memory_space<vmem>>, vector<8x128xf32>
    %c0_1 = arith.constant 0 : index
    %c0_2 = arith.constant 0 : index
    %1 = vector.load %arg1[%c0_1, %c0_2] : memref<8x1024xf32, #tpu.memory_space<vmem>>, vector<8x1024xf32>
    %2 = arith.truncf %1 : vector<8x1024xf32> to vector<8x1024xbf16>
    %c0_3 = arith.constant 0 : index
    %c0_4 = arith.constant 0 : index
    %3 = vector.load %arg3[%c0_3, %c0_4] : memref<1024x128xbf16, #tpu.memory_space<vmem>>, vector<1024x128xbf16>
    %cst = arith.constant dense<0.000000e+00> : vector<8x128xf32>
    %4 = tpu.matmul %2, %3, %cst {dimension_numbers = #tpu.dot_dimension_numbers<[1], [0], [0], [1], [0, 0, 1, 1], [], []>} : vector<8x1024xbf16>, vector<1024x128xbf16>, vector<8x128xf32> -> vector<8x128xf32>
    %c0_5 = arith.constant 0 : index
    %c0_6 = arith.constant 0 : index
    %5 = vector.load %arg4[%c0_5, %c0_6] : memref<1x128xf32, #tpu.memory_space<vmem>>, vector<1x128xf32>
    %6 = vector.broadcast %5 : vector<1x128xf32> to vector<8x128xf32>
    %7 = arith.addf %4, %6 : vector<8x128xf32>
    %cst_7 = arith.constant 0.000000e+00 : f32
    %8 = vector.broadcast %cst_7 : f32 to vector<8x128xf32>
    %9 = arith.maximumf %7, %8 : vector<8x128xf32>
    %10 = arith.addf %9, %0 : vector<8x128xf32>
    %11 = arith.truncf %10 : vector<8x128xf32> to vector<8x128xbf16>
    %cst_8 = arith.constant 0.000000e+00 : f32
    %12 = vector.broadcast %cst_8 : f32 to vector<8x128xf32>
    %c0_9 = arith.constant 0 : index
    %c0_10 = arith.constant 0 : index
    %c0_11 = arith.constant 0 : index
    %13 = vector.load %arg5[%c0_9, %c0_10, %c0_11] : memref<4x128x8xbf16, #tpu.memory_space<vmem>>, vector<1x128x8xbf16>
    %14 = vector.shape_cast %13 : vector<1x128x8xbf16> to vector<128x8xbf16>
    %cst_12 = arith.constant dense<0.000000e+00> : vector<8x8xf32>
    %15 = tpu.matmul %11, %14, %cst_12 {dimension_numbers = #tpu.dot_dimension_numbers<[1], [0], [0], [1], [0, 0, 1, 1], [], []>} : vector<8x128xbf16>, vector<128x8xbf16>, vector<8x8xf32> -> vector<8x8xf32>
    %c0_13 = arith.constant 0 : index
    %c0_14 = arith.constant 0 : index
    %c0_15 = arith.constant 0 : index
    %16 = vector.load %arg6[%c0_13, %c0_14, %c0_15] : memref<4x1x8xf32, #tpu.memory_space<vmem>>, vector<1x1x8xf32>
    %17 = vector.shape_cast %16 : vector<1x1x8xf32> to vector<1x8xf32>
    %18 = vector.broadcast %17 : vector<1x8xf32> to vector<8x8xf32>
    %19 = arith.addf %15, %18 : vector<8x8xf32>
    %c0_16 = arith.constant 0 : index
    %c0_17 = arith.constant 0 : index
    %c0_18 = arith.constant 0 : index
    %20 = vector.load %arg7[%c0_16, %c0_17, %c0_18] : memref<4x128x8xbf16, #tpu.memory_space<vmem>>, vector<1x128x8xbf16>
    %21 = vector.shape_cast %20 : vector<1x128x8xbf16> to vector<128x8xbf16>
    %cst_19 = arith.constant dense<0.000000e+00> : vector<8x8xf32>
    %22 = tpu.matmul %11, %21, %cst_19 {dimension_numbers = #tpu.dot_dimension_numbers<[1], [0], [0], [1], [0, 0, 1, 1], [], []>} : vector<8x128xbf16>, vector<128x8xbf16>, vector<8x8xf32> -> vector<8x8xf32>
    %c0_20 = arith.constant 0 : index
    %c0_21 = arith.constant 0 : index
    %c0_22 = arith.constant 0 : index
    %23 = vector.load %arg8[%c0_20, %c0_21, %c0_22] : memref<4x1x8xf32, #tpu.memory_space<vmem>>, vector<1x1x8xf32>
    %24 = vector.shape_cast %23 : vector<1x1x8xf32> to vector<1x8xf32>
    %25 = vector.broadcast %24 : vector<1x8xf32> to vector<8x8xf32>
    %26 = arith.addf %22, %25 : vector<8x8xf32>
    %c0_23 = arith.constant 0 : index
    %c0_24 = arith.constant 0 : index
    %c0_25 = arith.constant 0 : index
    %27 = vector.load %arg9[%c0_23, %c0_24, %c0_25] : memref<4x128x8xbf16, #tpu.memory_space<vmem>>, vector<1x128x8xbf16>
    %28 = vector.shape_cast %27 : vector<1x128x8xbf16> to vector<128x8xbf16>
    %cst_26 = arith.constant dense<0.000000e+00> : vector<8x8xf32>
    %29 = tpu.matmul %11, %28, %cst_26 {dimension_numbers = #tpu.dot_dimension_numbers<[1], [0], [0], [1], [0, 0, 1, 1], [], []>} : vector<8x128xbf16>, vector<128x8xbf16>, vector<8x8xf32> -> vector<8x8xf32>
    %c0_27 = arith.constant 0 : index
    %c0_28 = arith.constant 0 : index
    %c0_29 = arith.constant 0 : index
    %30 = vector.load %arg10[%c0_27, %c0_28, %c0_29] : memref<4x1x8xf32, #tpu.memory_space<vmem>>, vector<1x1x8xf32>
    %31 = vector.shape_cast %30 : vector<1x1x8xf32> to vector<1x8xf32>
    %32 = vector.broadcast %31 : vector<1x8xf32> to vector<8x8xf32>
    %33 = arith.addf %29, %32 : vector<8x8xf32>
    %cst_30 = arith.constant dense<0.000000e+00> : vector<8x8xf32>
    %34 = tpu.matmul %19, %26, %cst_30 {dimension_numbers = #tpu.dot_dimension_numbers<[1], [1], [0], [0], [0, 0, 1, 0], [], []>} : vector<8x8xf32>, vector<8x8xf32>, vector<8x8xf32> -> vector<8x8xf32>
    %cst_31 = arith.constant 0.353553385 : f32
    %35 = vector.broadcast %cst_31 : f32 to vector<8x8xf32>
    %36 = arith.mulf %34, %35 : vector<8x8xf32>
    %cst_32 = arith.constant dense<0xFF800000> : vector<8xf32>
    %37 = vector.multi_reduction <maximumf>, %36, %cst_32 [1] : vector<8x8xf32> to vector<8xf32>
    %38 = vector.shape_cast %37 : vector<8xf32> to vector<8x1xf32>
    %39 = vector.broadcast %38 : vector<8x1xf32> to vector<8x8xf32>
    %40 = arith.subf %36, %39 : vector<8x8xf32>
    %41 = math.exp %40 : vector<8x8xf32>
    %cst_33 = arith.constant dense<0.000000e+00> : vector<8xf32>
    %42 = vector.multi_reduction <add>, %41, %cst_33 [1] : vector<8x8xf32> to vector<8xf32>
    %43 = vector.shape_cast %42 : vector<8xf32> to vector<8x1xf32>
    %44 = tpu.reciprocal %43 {approx = true} : vector<8x1xf32> -> vector<8x1xf32>
    %45 = vector.broadcast %44 : vector<8x1xf32> to vector<8x8xf32>
    %46 = arith.mulf %41, %45 : vector<8x8xf32>
    %cst_34 = arith.constant dense<0.000000e+00> : vector<8x8xf32>
    %47 = tpu.matmul %46, %33, %cst_34 {dimension_numbers = #tpu.dot_dimension_numbers<[1], [0], [0], [1], [0, 0, 1, 1], [], []>} : vector<8x8xf32>, vector<8x8xf32>, vector<8x8xf32> -> vector<8x8xf32>
    %48 = arith.truncf %47 : vector<8x8xf32> to vector<8x8xbf16>
    %c0_35 = arith.constant 0 : index
    %c0_36 = arith.constant 0 : index
    %c0_37 = arith.constant 0 : index
    %49 = vector.load %arg11[%c0_35, %c0_36, %c0_37] : memref<4x8x128xbf16, #tpu.memory_space<vmem>>, vector<1x8x128xbf16>
    %50 = vector.shape_cast %49 : vector<1x8x128xbf16> to vector<8x128xbf16>
    %cst_38 = arith.constant dense<0.000000e+00> : vector<8x128xf32>
    %51 = tpu.matmul %48, %50, %cst_38 {dimension_numbers = #tpu.dot_dimension_numbers<[1], [0], [0], [1], [0, 0, 1, 1], [], []>} : vector<8x8xbf16>, vector<8x128xbf16>, vector<8x128xf32> -> vector<8x128xf32>
    %52 = arith.addf %12, %51 : vector<8x128xf32>
    %c1 = arith.constant 1 : index
    %c0_39 = arith.constant 0 : index
    %c0_40 = arith.constant 0 : index
    %53 = vector.load %arg5[%c1, %c0_39, %c0_40] : memref<4x128x8xbf16, #tpu.memory_space<vmem>>, vector<1x128x8xbf16>
    %54 = vector.shape_cast %53 : vector<1x128x8xbf16> to vector<128x8xbf16>
    %cst_41 = arith.constant dense<0.000000e+00> : vector<8x8xf32>
    %55 = tpu.matmul %11, %54, %cst_41 {dimension_numbers = #tpu.dot_dimension_numbers<[1], [0], [0], [1], [0, 0, 1, 1], [], []>} : vector<8x128xbf16>, vector<128x8xbf16>, vector<8x8xf32> -> vector<8x8xf32>
    %c1_42 = arith.constant 1 : index
    %c0_43 = arith.constant 0 : index
    %c0_44 = arith.constant 0 : index
    %56 = vector.load %arg6[%c1_42, %c0_43, %c0_44] : memref<4x1x8xf32, #tpu.memory_space<vmem>>, vector<1x1x8xf32>
    %57 = vector.shape_cast %56 : vector<1x1x8xf32> to vector<1x8xf32>
    %58 = vector.broadcast %57 : vector<1x8xf32> to vector<8x8xf32>
    %59 = arith.addf %55, %58 : vector<8x8xf32>
    %c1_45 = arith.constant 1 : index
    %c0_46 = arith.constant 0 : index
    %c0_47 = arith.constant 0 : index
    %60 = vector.load %arg7[%c1_45, %c0_46, %c0_47] : memref<4x128x8xbf16, #tpu.memory_space<vmem>>, vector<1x128x8xbf16>
    %61 = vector.shape_cast %60 : vector<1x128x8xbf16> to vector<128x8xbf16>
    %cst_48 = arith.constant dense<0.000000e+00> : vector<8x8xf32>
    %62 = tpu.matmul %11, %61, %cst_48 {dimension_numbers = #tpu.dot_dimension_numbers<[1], [0], [0], [1], [0, 0, 1, 1], [], []>} : vector<8x128xbf16>, vector<128x8xbf16>, vector<8x8xf32> -> vector<8x8xf32>
    %c1_49 = arith.constant 1 : index
    %c0_50 = arith.constant 0 : index
    %c0_51 = arith.constant 0 : index
    %63 = vector.load %arg8[%c1_49, %c0_50, %c0_51] : memref<4x1x8xf32, #tpu.memory_space<vmem>>, vector<1x1x8xf32>
    %64 = vector.shape_cast %63 : vector<1x1x8xf32> to vector<1x8xf32>
    %65 = vector.broadcast %64 : vector<1x8xf32> to vector<8x8xf32>
    %66 = arith.addf %62, %65 : vector<8x8xf32>
    %c1_52 = arith.constant 1 : index
    %c0_53 = arith.constant 0 : index
    %c0_54 = arith.constant 0 : index
    %67 = vector.load %arg9[%c1_52, %c0_53, %c0_54] : memref<4x128x8xbf16, #tpu.memory_space<vmem>>, vector<1x128x8xbf16>
    %68 = vector.shape_cast %67 : vector<1x128x8xbf16> to vector<128x8xbf16>
    %cst_55 = arith.constant dense<0.000000e+00> : vector<8x8xf32>
    %69 = tpu.matmul %11, %68, %cst_55 {dimension_numbers = #tpu.dot_dimension_numbers<[1], [0], [0], [1], [0, 0, 1, 1], [], []>} : vector<8x128xbf16>, vector<128x8xbf16>, vector<8x8xf32> -> vector<8x8xf32>
    %c1_56 = arith.constant 1 : index
    %c0_57 = arith.constant 0 : index
    %c0_58 = arith.constant 0 : index
    %70 = vector.load %arg10[%c1_56, %c0_57, %c0_58] : memref<4x1x8xf32, #tpu.memory_space<vmem>>, vector<1x1x8xf32>
    %71 = vector.shape_cast %70 : vector<1x1x8xf32> to vector<1x8xf32>
    %72 = vector.broadcast %71 : vector<1x8xf32> to vector<8x8xf32>
    %73 = arith.addf %69, %72 : vector<8x8xf32>
    %cst_59 = arith.constant dense<0.000000e+00> : vector<8x8xf32>
    %74 = tpu.matmul %59, %66, %cst_59 {dimension_numbers = #tpu.dot_dimension_numbers<[1], [1], [0], [0], [0, 0, 1, 0], [], []>} : vector<8x8xf32>, vector<8x8xf32>, vector<8x8xf32> -> vector<8x8xf32>
    %cst_60 = arith.constant 0.353553385 : f32
    %75 = vector.broadcast %cst_60 : f32 to vector<8x8xf32>
    %76 = arith.mulf %74, %75 : vector<8x8xf32>
    %cst_61 = arith.constant dense<0xFF800000> : vector<8xf32>
    %77 = vector.multi_reduction <maximumf>, %76, %cst_61 [1] : vector<8x8xf32> to vector<8xf32>
    %78 = vector.shape_cast %77 : vector<8xf32> to vector<8x1xf32>
    %79 = vector.broadcast %78 : vector<8x1xf32> to vector<8x8xf32>
    %80 = arith.subf %76, %79 : vector<8x8xf32>
    %81 = math.exp %80 : vector<8x8xf32>
    %cst_62 = arith.constant dense<0.000000e+00> : vector<8xf32>
    %82 = vector.multi_reduction <add>, %81, %cst_62 [1] : vector<8x8xf32> to vector<8xf32>
    %83 = vector.shape_cast %82 : vector<8xf32> to vector<8x1xf32>
    %84 = tpu.reciprocal %83 {approx = true} : vector<8x1xf32> -> vector<8x1xf32>
    %85 = vector.broadcast %84 : vector<8x1xf32> to vector<8x8xf32>
    %86 = arith.mulf %81, %85 : vector<8x8xf32>
    %cst_63 = arith.constant dense<0.000000e+00> : vector<8x8xf32>
    %87 = tpu.matmul %86, %73, %cst_63 {dimension_numbers = #tpu.dot_dimension_numbers<[1], [0], [0], [1], [0, 0, 1, 1], [], []>} : vector<8x8xf32>, vector<8x8xf32>, vector<8x8xf32> -> vector<8x8xf32>
    %88 = arith.truncf %87 : vector<8x8xf32> to vector<8x8xbf16>
    %c1_64 = arith.constant 1 : index
    %c0_65 = arith.constant 0 : index
    %c0_66 = arith.constant 0 : index
    %89 = vector.load %arg11[%c1_64, %c0_65, %c0_66] : memref<4x8x128xbf16, #tpu.memory_space<vmem>>, vector<1x8x128xbf16>
    %90 = vector.shape_cast %89 : vector<1x8x128xbf16> to vector<8x128xbf16>
    %cst_67 = arith.constant dense<0.000000e+00> : vector<8x128xf32>
    %91 = tpu.matmul %88, %90, %cst_67 {dimension_numbers = #tpu.dot_dimension_numbers<[1], [0], [0], [1], [0, 0, 1, 1], [], []>} : vector<8x8xbf16>, vector<8x128xbf16>, vector<8x128xf32> -> vector<8x128xf32>
    %92 = arith.addf %52, %91 : vector<8x128xf32>
    %c2 = arith.constant 2 : index
    %c0_68 = arith.constant 0 : index
    %c0_69 = arith.constant 0 : index
    %93 = vector.load %arg5[%c2, %c0_68, %c0_69] : memref<4x128x8xbf16, #tpu.memory_space<vmem>>, vector<1x128x8xbf16>
    %94 = vector.shape_cast %93 : vector<1x128x8xbf16> to vector<128x8xbf16>
    %cst_70 = arith.constant dense<0.000000e+00> : vector<8x8xf32>
    %95 = tpu.matmul %11, %94, %cst_70 {dimension_numbers = #tpu.dot_dimension_numbers<[1], [0], [0], [1], [0, 0, 1, 1], [], []>} : vector<8x128xbf16>, vector<128x8xbf16>, vector<8x8xf32> -> vector<8x8xf32>
    %c2_71 = arith.constant 2 : index
    %c0_72 = arith.constant 0 : index
    %c0_73 = arith.constant 0 : index
    %96 = vector.load %arg6[%c2_71, %c0_72, %c0_73] : memref<4x1x8xf32, #tpu.memory_space<vmem>>, vector<1x1x8xf32>
    %97 = vector.shape_cast %96 : vector<1x1x8xf32> to vector<1x8xf32>
    %98 = vector.broadcast %97 : vector<1x8xf32> to vector<8x8xf32>
    %99 = arith.addf %95, %98 : vector<8x8xf32>
    %c2_74 = arith.constant 2 : index
    %c0_75 = arith.constant 0 : index
    %c0_76 = arith.constant 0 : index
    %100 = vector.load %arg7[%c2_74, %c0_75, %c0_76] : memref<4x128x8xbf16, #tpu.memory_space<vmem>>, vector<1x128x8xbf16>
    %101 = vector.shape_cast %100 : vector<1x128x8xbf16> to vector<128x8xbf16>
    %cst_77 = arith.constant dense<0.000000e+00> : vector<8x8xf32>
    %102 = tpu.matmul %11, %101, %cst_77 {dimension_numbers = #tpu.dot_dimension_numbers<[1], [0], [0], [1], [0, 0, 1, 1], [], []>} : vector<8x128xbf16>, vector<128x8xbf16>, vector<8x8xf32> -> vector<8x8xf32>
    %c2_78 = arith.constant 2 : index
    %c0_79 = arith.constant 0 : index
    %c0_80 = arith.constant 0 : index
    %103 = vector.load %arg8[%c2_78, %c0_79, %c0_80] : memref<4x1x8xf32, #tpu.memory_space<vmem>>, vector<1x1x8xf32>
    %104 = vector.shape_cast %103 : vector<1x1x8xf32> to vector<1x8xf32>
    %105 = vector.broadcast %104 : vector<1x8xf32> to vector<8x8xf32>
    %106 = arith.addf %102, %105 : vector<8x8xf32>
    %c2_81 = arith.constant 2 : index
    %c0_82 = arith.constant 0 : index
    %c0_83 = arith.constant 0 : index
    %107 = vector.load %arg9[%c2_81, %c0_82, %c0_83] : memref<4x128x8xbf16, #tpu.memory_space<vmem>>, vector<1x128x8xbf16>
    %108 = vector.shape_cast %107 : vector<1x128x8xbf16> to vector<128x8xbf16>
    %cst_84 = arith.constant dense<0.000000e+00> : vector<8x8xf32>
    %109 = tpu.matmul %11, %108, %cst_84 {dimension_numbers = #tpu.dot_dimension_numbers<[1], [0], [0], [1], [0, 0, 1, 1], [], []>} : vector<8x128xbf16>, vector<128x8xbf16>, vector<8x8xf32> -> vector<8x8xf32>
    %c2_85 = arith.constant 2 : index
    %c0_86 = arith.constant 0 : index
    %c0_87 = arith.constant 0 : index
    %110 = vector.load %arg10[%c2_85, %c0_86, %c0_87] : memref<4x1x8xf32, #tpu.memory_space<vmem>>, vector<1x1x8xf32>
    %111 = vector.shape_cast %110 : vector<1x1x8xf32> to vector<1x8xf32>
    %112 = vector.broadcast %111 : vector<1x8xf32> to vector<8x8xf32>
    %113 = arith.addf %109, %112 : vector<8x8xf32>
    %cst_88 = arith.constant dense<0.000000e+00> : vector<8x8xf32>
    %114 = tpu.matmul %99, %106, %cst_88 {dimension_numbers = #tpu.dot_dimension_numbers<[1], [1], [0], [0], [0, 0, 1, 0], [], []>} : vector<8x8xf32>, vector<8x8xf32>, vector<8x8xf32> -> vector<8x8xf32>
    %cst_89 = arith.constant 0.353553385 : f32
    %115 = vector.broadcast %cst_89 : f32 to vector<8x8xf32>
    %116 = arith.mulf %114, %115 : vector<8x8xf32>
    %cst_90 = arith.constant dense<0xFF800000> : vector<8xf32>
    %117 = vector.multi_reduction <maximumf>, %116, %cst_90 [1] : vector<8x8xf32> to vector<8xf32>
    %118 = vector.shape_cast %117 : vector<8xf32> to vector<8x1xf32>
    %119 = vector.broadcast %118 : vector<8x1xf32> to vector<8x8xf32>
    %120 = arith.subf %116, %119 : vector<8x8xf32>
    %121 = math.exp %120 : vector<8x8xf32>
    %cst_91 = arith.constant dense<0.000000e+00> : vector<8xf32>
    %122 = vector.multi_reduction <add>, %121, %cst_91 [1] : vector<8x8xf32> to vector<8xf32>
    %123 = vector.shape_cast %122 : vector<8xf32> to vector<8x1xf32>
    %124 = tpu.reciprocal %123 {approx = true} : vector<8x1xf32> -> vector<8x1xf32>
    %125 = vector.broadcast %124 : vector<8x1xf32> to vector<8x8xf32>
    %126 = arith.mulf %121, %125 : vector<8x8xf32>
    %cst_92 = arith.constant dense<0.000000e+00> : vector<8x8xf32>
    %127 = tpu.matmul %126, %113, %cst_92 {dimension_numbers = #tpu.dot_dimension_numbers<[1], [0], [0], [1], [0, 0, 1, 1], [], []>} : vector<8x8xf32>, vector<8x8xf32>, vector<8x8xf32> -> vector<8x8xf32>
    %128 = arith.truncf %127 : vector<8x8xf32> to vector<8x8xbf16>
    %c2_93 = arith.constant 2 : index
    %c0_94 = arith.constant 0 : index
    %c0_95 = arith.constant 0 : index
    %129 = vector.load %arg11[%c2_93, %c0_94, %c0_95] : memref<4x8x128xbf16, #tpu.memory_space<vmem>>, vector<1x8x128xbf16>
    %130 = vector.shape_cast %129 : vector<1x8x128xbf16> to vector<8x128xbf16>
    %cst_96 = arith.constant dense<0.000000e+00> : vector<8x128xf32>
    %131 = tpu.matmul %128, %130, %cst_96 {dimension_numbers = #tpu.dot_dimension_numbers<[1], [0], [0], [1], [0, 0, 1, 1], [], []>} : vector<8x8xbf16>, vector<8x128xbf16>, vector<8x128xf32> -> vector<8x128xf32>
    %132 = arith.addf %92, %131 : vector<8x128xf32>
    %c3 = arith.constant 3 : index
    %c0_97 = arith.constant 0 : index
    %c0_98 = arith.constant 0 : index
    %133 = vector.load %arg5[%c3, %c0_97, %c0_98] : memref<4x128x8xbf16, #tpu.memory_space<vmem>>, vector<1x128x8xbf16>
    %134 = vector.shape_cast %133 : vector<1x128x8xbf16> to vector<128x8xbf16>
    %cst_99 = arith.constant dense<0.000000e+00> : vector<8x8xf32>
    %135 = tpu.matmul %11, %134, %cst_99 {dimension_numbers = #tpu.dot_dimension_numbers<[1], [0], [0], [1], [0, 0, 1, 1], [], []>} : vector<8x128xbf16>, vector<128x8xbf16>, vector<8x8xf32> -> vector<8x8xf32>
    %c3_100 = arith.constant 3 : index
    %c0_101 = arith.constant 0 : index
    %c0_102 = arith.constant 0 : index
    %136 = vector.load %arg6[%c3_100, %c0_101, %c0_102] : memref<4x1x8xf32, #tpu.memory_space<vmem>>, vector<1x1x8xf32>
    %137 = vector.shape_cast %136 : vector<1x1x8xf32> to vector<1x8xf32>
    %138 = vector.broadcast %137 : vector<1x8xf32> to vector<8x8xf32>
    %139 = arith.addf %135, %138 : vector<8x8xf32>
    %c3_103 = arith.constant 3 : index
    %c0_104 = arith.constant 0 : index
    %c0_105 = arith.constant 0 : index
    %140 = vector.load %arg7[%c3_103, %c0_104, %c0_105] : memref<4x128x8xbf16, #tpu.memory_space<vmem>>, vector<1x128x8xbf16>
    %141 = vector.shape_cast %140 : vector<1x128x8xbf16> to vector<128x8xbf16>
    %cst_106 = arith.constant dense<0.000000e+00> : vector<8x8xf32>
    %142 = tpu.matmul %11, %141, %cst_106 {dimension_numbers = #tpu.dot_dimension_numbers<[1], [0], [0], [1], [0, 0, 1, 1], [], []>} : vector<8x128xbf16>, vector<128x8xbf16>, vector<8x8xf32> -> vector<8x8xf32>
    %c3_107 = arith.constant 3 : index
    %c0_108 = arith.constant 0 : index
    %c0_109 = arith.constant 0 : index
    %143 = vector.load %arg8[%c3_107, %c0_108, %c0_109] : memref<4x1x8xf32, #tpu.memory_space<vmem>>, vector<1x1x8xf32>
    %144 = vector.shape_cast %143 : vector<1x1x8xf32> to vector<1x8xf32>
    %145 = vector.broadcast %144 : vector<1x8xf32> to vector<8x8xf32>
    %146 = arith.addf %142, %145 : vector<8x8xf32>
    %c3_110 = arith.constant 3 : index
    %c0_111 = arith.constant 0 : index
    %c0_112 = arith.constant 0 : index
    %147 = vector.load %arg9[%c3_110, %c0_111, %c0_112] : memref<4x128x8xbf16, #tpu.memory_space<vmem>>, vector<1x128x8xbf16>
    %148 = vector.shape_cast %147 : vector<1x128x8xbf16> to vector<128x8xbf16>
    %cst_113 = arith.constant dense<0.000000e+00> : vector<8x8xf32>
    %149 = tpu.matmul %11, %148, %cst_113 {dimension_numbers = #tpu.dot_dimension_numbers<[1], [0], [0], [1], [0, 0, 1, 1], [], []>} : vector<8x128xbf16>, vector<128x8xbf16>, vector<8x8xf32> -> vector<8x8xf32>
    %c3_114 = arith.constant 3 : index
    %c0_115 = arith.constant 0 : index
    %c0_116 = arith.constant 0 : index
    %150 = vector.load %arg10[%c3_114, %c0_115, %c0_116] : memref<4x1x8xf32, #tpu.memory_space<vmem>>, vector<1x1x8xf32>
    %151 = vector.shape_cast %150 : vector<1x1x8xf32> to vector<1x8xf32>
    %152 = vector.broadcast %151 : vector<1x8xf32> to vector<8x8xf32>
    %153 = arith.addf %149, %152 : vector<8x8xf32>
    %cst_117 = arith.constant dense<0.000000e+00> : vector<8x8xf32>
    %154 = tpu.matmul %139, %146, %cst_117 {dimension_numbers = #tpu.dot_dimension_numbers<[1], [1], [0], [0], [0, 0, 1, 0], [], []>} : vector<8x8xf32>, vector<8x8xf32>, vector<8x8xf32> -> vector<8x8xf32>
    %cst_118 = arith.constant 0.353553385 : f32
    %155 = vector.broadcast %cst_118 : f32 to vector<8x8xf32>
    %156 = arith.mulf %154, %155 : vector<8x8xf32>
    %cst_119 = arith.constant dense<0xFF800000> : vector<8xf32>
    %157 = vector.multi_reduction <maximumf>, %156, %cst_119 [1] : vector<8x8xf32> to vector<8xf32>
    %158 = vector.shape_cast %157 : vector<8xf32> to vector<8x1xf32>
    %159 = vector.broadcast %158 : vector<8x1xf32> to vector<8x8xf32>
    %160 = arith.subf %156, %159 : vector<8x8xf32>
    %161 = math.exp %160 : vector<8x8xf32>
    %cst_120 = arith.constant dense<0.000000e+00> : vector<8xf32>
    %162 = vector.multi_reduction <add>, %161, %cst_120 [1] : vector<8x8xf32> to vector<8xf32>
    %163 = vector.shape_cast %162 : vector<8xf32> to vector<8x1xf32>
    %164 = tpu.reciprocal %163 {approx = true} : vector<8x1xf32> -> vector<8x1xf32>
    %165 = vector.broadcast %164 : vector<8x1xf32> to vector<8x8xf32>
    %166 = arith.mulf %161, %165 : vector<8x8xf32>
    %cst_121 = arith.constant dense<0.000000e+00> : vector<8x8xf32>
    %167 = tpu.matmul %166, %153, %cst_121 {dimension_numbers = #tpu.dot_dimension_numbers<[1], [0], [0], [1], [0, 0, 1, 1], [], []>} : vector<8x8xf32>, vector<8x8xf32>, vector<8x8xf32> -> vector<8x8xf32>
    %168 = arith.truncf %167 : vector<8x8xf32> to vector<8x8xbf16>
    %c3_122 = arith.constant 3 : index
    %c0_123 = arith.constant 0 : index
    %c0_124 = arith.constant 0 : index
    %169 = vector.load %arg11[%c3_122, %c0_123, %c0_124] : memref<4x8x128xbf16, #tpu.memory_space<vmem>>, vector<1x8x128xbf16>
    %170 = vector.shape_cast %169 : vector<1x8x128xbf16> to vector<8x128xbf16>
    %cst_125 = arith.constant dense<0.000000e+00> : vector<8x128xf32>
    %171 = tpu.matmul %168, %170, %cst_125 {dimension_numbers = #tpu.dot_dimension_numbers<[1], [0], [0], [1], [0, 0, 1, 1], [], []>} : vector<8x8xbf16>, vector<8x128xbf16>, vector<8x128xf32> -> vector<8x128xf32>
    %172 = arith.addf %132, %171 : vector<8x128xf32>
    %c0_126 = arith.constant 0 : index
    %c0_127 = arith.constant 0 : index
    %173 = vector.load %arg12[%c0_126, %c0_127] : memref<1x128xf32, #tpu.memory_space<vmem>>, vector<1x128xf32>
    %174 = vector.broadcast %173 : vector<1x128xf32> to vector<8x128xf32>
    %175 = arith.addf %172, %174 : vector<8x128xf32>
    %176 = arith.addf %175, %10 : vector<8x128xf32>
    %c0_128 = arith.constant 0 : index
    %c0_129 = arith.constant 0 : index
    %177 = vector.load %arg13[%c0_128, %c0_129] : memref<1x128xf32, #tpu.memory_space<vmem>>, vector<1x128xf32>
    %c0_130 = arith.constant 0 : index
    %c0_131 = arith.constant 0 : index
    %178 = vector.load %arg14[%c0_130, %c0_131] : memref<1x128xf32, #tpu.memory_space<vmem>>, vector<1x128xf32>
    %cst_132 = arith.constant dense<0.000000e+00> : vector<8xf32>
    %179 = vector.multi_reduction <add>, %176, %cst_132 [1] : vector<8x128xf32> to vector<8xf32>
    %180 = vector.shape_cast %179 : vector<8xf32> to vector<8x1xf32>
    %cst_133 = arith.constant 3.125000e-02 : f32
    %181 = vector.broadcast %cst_133 : f32 to vector<8x1xf32>
    %182 = arith.mulf %180, %181 : vector<8x1xf32>
    %183 = arith.mulf %176, %176 : vector<8x128xf32>
    %cst_134 = arith.constant dense<0.000000e+00> : vector<8xf32>
    %184 = vector.multi_reduction <add>, %183, %cst_134 [1] : vector<8x128xf32> to vector<8xf32>
    %185 = vector.shape_cast %184 : vector<8xf32> to vector<8x1xf32>
    %cst_135 = arith.constant 3.125000e-02 : f32
    %186 = vector.broadcast %cst_135 : f32 to vector<8x1xf32>
    %187 = arith.mulf %185, %186 : vector<8x1xf32>
    %188 = arith.mulf %182, %182 : vector<8x1xf32>
    %189 = arith.subf %187, %188 : vector<8x1xf32>
    %190 = vector.broadcast %182 : vector<8x1xf32> to vector<8x128xf32>
    %191 = arith.subf %176, %190 : vector<8x128xf32>
    %cst_136 = arith.constant 9.99999974E-6 : f32
    %192 = vector.broadcast %cst_136 : f32 to vector<8x1xf32>
    %193 = arith.addf %189, %192 : vector<8x1xf32>
    %194 = math.rsqrt %193 : vector<8x1xf32>
    %195 = vector.broadcast %194 : vector<8x1xf32> to vector<8x128xf32>
    %196 = arith.mulf %191, %195 : vector<8x128xf32>
    %197 = vector.broadcast %177 : vector<1x128xf32> to vector<8x128xf32>
    %198 = arith.mulf %196, %197 : vector<8x128xf32>
    %199 = vector.broadcast %178 : vector<1x128xf32> to vector<8x128xf32>
    %200 = arith.addf %198, %199 : vector<8x128xf32>
    %201 = arith.truncf %200 : vector<8x128xf32> to vector<8x128xbf16>
    %c0_137 = arith.constant 0 : index
    %c0_138 = arith.constant 0 : index
    %202 = vector.load %arg15[%c0_137, %c0_138] : memref<128x128xbf16, #tpu.memory_space<vmem>>, vector<128x128xbf16>
    %cst_139 = arith.constant dense<0.000000e+00> : vector<8x128xf32>
    %203 = tpu.matmul %201, %202, %cst_139 {dimension_numbers = #tpu.dot_dimension_numbers<[1], [0], [0], [1], [0, 0, 1, 1], [], []>} : vector<8x128xbf16>, vector<128x128xbf16>, vector<8x128xf32> -> vector<8x128xf32>
    %c0_140 = arith.constant 0 : index
    %c0_141 = arith.constant 0 : index
    %204 = vector.load %arg16[%c0_140, %c0_141] : memref<1x128xf32, #tpu.memory_space<vmem>>, vector<1x128xf32>
    %205 = vector.broadcast %204 : vector<1x128xf32> to vector<8x128xf32>
    %206 = arith.addf %203, %205 : vector<8x128xf32>
    %cst_142 = arith.constant 0.000000e+00 : f32
    %207 = vector.broadcast %cst_142 : f32 to vector<8x128xf32>
    %208 = arith.maximumf %206, %207 : vector<8x128xf32>
    %209 = arith.truncf %208 : vector<8x128xf32> to vector<8x128xbf16>
    %c0_143 = arith.constant 0 : index
    %c0_144 = arith.constant 0 : index
    %210 = vector.load %arg17[%c0_143, %c0_144] : memref<128x128xbf16, #tpu.memory_space<vmem>>, vector<128x128xbf16>
    %cst_145 = arith.constant dense<0.000000e+00> : vector<8x128xf32>
    %211 = tpu.matmul %209, %210, %cst_145 {dimension_numbers = #tpu.dot_dimension_numbers<[1], [0], [0], [1], [0, 0, 1, 1], [], []>} : vector<8x128xbf16>, vector<128x128xbf16>, vector<8x128xf32> -> vector<8x128xf32>
    %c0_146 = arith.constant 0 : index
    %c0_147 = arith.constant 0 : index
    %212 = vector.load %arg18[%c0_146, %c0_147] : memref<1x128xf32, #tpu.memory_space<vmem>>, vector<1x128xf32>
    %213 = vector.broadcast %212 : vector<1x128xf32> to vector<8x128xf32>
    %214 = arith.addf %211, %213 : vector<8x128xf32>
    %215 = arith.addf %214, %200 : vector<8x128xf32>
    %c0_148 = arith.constant 0 : index
    %c0_149 = arith.constant 0 : index
    %216 = vector.load %arg19[%c0_148, %c0_149] : memref<1x128xf32, #tpu.memory_space<vmem>>, vector<1x128xf32>
    %c0_150 = arith.constant 0 : index
    %c0_151 = arith.constant 0 : index
    %217 = vector.load %arg20[%c0_150, %c0_151] : memref<1x128xf32, #tpu.memory_space<vmem>>, vector<1x128xf32>
    %cst_152 = arith.constant dense<0.000000e+00> : vector<8xf32>
    %218 = vector.multi_reduction <add>, %215, %cst_152 [1] : vector<8x128xf32> to vector<8xf32>
    %219 = vector.shape_cast %218 : vector<8xf32> to vector<8x1xf32>
    %cst_153 = arith.constant 3.125000e-02 : f32
    %220 = vector.broadcast %cst_153 : f32 to vector<8x1xf32>
    %221 = arith.mulf %219, %220 : vector<8x1xf32>
    %222 = arith.mulf %215, %215 : vector<8x128xf32>
    %cst_154 = arith.constant dense<0.000000e+00> : vector<8xf32>
    %223 = vector.multi_reduction <add>, %222, %cst_154 [1] : vector<8x128xf32> to vector<8xf32>
    %224 = vector.shape_cast %223 : vector<8xf32> to vector<8x1xf32>
    %cst_155 = arith.constant 3.125000e-02 : f32
    %225 = vector.broadcast %cst_155 : f32 to vector<8x1xf32>
    %226 = arith.mulf %224, %225 : vector<8x1xf32>
    %227 = arith.mulf %221, %221 : vector<8x1xf32>
    %228 = arith.subf %226, %227 : vector<8x1xf32>
    %229 = vector.broadcast %221 : vector<8x1xf32> to vector<8x128xf32>
    %230 = arith.subf %215, %229 : vector<8x128xf32>
    %cst_156 = arith.constant 9.99999974E-6 : f32
    %231 = vector.broadcast %cst_156 : f32 to vector<8x1xf32>
    %232 = arith.addf %228, %231 : vector<8x1xf32>
    %233 = math.rsqrt %232 : vector<8x1xf32>
    %234 = vector.broadcast %233 : vector<8x1xf32> to vector<8x128xf32>
    %235 = arith.mulf %230, %234 : vector<8x128xf32>
    %236 = vector.broadcast %216 : vector<1x128xf32> to vector<8x128xf32>
    %237 = arith.mulf %235, %236 : vector<8x128xf32>
    %238 = vector.broadcast %217 : vector<1x128xf32> to vector<8x128xf32>
    %239 = arith.addf %237, %238 : vector<8x128xf32>
    %240 = arith.addf %239, %0 : vector<8x128xf32>
    %241 = arith.truncf %240 : vector<8x128xf32> to vector<8x128xbf16>
    %cst_157 = arith.constant 0.000000e+00 : f32
    %242 = vector.broadcast %cst_157 : f32 to vector<8x128xf32>
    %c0_158 = arith.constant 0 : index
    %c0_159 = arith.constant 0 : index
    %c0_160 = arith.constant 0 : index
    %243 = vector.load %arg21[%c0_158, %c0_159, %c0_160] : memref<4x128x8xbf16, #tpu.memory_space<vmem>>, vector<1x128x8xbf16>
    %244 = vector.shape_cast %243 : vector<1x128x8xbf16> to vector<128x8xbf16>
    %cst_161 = arith.constant dense<0.000000e+00> : vector<8x8xf32>
    %245 = tpu.matmul %241, %244, %cst_161 {dimension_numbers = #tpu.dot_dimension_numbers<[1], [0], [0], [1], [0, 0, 1, 1], [], []>} : vector<8x128xbf16>, vector<128x8xbf16>, vector<8x8xf32> -> vector<8x8xf32>
    %c0_162 = arith.constant 0 : index
    %c0_163 = arith.constant 0 : index
    %c0_164 = arith.constant 0 : index
    %246 = vector.load %arg22[%c0_162, %c0_163, %c0_164] : memref<4x1x8xf32, #tpu.memory_space<vmem>>, vector<1x1x8xf32>
    %247 = vector.shape_cast %246 : vector<1x1x8xf32> to vector<1x8xf32>
    %248 = vector.broadcast %247 : vector<1x8xf32> to vector<8x8xf32>
    %249 = arith.addf %245, %248 : vector<8x8xf32>
    %c0_165 = arith.constant 0 : index
    %c0_166 = arith.constant 0 : index
    %c0_167 = arith.constant 0 : index
    %250 = vector.load %arg23[%c0_165, %c0_166, %c0_167] : memref<4x128x8xbf16, #tpu.memory_space<vmem>>, vector<1x128x8xbf16>
    %251 = vector.shape_cast %250 : vector<1x128x8xbf16> to vector<128x8xbf16>
    %cst_168 = arith.constant dense<0.000000e+00> : vector<8x8xf32>
    %252 = tpu.matmul %241, %251, %cst_168 {dimension_numbers = #tpu.dot_dimension_numbers<[1], [0], [0], [1], [0, 0, 1, 1], [], []>} : vector<8x128xbf16>, vector<128x8xbf16>, vector<8x8xf32> -> vector<8x8xf32>
    %c0_169 = arith.constant 0 : index
    %c0_170 = arith.constant 0 : index
    %c0_171 = arith.constant 0 : index
    %253 = vector.load %arg24[%c0_169, %c0_170, %c0_171] : memref<4x1x8xf32, #tpu.memory_space<vmem>>, vector<1x1x8xf32>
    %254 = vector.shape_cast %253 : vector<1x1x8xf32> to vector<1x8xf32>
    %255 = vector.broadcast %254 : vector<1x8xf32> to vector<8x8xf32>
    %256 = arith.addf %252, %255 : vector<8x8xf32>
    %c0_172 = arith.constant 0 : index
    %c0_173 = arith.constant 0 : index
    %c0_174 = arith.constant 0 : index
    %257 = vector.load %arg25[%c0_172, %c0_173, %c0_174] : memref<4x128x8xbf16, #tpu.memory_space<vmem>>, vector<1x128x8xbf16>
    %258 = vector.shape_cast %257 : vector<1x128x8xbf16> to vector<128x8xbf16>
    %cst_175 = arith.constant dense<0.000000e+00> : vector<8x8xf32>
    %259 = tpu.matmul %241, %258, %cst_175 {dimension_numbers = #tpu.dot_dimension_numbers<[1], [0], [0], [1], [0, 0, 1, 1], [], []>} : vector<8x128xbf16>, vector<128x8xbf16>, vector<8x8xf32> -> vector<8x8xf32>
    %c0_176 = arith.constant 0 : index
    %c0_177 = arith.constant 0 : index
    %c0_178 = arith.constant 0 : index
    %260 = vector.load %arg26[%c0_176, %c0_177, %c0_178] : memref<4x1x8xf32, #tpu.memory_space<vmem>>, vector<1x1x8xf32>
    %261 = vector.shape_cast %260 : vector<1x1x8xf32> to vector<1x8xf32>
    %262 = vector.broadcast %261 : vector<1x8xf32> to vector<8x8xf32>
    %263 = arith.addf %259, %262 : vector<8x8xf32>
    %cst_179 = arith.constant dense<0.000000e+00> : vector<8x8xf32>
    %264 = tpu.matmul %249, %256, %cst_179 {dimension_numbers = #tpu.dot_dimension_numbers<[1], [1], [0], [0], [0, 0, 1, 0], [], []>} : vector<8x8xf32>, vector<8x8xf32>, vector<8x8xf32> -> vector<8x8xf32>
    %cst_180 = arith.constant 0.353553385 : f32
    %265 = vector.broadcast %cst_180 : f32 to vector<8x8xf32>
    %266 = arith.mulf %264, %265 : vector<8x8xf32>
    %cst_181 = arith.constant dense<0xFF800000> : vector<8xf32>
    %267 = vector.multi_reduction <maximumf>, %266, %cst_181 [1] : vector<8x8xf32> to vector<8xf32>
    %268 = vector.shape_cast %267 : vector<8xf32> to vector<8x1xf32>
    %269 = vector.broadcast %268 : vector<8x1xf32> to vector<8x8xf32>
    %270 = arith.subf %266, %269 : vector<8x8xf32>
    %271 = math.exp %270 : vector<8x8xf32>
    %cst_182 = arith.constant dense<0.000000e+00> : vector<8xf32>
    %272 = vector.multi_reduction <add>, %271, %cst_182 [1] : vector<8x8xf32> to vector<8xf32>
    %273 = vector.shape_cast %272 : vector<8xf32> to vector<8x1xf32>
    %274 = tpu.reciprocal %273 {approx = true} : vector<8x1xf32> -> vector<8x1xf32>
    %275 = vector.broadcast %274 : vector<8x1xf32> to vector<8x8xf32>
    %276 = arith.mulf %271, %275 : vector<8x8xf32>
    %cst_183 = arith.constant dense<0.000000e+00> : vector<8x8xf32>
    %277 = tpu.matmul %276, %263, %cst_183 {dimension_numbers = #tpu.dot_dimension_numbers<[1], [0], [0], [1], [0, 0, 1, 1], [], []>} : vector<8x8xf32>, vector<8x8xf32>, vector<8x8xf32> -> vector<8x8xf32>
    %278 = arith.truncf %277 : vector<8x8xf32> to vector<8x8xbf16>
    %c0_184 = arith.constant 0 : index
    %c0_185 = arith.constant 0 : index
    %c0_186 = arith.constant 0 : index
    %279 = vector.load %arg27[%c0_184, %c0_185, %c0_186] : memref<4x8x128xbf16, #tpu.memory_space<vmem>>, vector<1x8x128xbf16>
    %280 = vector.shape_cast %279 : vector<1x8x128xbf16> to vector<8x128xbf16>
    %cst_187 = arith.constant dense<0.000000e+00> : vector<8x128xf32>
    %281 = tpu.matmul %278, %280, %cst_187 {dimension_numbers = #tpu.dot_dimension_numbers<[1], [0], [0], [1], [0, 0, 1, 1], [], []>} : vector<8x8xbf16>, vector<8x128xbf16>, vector<8x128xf32> -> vector<8x128xf32>
    %282 = arith.addf %242, %281 : vector<8x128xf32>
    %c1_188 = arith.constant 1 : index
    %c0_189 = arith.constant 0 : index
    %c0_190 = arith.constant 0 : index
    %283 = vector.load %arg21[%c1_188, %c0_189, %c0_190] : memref<4x128x8xbf16, #tpu.memory_space<vmem>>, vector<1x128x8xbf16>
    %284 = vector.shape_cast %283 : vector<1x128x8xbf16> to vector<128x8xbf16>
    %cst_191 = arith.constant dense<0.000000e+00> : vector<8x8xf32>
    %285 = tpu.matmul %241, %284, %cst_191 {dimension_numbers = #tpu.dot_dimension_numbers<[1], [0], [0], [1], [0, 0, 1, 1], [], []>} : vector<8x128xbf16>, vector<128x8xbf16>, vector<8x8xf32> -> vector<8x8xf32>
    %c1_192 = arith.constant 1 : index
    %c0_193 = arith.constant 0 : index
    %c0_194 = arith.constant 0 : index
    %286 = vector.load %arg22[%c1_192, %c0_193, %c0_194] : memref<4x1x8xf32, #tpu.memory_space<vmem>>, vector<1x1x8xf32>
    %287 = vector.shape_cast %286 : vector<1x1x8xf32> to vector<1x8xf32>
    %288 = vector.broadcast %287 : vector<1x8xf32> to vector<8x8xf32>
    %289 = arith.addf %285, %288 : vector<8x8xf32>
    %c1_195 = arith.constant 1 : index
    %c0_196 = arith.constant 0 : index
    %c0_197 = arith.constant 0 : index
    %290 = vector.load %arg23[%c1_195, %c0_196, %c0_197] : memref<4x128x8xbf16, #tpu.memory_space<vmem>>, vector<1x128x8xbf16>
    %291 = vector.shape_cast %290 : vector<1x128x8xbf16> to vector<128x8xbf16>
    %cst_198 = arith.constant dense<0.000000e+00> : vector<8x8xf32>
    %292 = tpu.matmul %241, %291, %cst_198 {dimension_numbers = #tpu.dot_dimension_numbers<[1], [0], [0], [1], [0, 0, 1, 1], [], []>} : vector<8x128xbf16>, vector<128x8xbf16>, vector<8x8xf32> -> vector<8x8xf32>
    %c1_199 = arith.constant 1 : index
    %c0_200 = arith.constant 0 : index
    %c0_201 = arith.constant 0 : index
    %293 = vector.load %arg24[%c1_199, %c0_200, %c0_201] : memref<4x1x8xf32, #tpu.memory_space<vmem>>, vector<1x1x8xf32>
    %294 = vector.shape_cast %293 : vector<1x1x8xf32> to vector<1x8xf32>
    %295 = vector.broadcast %294 : vector<1x8xf32> to vector<8x8xf32>
    %296 = arith.addf %292, %295 : vector<8x8xf32>
    %c1_202 = arith.constant 1 : index
    %c0_203 = arith.constant 0 : index
    %c0_204 = arith.constant 0 : index
    %297 = vector.load %arg25[%c1_202, %c0_203, %c0_204] : memref<4x128x8xbf16, #tpu.memory_space<vmem>>, vector<1x128x8xbf16>
    %298 = vector.shape_cast %297 : vector<1x128x8xbf16> to vector<128x8xbf16>
    %cst_205 = arith.constant dense<0.000000e+00> : vector<8x8xf32>
    %299 = tpu.matmul %241, %298, %cst_205 {dimension_numbers = #tpu.dot_dimension_numbers<[1], [0], [0], [1], [0, 0, 1, 1], [], []>} : vector<8x128xbf16>, vector<128x8xbf16>, vector<8x8xf32> -> vector<8x8xf32>
    %c1_206 = arith.constant 1 : index
    %c0_207 = arith.constant 0 : index
    %c0_208 = arith.constant 0 : index
    %300 = vector.load %arg26[%c1_206, %c0_207, %c0_208] : memref<4x1x8xf32, #tpu.memory_space<vmem>>, vector<1x1x8xf32>
    %301 = vector.shape_cast %300 : vector<1x1x8xf32> to vector<1x8xf32>
    %302 = vector.broadcast %301 : vector<1x8xf32> to vector<8x8xf32>
    %303 = arith.addf %299, %302 : vector<8x8xf32>
    %cst_209 = arith.constant dense<0.000000e+00> : vector<8x8xf32>
    %304 = tpu.matmul %289, %296, %cst_209 {dimension_numbers = #tpu.dot_dimension_numbers<[1], [1], [0], [0], [0, 0, 1, 0], [], []>} : vector<8x8xf32>, vector<8x8xf32>, vector<8x8xf32> -> vector<8x8xf32>
    %cst_210 = arith.constant 0.353553385 : f32
    %305 = vector.broadcast %cst_210 : f32 to vector<8x8xf32>
    %306 = arith.mulf %304, %305 : vector<8x8xf32>
    %cst_211 = arith.constant dense<0xFF800000> : vector<8xf32>
    %307 = vector.multi_reduction <maximumf>, %306, %cst_211 [1] : vector<8x8xf32> to vector<8xf32>
    %308 = vector.shape_cast %307 : vector<8xf32> to vector<8x1xf32>
    %309 = vector.broadcast %308 : vector<8x1xf32> to vector<8x8xf32>
    %310 = arith.subf %306, %309 : vector<8x8xf32>
    %311 = math.exp %310 : vector<8x8xf32>
    %cst_212 = arith.constant dense<0.000000e+00> : vector<8xf32>
    %312 = vector.multi_reduction <add>, %311, %cst_212 [1] : vector<8x8xf32> to vector<8xf32>
    %313 = vector.shape_cast %312 : vector<8xf32> to vector<8x1xf32>
    %314 = tpu.reciprocal %313 {approx = true} : vector<8x1xf32> -> vector<8x1xf32>
    %315 = vector.broadcast %314 : vector<8x1xf32> to vector<8x8xf32>
    %316 = arith.mulf %311, %315 : vector<8x8xf32>
    %cst_213 = arith.constant dense<0.000000e+00> : vector<8x8xf32>
    %317 = tpu.matmul %316, %303, %cst_213 {dimension_numbers = #tpu.dot_dimension_numbers<[1], [0], [0], [1], [0, 0, 1, 1], [], []>} : vector<8x8xf32>, vector<8x8xf32>, vector<8x8xf32> -> vector<8x8xf32>
    %318 = arith.truncf %317 : vector<8x8xf32> to vector<8x8xbf16>
    %c1_214 = arith.constant 1 : index
    %c0_215 = arith.constant 0 : index
    %c0_216 = arith.constant 0 : index
    %319 = vector.load %arg27[%c1_214, %c0_215, %c0_216] : memref<4x8x128xbf16, #tpu.memory_space<vmem>>, vector<1x8x128xbf16>
    %320 = vector.shape_cast %319 : vector<1x8x128xbf16> to vector<8x128xbf16>
    %cst_217 = arith.constant dense<0.000000e+00> : vector<8x128xf32>
    %321 = tpu.matmul %318, %320, %cst_217 {dimension_numbers = #tpu.dot_dimension_numbers<[1], [0], [0], [1], [0, 0, 1, 1], [], []>} : vector<8x8xbf16>, vector<8x128xbf16>, vector<8x128xf32> -> vector<8x128xf32>
    %322 = arith.addf %282, %321 : vector<8x128xf32>
    %c2_218 = arith.constant 2 : index
    %c0_219 = arith.constant 0 : index
    %c0_220 = arith.constant 0 : index
    %323 = vector.load %arg21[%c2_218, %c0_219, %c0_220] : memref<4x128x8xbf16, #tpu.memory_space<vmem>>, vector<1x128x8xbf16>
    %324 = vector.shape_cast %323 : vector<1x128x8xbf16> to vector<128x8xbf16>
    %cst_221 = arith.constant dense<0.000000e+00> : vector<8x8xf32>
    %325 = tpu.matmul %241, %324, %cst_221 {dimension_numbers = #tpu.dot_dimension_numbers<[1], [0], [0], [1], [0, 0, 1, 1], [], []>} : vector<8x128xbf16>, vector<128x8xbf16>, vector<8x8xf32> -> vector<8x8xf32>
    %c2_222 = arith.constant 2 : index
    %c0_223 = arith.constant 0 : index
    %c0_224 = arith.constant 0 : index
    %326 = vector.load %arg22[%c2_222, %c0_223, %c0_224] : memref<4x1x8xf32, #tpu.memory_space<vmem>>, vector<1x1x8xf32>
    %327 = vector.shape_cast %326 : vector<1x1x8xf32> to vector<1x8xf32>
    %328 = vector.broadcast %327 : vector<1x8xf32> to vector<8x8xf32>
    %329 = arith.addf %325, %328 : vector<8x8xf32>
    %c2_225 = arith.constant 2 : index
    %c0_226 = arith.constant 0 : index
    %c0_227 = arith.constant 0 : index
    %330 = vector.load %arg23[%c2_225, %c0_226, %c0_227] : memref<4x128x8xbf16, #tpu.memory_space<vmem>>, vector<1x128x8xbf16>
    %331 = vector.shape_cast %330 : vector<1x128x8xbf16> to vector<128x8xbf16>
    %cst_228 = arith.constant dense<0.000000e+00> : vector<8x8xf32>
    %332 = tpu.matmul %241, %331, %cst_228 {dimension_numbers = #tpu.dot_dimension_numbers<[1], [0], [0], [1], [0, 0, 1, 1], [], []>} : vector<8x128xbf16>, vector<128x8xbf16>, vector<8x8xf32> -> vector<8x8xf32>
    %c2_229 = arith.constant 2 : index
    %c0_230 = arith.constant 0 : index
    %c0_231 = arith.constant 0 : index
    %333 = vector.load %arg24[%c2_229, %c0_230, %c0_231] : memref<4x1x8xf32, #tpu.memory_space<vmem>>, vector<1x1x8xf32>
    %334 = vector.shape_cast %333 : vector<1x1x8xf32> to vector<1x8xf32>
    %335 = vector.broadcast %334 : vector<1x8xf32> to vector<8x8xf32>
    %336 = arith.addf %332, %335 : vector<8x8xf32>
    %c2_232 = arith.constant 2 : index
    %c0_233 = arith.constant 0 : index
    %c0_234 = arith.constant 0 : index
    %337 = vector.load %arg25[%c2_232, %c0_233, %c0_234] : memref<4x128x8xbf16, #tpu.memory_space<vmem>>, vector<1x128x8xbf16>
    %338 = vector.shape_cast %337 : vector<1x128x8xbf16> to vector<128x8xbf16>
    %cst_235 = arith.constant dense<0.000000e+00> : vector<8x8xf32>
    %339 = tpu.matmul %241, %338, %cst_235 {dimension_numbers = #tpu.dot_dimension_numbers<[1], [0], [0], [1], [0, 0, 1, 1], [], []>} : vector<8x128xbf16>, vector<128x8xbf16>, vector<8x8xf32> -> vector<8x8xf32>
    %c2_236 = arith.constant 2 : index
    %c0_237 = arith.constant 0 : index
    %c0_238 = arith.constant 0 : index
    %340 = vector.load %arg26[%c2_236, %c0_237, %c0_238] : memref<4x1x8xf32, #tpu.memory_space<vmem>>, vector<1x1x8xf32>
    %341 = vector.shape_cast %340 : vector<1x1x8xf32> to vector<1x8xf32>
    %342 = vector.broadcast %341 : vector<1x8xf32> to vector<8x8xf32>
    %343 = arith.addf %339, %342 : vector<8x8xf32>
    %cst_239 = arith.constant dense<0.000000e+00> : vector<8x8xf32>
    %344 = tpu.matmul %329, %336, %cst_239 {dimension_numbers = #tpu.dot_dimension_numbers<[1], [1], [0], [0], [0, 0, 1, 0], [], []>} : vector<8x8xf32>, vector<8x8xf32>, vector<8x8xf32> -> vector<8x8xf32>
    %cst_240 = arith.constant 0.353553385 : f32
    %345 = vector.broadcast %cst_240 : f32 to vector<8x8xf32>
    %346 = arith.mulf %344, %345 : vector<8x8xf32>
    %cst_241 = arith.constant dense<0xFF800000> : vector<8xf32>
    %347 = vector.multi_reduction <maximumf>, %346, %cst_241 [1] : vector<8x8xf32> to vector<8xf32>
    %348 = vector.shape_cast %347 : vector<8xf32> to vector<8x1xf32>
    %349 = vector.broadcast %348 : vector<8x1xf32> to vector<8x8xf32>
    %350 = arith.subf %346, %349 : vector<8x8xf32>
    %351 = math.exp %350 : vector<8x8xf32>
    %cst_242 = arith.constant dense<0.000000e+00> : vector<8xf32>
    %352 = vector.multi_reduction <add>, %351, %cst_242 [1] : vector<8x8xf32> to vector<8xf32>
    %353 = vector.shape_cast %352 : vector<8xf32> to vector<8x1xf32>
    %354 = tpu.reciprocal %353 {approx = true} : vector<8x1xf32> -> vector<8x1xf32>
    %355 = vector.broadcast %354 : vector<8x1xf32> to vector<8x8xf32>
    %356 = arith.mulf %351, %355 : vector<8x8xf32>
    %cst_243 = arith.constant dense<0.000000e+00> : vector<8x8xf32>
    %357 = tpu.matmul %356, %343, %cst_243 {dimension_numbers = #tpu.dot_dimension_numbers<[1], [0], [0], [1], [0, 0, 1, 1], [], []>} : vector<8x8xf32>, vector<8x8xf32>, vector<8x8xf32> -> vector<8x8xf32>
    %358 = arith.truncf %357 : vector<8x8xf32> to vector<8x8xbf16>
    %c2_244 = arith.constant 2 : index
    %c0_245 = arith.constant 0 : index
    %c0_246 = arith.constant 0 : index
    %359 = vector.load %arg27[%c2_244, %c0_245, %c0_246] : memref<4x8x128xbf16, #tpu.memory_space<vmem>>, vector<1x8x128xbf16>
    %360 = vector.shape_cast %359 : vector<1x8x128xbf16> to vector<8x128xbf16>
    %cst_247 = arith.constant dense<0.000000e+00> : vector<8x128xf32>
    %361 = tpu.matmul %358, %360, %cst_247 {dimension_numbers = #tpu.dot_dimension_numbers<[1], [0], [0], [1], [0, 0, 1, 1], [], []>} : vector<8x8xbf16>, vector<8x128xbf16>, vector<8x128xf32> -> vector<8x128xf32>
    %362 = arith.addf %322, %361 : vector<8x128xf32>
    %c3_248 = arith.constant 3 : index
    %c0_249 = arith.constant 0 : index
    %c0_250 = arith.constant 0 : index
    %363 = vector.load %arg21[%c3_248, %c0_249, %c0_250] : memref<4x128x8xbf16, #tpu.memory_space<vmem>>, vector<1x128x8xbf16>
    %364 = vector.shape_cast %363 : vector<1x128x8xbf16> to vector<128x8xbf16>
    %cst_251 = arith.constant dense<0.000000e+00> : vector<8x8xf32>
    %365 = tpu.matmul %241, %364, %cst_251 {dimension_numbers = #tpu.dot_dimension_numbers<[1], [0], [0], [1], [0, 0, 1, 1], [], []>} : vector<8x128xbf16>, vector<128x8xbf16>, vector<8x8xf32> -> vector<8x8xf32>
    %c3_252 = arith.constant 3 : index
    %c0_253 = arith.constant 0 : index
    %c0_254 = arith.constant 0 : index
    %366 = vector.load %arg22[%c3_252, %c0_253, %c0_254] : memref<4x1x8xf32, #tpu.memory_space<vmem>>, vector<1x1x8xf32>
    %367 = vector.shape_cast %366 : vector<1x1x8xf32> to vector<1x8xf32>
    %368 = vector.broadcast %367 : vector<1x8xf32> to vector<8x8xf32>
    %369 = arith.addf %365, %368 : vector<8x8xf32>
    %c3_255 = arith.constant 3 : index
    %c0_256 = arith.constant 0 : index
    %c0_257 = arith.constant 0 : index
    %370 = vector.load %arg23[%c3_255, %c0_256, %c0_257] : memref<4x128x8xbf16, #tpu.memory_space<vmem>>, vector<1x128x8xbf16>
    %371 = vector.shape_cast %370 : vector<1x128x8xbf16> to vector<128x8xbf16>
    %cst_258 = arith.constant dense<0.000000e+00> : vector<8x8xf32>
    %372 = tpu.matmul %241, %371, %cst_258 {dimension_numbers = #tpu.dot_dimension_numbers<[1], [0], [0], [1], [0, 0, 1, 1], [], []>} : vector<8x128xbf16>, vector<128x8xbf16>, vector<8x8xf32> -> vector<8x8xf32>
    %c3_259 = arith.constant 3 : index
    %c0_260 = arith.constant 0 : index
    %c0_261 = arith.constant 0 : index
    %373 = vector.load %arg24[%c3_259, %c0_260, %c0_261] : memref<4x1x8xf32, #tpu.memory_space<vmem>>, vector<1x1x8xf32>
    %374 = vector.shape_cast %373 : vector<1x1x8xf32> to vector<1x8xf32>
    %375 = vector.broadcast %374 : vector<1x8xf32> to vector<8x8xf32>
    %376 = arith.addf %372, %375 : vector<8x8xf32>
    %c3_262 = arith.constant 3 : index
    %c0_263 = arith.constant 0 : index
    %c0_264 = arith.constant 0 : index
    %377 = vector.load %arg25[%c3_262, %c0_263, %c0_264] : memref<4x128x8xbf16, #tpu.memory_space<vmem>>, vector<1x128x8xbf16>
    %378 = vector.shape_cast %377 : vector<1x128x8xbf16> to vector<128x8xbf16>
    %cst_265 = arith.constant dense<0.000000e+00> : vector<8x8xf32>
    %379 = tpu.matmul %241, %378, %cst_265 {dimension_numbers = #tpu.dot_dimension_numbers<[1], [0], [0], [1], [0, 0, 1, 1], [], []>} : vector<8x128xbf16>, vector<128x8xbf16>, vector<8x8xf32> -> vector<8x8xf32>
    %c3_266 = arith.constant 3 : index
    %c0_267 = arith.constant 0 : index
    %c0_268 = arith.constant 0 : index
    %380 = vector.load %arg26[%c3_266, %c0_267, %c0_268] : memref<4x1x8xf32, #tpu.memory_space<vmem>>, vector<1x1x8xf32>
    %381 = vector.shape_cast %380 : vector<1x1x8xf32> to vector<1x8xf32>
    %382 = vector.broadcast %381 : vector<1x8xf32> to vector<8x8xf32>
    %383 = arith.addf %379, %382 : vector<8x8xf32>
    %cst_269 = arith.constant dense<0.000000e+00> : vector<8x8xf32>
    %384 = tpu.matmul %369, %376, %cst_269 {dimension_numbers = #tpu.dot_dimension_numbers<[1], [1], [0], [0], [0, 0, 1, 0], [], []>} : vector<8x8xf32>, vector<8x8xf32>, vector<8x8xf32> -> vector<8x8xf32>
    %cst_270 = arith.constant 0.353553385 : f32
    %385 = vector.broadcast %cst_270 : f32 to vector<8x8xf32>
    %386 = arith.mulf %384, %385 : vector<8x8xf32>
    %cst_271 = arith.constant dense<0xFF800000> : vector<8xf32>
    %387 = vector.multi_reduction <maximumf>, %386, %cst_271 [1] : vector<8x8xf32> to vector<8xf32>
    %388 = vector.shape_cast %387 : vector<8xf32> to vector<8x1xf32>
    %389 = vector.broadcast %388 : vector<8x1xf32> to vector<8x8xf32>
    %390 = arith.subf %386, %389 : vector<8x8xf32>
    %391 = math.exp %390 : vector<8x8xf32>
    %cst_272 = arith.constant dense<0.000000e+00> : vector<8xf32>
    %392 = vector.multi_reduction <add>, %391, %cst_272 [1] : vector<8x8xf32> to vector<8xf32>
    %393 = vector.shape_cast %392 : vector<8xf32> to vector<8x1xf32>
    %394 = tpu.reciprocal %393 {approx = true} : vector<8x1xf32> -> vector<8x1xf32>
    %395 = vector.broadcast %394 : vector<8x1xf32> to vector<8x8xf32>
    %396 = arith.mulf %391, %395 : vector<8x8xf32>
    %cst_273 = arith.constant dense<0.000000e+00> : vector<8x8xf32>
    %397 = tpu.matmul %396, %383, %cst_273 {dimension_numbers = #tpu.dot_dimension_numbers<[1], [0], [0], [1], [0, 0, 1, 1], [], []>} : vector<8x8xf32>, vector<8x8xf32>, vector<8x8xf32> -> vector<8x8xf32>
    %398 = arith.truncf %397 : vector<8x8xf32> to vector<8x8xbf16>
    %c3_274 = arith.constant 3 : index
    %c0_275 = arith.constant 0 : index
    %c0_276 = arith.constant 0 : index
    %399 = vector.load %arg27[%c3_274, %c0_275, %c0_276] : memref<4x8x128xbf16, #tpu.memory_space<vmem>>, vector<1x8x128xbf16>
    %400 = vector.shape_cast %399 : vector<1x8x128xbf16> to vector<8x128xbf16>
    %cst_277 = arith.constant dense<0.000000e+00> : vector<8x128xf32>
    %401 = tpu.matmul %398, %400, %cst_277 {dimension_numbers = #tpu.dot_dimension_numbers<[1], [0], [0], [1], [0, 0, 1, 1], [], []>} : vector<8x8xbf16>, vector<8x128xbf16>, vector<8x128xf32> -> vector<8x128xf32>
    %402 = arith.addf %362, %401 : vector<8x128xf32>
    %c0_278 = arith.constant 0 : index
    %c0_279 = arith.constant 0 : index
    %403 = vector.load %arg28[%c0_278, %c0_279] : memref<1x128xf32, #tpu.memory_space<vmem>>, vector<1x128xf32>
    %404 = vector.broadcast %403 : vector<1x128xf32> to vector<8x128xf32>
    %405 = arith.addf %402, %404 : vector<8x128xf32>
    %406 = arith.addf %405, %240 : vector<8x128xf32>
    %c0_280 = arith.constant 0 : index
    %c0_281 = arith.constant 0 : index
    %407 = vector.load %arg29[%c0_280, %c0_281] : memref<1x128xf32, #tpu.memory_space<vmem>>, vector<1x128xf32>
    %c0_282 = arith.constant 0 : index
    %c0_283 = arith.constant 0 : index
    %408 = vector.load %arg30[%c0_282, %c0_283] : memref<1x128xf32, #tpu.memory_space<vmem>>, vector<1x128xf32>
    %cst_284 = arith.constant dense<0.000000e+00> : vector<8xf32>
    %409 = vector.multi_reduction <add>, %406, %cst_284 [1] : vector<8x128xf32> to vector<8xf32>
    %410 = vector.shape_cast %409 : vector<8xf32> to vector<8x1xf32>
    %cst_285 = arith.constant 3.125000e-02 : f32
    %411 = vector.broadcast %cst_285 : f32 to vector<8x1xf32>
    %412 = arith.mulf %410, %411 : vector<8x1xf32>
    %413 = arith.mulf %406, %406 : vector<8x128xf32>
    %cst_286 = arith.constant dense<0.000000e+00> : vector<8xf32>
    %414 = vector.multi_reduction <add>, %413, %cst_286 [1] : vector<8x128xf32> to vector<8xf32>
    %415 = vector.shape_cast %414 : vector<8xf32> to vector<8x1xf32>
    %cst_287 = arith.constant 3.125000e-02 : f32
    %416 = vector.broadcast %cst_287 : f32 to vector<8x1xf32>
    %417 = arith.mulf %415, %416 : vector<8x1xf32>
    %418 = arith.mulf %412, %412 : vector<8x1xf32>
    %419 = arith.subf %417, %418 : vector<8x1xf32>
    %420 = vector.broadcast %412 : vector<8x1xf32> to vector<8x128xf32>
    %421 = arith.subf %406, %420 : vector<8x128xf32>
    %cst_288 = arith.constant 9.99999974E-6 : f32
    %422 = vector.broadcast %cst_288 : f32 to vector<8x1xf32>
    %423 = arith.addf %419, %422 : vector<8x1xf32>
    %424 = math.rsqrt %423 : vector<8x1xf32>
    %425 = vector.broadcast %424 : vector<8x1xf32> to vector<8x128xf32>
    %426 = arith.mulf %421, %425 : vector<8x128xf32>
    %427 = vector.broadcast %407 : vector<1x128xf32> to vector<8x128xf32>
    %428 = arith.mulf %426, %427 : vector<8x128xf32>
    %429 = vector.broadcast %408 : vector<1x128xf32> to vector<8x128xf32>
    %430 = arith.addf %428, %429 : vector<8x128xf32>
    %431 = arith.truncf %430 : vector<8x128xf32> to vector<8x128xbf16>
    %c0_289 = arith.constant 0 : index
    %c0_290 = arith.constant 0 : index
    %432 = vector.load %arg31[%c0_289, %c0_290] : memref<128x128xbf16, #tpu.memory_space<vmem>>, vector<128x128xbf16>
    %cst_291 = arith.constant dense<0.000000e+00> : vector<8x128xf32>
    %433 = tpu.matmul %431, %432, %cst_291 {dimension_numbers = #tpu.dot_dimension_numbers<[1], [0], [0], [1], [0, 0, 1, 1], [], []>} : vector<8x128xbf16>, vector<128x128xbf16>, vector<8x128xf32> -> vector<8x128xf32>
    %c0_292 = arith.constant 0 : index
    %c0_293 = arith.constant 0 : index
    %434 = vector.load %arg32[%c0_292, %c0_293] : memref<1x128xf32, #tpu.memory_space<vmem>>, vector<1x128xf32>
    %435 = vector.broadcast %434 : vector<1x128xf32> to vector<8x128xf32>
    %436 = arith.addf %433, %435 : vector<8x128xf32>
    %cst_294 = arith.constant 0.000000e+00 : f32
    %437 = vector.broadcast %cst_294 : f32 to vector<8x128xf32>
    %438 = arith.maximumf %436, %437 : vector<8x128xf32>
    %439 = arith.truncf %438 : vector<8x128xf32> to vector<8x128xbf16>
    %c0_295 = arith.constant 0 : index
    %c0_296 = arith.constant 0 : index
    %440 = vector.load %arg33[%c0_295, %c0_296] : memref<128x128xbf16, #tpu.memory_space<vmem>>, vector<128x128xbf16>
    %cst_297 = arith.constant dense<0.000000e+00> : vector<8x128xf32>
    %441 = tpu.matmul %439, %440, %cst_297 {dimension_numbers = #tpu.dot_dimension_numbers<[1], [0], [0], [1], [0, 0, 1, 1], [], []>} : vector<8x128xbf16>, vector<128x128xbf16>, vector<8x128xf32> -> vector<8x128xf32>
    %c0_298 = arith.constant 0 : index
    %c0_299 = arith.constant 0 : index
    %442 = vector.load %arg34[%c0_298, %c0_299] : memref<1x128xf32, #tpu.memory_space<vmem>>, vector<1x128xf32>
    %443 = vector.broadcast %442 : vector<1x128xf32> to vector<8x128xf32>
    %444 = arith.addf %441, %443 : vector<8x128xf32>
    %445 = arith.addf %444, %430 : vector<8x128xf32>
    %c0_300 = arith.constant 0 : index
    %c0_301 = arith.constant 0 : index
    %446 = vector.load %arg35[%c0_300, %c0_301] : memref<1x128xf32, #tpu.memory_space<vmem>>, vector<1x128xf32>
    %c0_302 = arith.constant 0 : index
    %c0_303 = arith.constant 0 : index
    %447 = vector.load %arg36[%c0_302, %c0_303] : memref<1x128xf32, #tpu.memory_space<vmem>>, vector<1x128xf32>
    %cst_304 = arith.constant dense<0.000000e+00> : vector<8xf32>
    %448 = vector.multi_reduction <add>, %445, %cst_304 [1] : vector<8x128xf32> to vector<8xf32>
    %449 = vector.shape_cast %448 : vector<8xf32> to vector<8x1xf32>
    %cst_305 = arith.constant 3.125000e-02 : f32
    %450 = vector.broadcast %cst_305 : f32 to vector<8x1xf32>
    %451 = arith.mulf %449, %450 : vector<8x1xf32>
    %452 = arith.mulf %445, %445 : vector<8x128xf32>
    %cst_306 = arith.constant dense<0.000000e+00> : vector<8xf32>
    %453 = vector.multi_reduction <add>, %452, %cst_306 [1] : vector<8x128xf32> to vector<8xf32>
    %454 = vector.shape_cast %453 : vector<8xf32> to vector<8x1xf32>
    %cst_307 = arith.constant 3.125000e-02 : f32
    %455 = vector.broadcast %cst_307 : f32 to vector<8x1xf32>
    %456 = arith.mulf %454, %455 : vector<8x1xf32>
    %457 = arith.mulf %451, %451 : vector<8x1xf32>
    %458 = arith.subf %456, %457 : vector<8x1xf32>
    %459 = vector.broadcast %451 : vector<8x1xf32> to vector<8x128xf32>
    %460 = arith.subf %445, %459 : vector<8x128xf32>
    %cst_308 = arith.constant 9.99999974E-6 : f32
    %461 = vector.broadcast %cst_308 : f32 to vector<8x1xf32>
    %462 = arith.addf %458, %461 : vector<8x1xf32>
    %463 = math.rsqrt %462 : vector<8x1xf32>
    %464 = vector.broadcast %463 : vector<8x1xf32> to vector<8x128xf32>
    %465 = arith.mulf %460, %464 : vector<8x128xf32>
    %466 = vector.broadcast %446 : vector<1x128xf32> to vector<8x128xf32>
    %467 = arith.mulf %465, %466 : vector<8x128xf32>
    %468 = vector.broadcast %447 : vector<1x128xf32> to vector<8x128xf32>
    %469 = arith.addf %467, %468 : vector<8x128xf32>
    %c0_309 = arith.constant 0 : index
    %c0_310 = arith.constant 0 : index
    %470 = vector.load %arg37[%c0_309, %c0_310] : memref<8x1xf32, #tpu.memory_space<vmem>>, vector<8x1xf32>
    %471 = vector.broadcast %470 : vector<8x1xf32> to vector<8x128xf32>
    %472 = arith.mulf %469, %471 : vector<8x128xf32>
    %cst_311 = arith.constant dense<0.000000e+00> : vector<128xf32>
    %473 = vector.multi_reduction <add>, %472, %cst_311 [0] : vector<8x128xf32> to vector<128xf32>
    %474 = vector.shape_cast %473 : vector<128xf32> to vector<1x128xf32>
    %475 = arith.truncf %474 : vector<1x128xf32> to vector<1x128xbf16>
    %c0_312 = arith.constant 0 : index
    %c0_313 = arith.constant 0 : index
    %476 = vector.load %arg38[%c0_312, %c0_313] : memref<128x128xbf16, #tpu.memory_space<vmem>>, vector<128x128xbf16>
    %cst_314 = arith.constant dense<0.000000e+00> : vector<1x128xf32>
    %477 = tpu.matmul %475, %476, %cst_314 {dimension_numbers = #tpu.dot_dimension_numbers<[1], [0], [0], [1], [0, 0, 1, 1], [], []>} : vector<1x128xbf16>, vector<128x128xbf16>, vector<1x128xf32> -> vector<1x128xf32>
    %c0_315 = arith.constant 0 : index
    %c0_316 = arith.constant 0 : index
    %478 = vector.load %arg39[%c0_315, %c0_316] : memref<1x128xf32, #tpu.memory_space<vmem>>, vector<1x128xf32>
    %479 = arith.addf %477, %478 : vector<1x128xf32>
    %480 = math.tanh %479 : vector<1x128xf32>
    %481 = arith.truncf %480 : vector<1x128xf32> to vector<1x128xbf16>
    %c0_317 = arith.constant 0 : index
    %c0_318 = arith.constant 0 : index
    %482 = vector.load %arg40[%c0_317, %c0_318] : memref<128x128xbf16, #tpu.memory_space<vmem>>, vector<128x128xbf16>
    %cst_319 = arith.constant dense<0.000000e+00> : vector<1x128xf32>
    %483 = tpu.matmul %481, %482, %cst_319 {dimension_numbers = #tpu.dot_dimension_numbers<[1], [0], [0], [1], [0, 0, 1, 1], [], []>} : vector<1x128xbf16>, vector<128x128xbf16>, vector<1x128xf32> -> vector<1x128xf32>
    %c0_320 = arith.constant 0 : index
    %c0_321 = arith.constant 0 : index
    %484 = vector.load %arg41[%c0_320, %c0_321] : memref<1x128xf32, #tpu.memory_space<vmem>>, vector<1x128xf32>
    %485 = arith.addf %483, %484 : vector<1x128xf32>
    %c0_322 = arith.constant 0 : index
    %c0_323 = arith.constant 0 : index
    %c0_324 = arith.constant 0 : index
    %486 = vector.load %arg42[%c0_322, %c0_323, %c0_324] : memref<1x1x128xf32, #tpu.memory_space<vmem>>, vector<1x1x128xf32>
    %487 = vector.shape_cast %486 : vector<1x1x128xf32> to vector<1x128xf32>
    %488 = vector.shape_cast %485 : vector<1x128xf32> to vector<1x1x128xf32>
    tpu.vector_store %arg42[%c0_322, %c0_323, %c0_324], %488 {strides = array<i32>} : memref<1x1x128xf32, #tpu.memory_space<vmem>>, vector<1x1x128xf32>,
    return
  }
  func.func @transform_0(%arg0: i32) -> (i32, i32) {
    %c0_i32 = arith.constant 0 : i32
    %c0_i32_0 = arith.constant 0 : i32
    return %arg0, %c0_i32 : i32, i32
  }
  func.func @transform_1(%arg0: i32) -> (i32, i32) {
    %c0_i32 = arith.constant 0 : i32
    %c0_i32_0 = arith.constant 0 : i32
    %c0_i32_1 = arith.constant 0 : i32
    return %c0_i32, %c0_i32_0 : i32, i32
  }
  func.func @transform_2(%arg0: i32) -> (i32, i32) {
    %c0_i32 = arith.constant 0 : i32
    %c0_i32_0 = arith.constant 0 : i32
    %c0_i32_1 = arith.constant 0 : i32
    return %c0_i32, %c0_i32_0 : i32, i32
  }
  func.func @transform_3(%arg0: i32) -> (i32, i32) {
    %c0_i32 = arith.constant 0 : i32
    %c0_i32_0 = arith.constant 0 : i32
    %c0_i32_1 = arith.constant 0 : i32
    return %c0_i32, %c0_i32_0 : i32, i32
  }
  func.func @transform_4(%arg0: i32) -> (i32, i32, i32) {
    %c0_i32 = arith.constant 0 : i32
    %c0_i32_0 = arith.constant 0 : i32
    %c0_i32_1 = arith.constant 0 : i32
    %c0_i32_2 = arith.constant 0 : i32
    return %c0_i32, %c0_i32_0, %c0_i32_1 : i32, i32, i32
  }
  func.func @transform_5(%arg0: i32) -> (i32, i32, i32) {
    %c0_i32 = arith.constant 0 : i32
    %c0_i32_0 = arith.constant 0 : i32
    %c0_i32_1 = arith.constant 0 : i32
    %c0_i32_2 = arith.constant 0 : i32
    return %c0_i32, %c0_i32_0, %c0_i32_1 : i32, i32, i32
  }
  func.func @transform_6(%arg0: i32) -> (i32, i32, i32) {
    %c0_i32 = arith.constant 0 : i32
    %c0_i32_0 = arith.constant 0 : i32
    %c0_i32_1 = arith.constant 0 : i32
    %c0_i32_2 = arith.constant 0 : i32
    return %c0_i32, %c0_i32_0, %c0_i32_1 : i32, i32, i32
  }
  func.func @transform_7(%arg0: i32) -> (i32, i32, i32) {
    %c0_i32 = arith.constant 0 : i32
    %c0_i32_0 = arith.constant 0 : i32
    %c0_i32_1 = arith.constant 0 : i32
    %c0_i32_2 = arith.constant 0 : i32
    return %c0_i32, %c0_i32_0, %c0_i32_1 : i32, i32, i32
  }
  func.func @transform_8(%arg0: i32) -> (i32, i32, i32) {
    %c0_i32 = arith.constant 0 : i32
    %c0_i32_0 = arith.constant 0 : i32
    %c0_i32_1 = arith.constant 0 : i32
    %c0_i32_2 = arith.constant 0 : i32
    return %c0_i32, %c0_i32_0, %c0_i32_1 : i32, i32, i32
  }
  func.func @transform_9(%arg0: i32) -> (i32, i32, i32) {
    %c0_i32 = arith.constant 0 : i32
    %c0_i32_0 = arith.constant 0 : i32
    %c0_i32_1 = arith.constant 0 : i32
    %c0_i32_2 = arith.constant 0 : i32
    return %c0_i32, %c0_i32_0, %c0_i32_1 : i32, i32, i32
  }
  func.func @transform_10(%arg0: i32) -> (i32, i32, i32) {
    %c0_i32 = arith.constant 0 : i32
    %c0_i32_0 = arith.constant 0 : i32
    %c0_i32_1 = arith.constant 0 : i32
    %c0_i32_2 = arith.constant 0 : i32
    return %c0_i32, %c0_i32_0, %c0_i32_1 : i32, i32, i32
  }
  func.func @transform_11(%arg0: i32) -> (i32, i32) {
    %c0_i32 = arith.constant 0 : i32
    %c0_i32_0 = arith.constant 0 : i32
    %c0_i32_1 = arith.constant 0 : i32
    return %c0_i32, %c0_i32_0 : i32, i32
  }
  func.func @transform_12(%arg0: i32) -> (i32, i32) {
    %c0_i32 = arith.constant 0 : i32
    %c0_i32_0 = arith.constant 0 : i32
    %c0_i32_1 = arith.constant 0 : i32
    return %c0_i32, %c0_i32_0 : i32, i32
  }
  func.func @transform_13(%arg0: i32) -> (i32, i32) {
    %c0_i32 = arith.constant 0 : i32
    %c0_i32_0 = arith.constant 0 : i32
    %c0_i32_1 = arith.constant 0 : i32
    return %c0_i32, %c0_i32_0 : i32, i32
  }
  func.func @transform_14(%arg0: i32) -> (i32, i32) {
    %c0_i32 = arith.constant 0 : i32
    %c0_i32_0 = arith.constant 0 : i32
    %c0_i32_1 = arith.constant 0 : i32
    return %c0_i32, %c0_i32_0 : i32, i32
  }
  func.func @transform_15(%arg0: i32) -> (i32, i32) {
    %c0_i32 = arith.constant 0 : i32
    %c0_i32_0 = arith.constant 0 : i32
    %c0_i32_1 = arith.constant 0 : i32
    return %c0_i32, %c0_i32_0 : i32, i32
  }
  func.func @transform_16(%arg0: i32) -> (i32, i32) {
    %c0_i32 = arith.constant 0 : i32
    %c0_i32_0 = arith.constant 0 : i32
    %c0_i32_1 = arith.constant 0 : i32
    return %c0_i32, %c0_i32_0 : i32, i32
  }
  func.func @transform_17(%arg0: i32) -> (i32, i32) {
    %c0_i32 = arith.constant 0 : i32
    %c0_i32_0 = arith.constant 0 : i32
    %c0_i32_1 = arith.constant 0 : i32
    return %c0_i32, %c0_i32_0 : i32, i32
  }
  func.func @transform_18(%arg0: i32) -> (i32, i32) {
    %c0_i32 = arith.constant 0 : i32
    %c0_i32_0 = arith.constant 0 : i32
    %c0_i32_1 = arith.constant 0 : i32
    return %c0_i32, %c0_i32_0 : i32, i32
  }
  func.func @transform_19(%arg0: i32) -> (i32, i32) {
    %c0_i32 = arith.constant 0 : i32
    %c0_i32_0 = arith.constant 0 : i32
    %c0_i32_1 = arith.constant 0 : i32
    return %c0_i32, %c0_i32_0 : i32, i32
  }
  func.func @transform_20(%arg0: i32) -> (i32, i32, i32) {
    %c0_i32 = arith.constant 0 : i32
    %c0_i32_0 = arith.constant 0 : i32
    %c0_i32_1 = arith.constant 0 : i32
    %c0_i32_2 = arith.constant 0 : i32
    return %c0_i32, %c0_i32_0, %c0_i32_1 : i32, i32, i32
  }
  func.func @transform_21(%arg0: i32) -> (i32, i32, i32) {
    %c0_i32 = arith.constant 0 : i32
    %c0_i32_0 = arith.constant 0 : i32
    %c0_i32_1 = arith.constant 0 : i32
    %c0_i32_2 = arith.constant 0 : i32
    return %c0_i32, %c0_i32_0, %c0_i32_1 : i32, i32, i32
  }
  func.func @transform_22(%arg0: i32) -> (i32, i32, i32) {
    %c0_i32 = arith.constant 0 : i32
    %c0_i32_0 = arith.constant 0 : i32
    %c0_i32_1 = arith.constant 0 : i32
    %c0_i32_2 = arith.constant 0 : i32
    return %c0_i32, %c0_i32_0, %c0_i32_1 : i32, i32, i32
  }
  func.func @transform_23(%arg0: i32) -> (i32, i32, i32) {
    %c0_i32 = arith.constant 0 : i32
    %c0_i32_0 = arith.constant 0 : i32
    %c0_i32_1 = arith.constant 0 : i32
    %c0_i32_2 = arith.constant 0 : i32
    return %c0_i32, %c0_i32_0, %c0_i32_1 : i32, i32, i32
  }
  func.func @transform_24(%arg0: i32) -> (i32, i32, i32) {
    %c0_i32 = arith.constant 0 : i32
    %c0_i32_0 = arith.constant 0 : i32
    %c0_i32_1 = arith.constant 0 : i32
    %c0_i32_2 = arith.constant 0 : i32
    return %c0_i32, %c0_i32_0, %c0_i32_1 : i32, i32, i32
  }
  func.func @transform_25(%arg0: i32) -> (i32, i32, i32) {
    %c0_i32 = arith.constant 0 : i32
    %c0_i32_0 = arith.constant 0 : i32
    %c0_i32_1 = arith.constant 0 : i32
    %c0_i32_2 = arith.constant 0 : i32
    return %c0_i32, %c0_i32_0, %c0_i32_1 : i32, i32, i32
  }
  func.func @transform_26(%arg0: i32) -> (i32, i32, i32) {
    %c0_i32 = arith.constant 0 : i32
    %c0_i32_0 = arith.constant 0 : i32
    %c0_i32_1 = arith.constant 0 : i32
    %c0_i32_2 = arith.constant 0 : i32
    return %c0_i32, %c0_i32_0, %c0_i32_1 : i32, i32, i32
  }
  func.func @transform_27(%arg0: i32) -> (i32, i32) {
    %c0_i32 = arith.constant 0 : i32
    %c0_i32_0 = arith.constant 0 : i32
    %c0_i32_1 = arith.constant 0 : i32
    return %c0_i32, %c0_i32_0 : i32, i32
  }
  func.func @transform_28(%arg0: i32) -> (i32, i32) {
    %c0_i32 = arith.constant 0 : i32
    %c0_i32_0 = arith.constant 0 : i32
    %c0_i32_1 = arith.constant 0 : i32
    return %c0_i32, %c0_i32_0 : i32, i32
  }
  func.func @transform_29(%arg0: i32) -> (i32, i32) {
    %c0_i32 = arith.constant 0 : i32
    %c0_i32_0 = arith.constant 0 : i32
    %c0_i32_1 = arith.constant 0 : i32
    return %c0_i32, %c0_i32_0 : i32, i32
  }
  func.func @transform_30(%arg0: i32) -> (i32, i32) {
    %c0_i32 = arith.constant 0 : i32
    %c0_i32_0 = arith.constant 0 : i32
    %c0_i32_1 = arith.constant 0 : i32
    return %c0_i32, %c0_i32_0 : i32, i32
  }
  func.func @transform_31(%arg0: i32) -> (i32, i32) {
    %c0_i32 = arith.constant 0 : i32
    %c0_i32_0 = arith.constant 0 : i32
    %c0_i32_1 = arith.constant 0 : i32
    return %c0_i32, %c0_i32_0 : i32, i32
  }
  func.func @transform_32(%arg0: i32) -> (i32, i32) {
    %c0_i32 = arith.constant 0 : i32
    %c0_i32_0 = arith.constant 0 : i32
    %c0_i32_1 = arith.constant 0 : i32
    return %c0_i32, %c0_i32_0 : i32, i32
  }
  func.func @transform_33(%arg0: i32) -> (i32, i32) {
    %c0_i32 = arith.constant 0 : i32
    %c0_i32_0 = arith.constant 0 : i32
    %c0_i32_1 = arith.constant 0 : i32
    return %c0_i32, %c0_i32_0 : i32, i32
  }
  func.func @transform_34(%arg0: i32) -> (i32, i32) {
    %c0_i32 = arith.constant 0 : i32
    %c0_i32_0 = arith.constant 0 : i32
    %c0_i32_1 = arith.constant 0 : i32
    return %c0_i32, %c0_i32_0 : i32, i32
  }
  func.func @transform_35(%arg0: i32) -> (i32, i32) {
    %c0_i32 = arith.constant 0 : i32
    %c0_i32_0 = arith.constant 0 : i32
    %c0_i32_1 = arith.constant 0 : i32
    return %c0_i32, %c0_i32_0 : i32, i32
  }
  func.func @transform_36(%arg0: i32) -> (i32, i32) {
    %c0_i32 = arith.constant 0 : i32
    %c0_i32_0 = arith.constant 0 : i32
    %c0_i32_1 = arith.constant 0 : i32
    return %c0_i32, %c0_i32_0 : i32, i32
  }
  func.func @transform_37(%arg0: i32) -> (i32, i32) {
    %c0_i32 = arith.constant 0 : i32
    %c0_i32_0 = arith.constant 0 : i32
    %c0_i32_1 = arith.constant 0 : i32
    return %c0_i32, %c0_i32_0 : i32, i32
  }
  func.func @transform_38(%arg0: i32) -> (i32, i32) {
    %c0_i32 = arith.constant 0 : i32
    %c0_i32_0 = arith.constant 0 : i32
    %c0_i32_1 = arith.constant 0 : i32
    return %c0_i32, %c0_i32_0 : i32, i32
  }
  func.func @transform_39(%arg0: i32) -> (i32, i32) {
    %c0_i32 = arith.constant 0 : i32
    %c0_i32_0 = arith.constant 0 : i32
    %c0_i32_1 = arith.constant 0 : i32
    return %c0_i32, %c0_i32_0 : i32, i32
  }
  func.func @transform_40(%arg0: i32) -> (i32, i32) {
    %c0_i32 = arith.constant 0 : i32
    %c0_i32_0 = arith.constant 0 : i32
    %c0_i32_1 = arith.constant 0 : i32
    return %c0_i32, %c0_i32_0 : i32, i32
  }
  func.func @transform_41(%arg0: i32) -> (i32, i32, i32) {
    %c0_i32 = arith.constant 0 : i32
    %c0_i32_0 = arith.constant 0 : i32
    %c0_i32_1 = arith.constant 0 : i32
    return %arg0, %c0_i32, %c0_i32_0 : i32, i32, i32
  }
}

</mosaic_0001>

<bundles_post_ra>
// kernel: tpu_custom_call.1
= control target key start
LH: loop header
LB: loop body
LE: loop exit
PB: predicated region body
PF: predicated region fallthrough
CT: control target
= control target key end

     0   :  { %s9570_s6 = smov 1   ;;  %s9571_s10 = smov 2   ;;  %s10776_s0 = inlined_call_operand.smem [shape: u32[42], index: -1, kind: input, shape index: {}] }
   0x1   :  { %s9623_s5 = sld [smem:[%s10776_s0]]   ;;  %s9572_s14 = smov 3  }
   0x2   :  { %s9628_s9 = sld [smem:[%s10776_s0 + %s9570_s6]]   ;;  %s9573_s18 = smov 4  }
   0x3   :  { %s9633_s13 = sld [smem:[%s10776_s0 + %s9571_s10]]   ;;  %s9574_s22 = smov 5  }
   0x4   :  { %s9638_s17 = sld [smem:[%s10776_s0 + %s9572_s14]]   ;;  %s9575_s26 = smov 6  }
   0x5   :  { %s9643_s21 = sld [smem:[%s10776_s0 + %s9573_s18]]   ;;  %s9576_s30 = smov 7  }
   0x6   :  { %s9648_s25 = sld [smem:[%s10776_s0 + %s9574_s22]]   ;;  %s9577_s4 = smov 8  }
   0x7   :  { %10800 = sst [smem:[#allocation5_spill]] %s9623_s5  ;;  %s9578_s10 = smov 9  }
   0x8   :  { %10801 = sst [smem:[#allocation6_spill]] %s9628_s9  ;;  %s9579_s15 = smov 10  }
   0x9   :  { %10802 = sst [smem:[#allocation7_spill]] %s9633_s13  ;;  %s9580_s20 = smov 11  }
   0xa   :  { %s9653_s29 = sld [smem:[%s10776_s0 + %s9575_s26]]   ;;  %s9581_s26 = smov 12  }
   0xb   :  { %s9658_s3 = sld [smem:[%s10776_s0 + %s9576_s30]]   ;;  %s9582_s1 = smov 13  }
   0xc   :  { %s9663_s8 = sld [smem:[%s10776_s0 + %s9577_s4]]   ;;  %s9583_s7 = smov 14  }
   0xd   :  { %s9668_s14 = sld [smem:[%s10776_s0 + %s9578_s10]]   ;;  %s9585_s22 = smov 16  }
   0xe   :  { %s9673_s19 = sld [smem:[%s10776_s0 + %s9579_s15]]   ;;  %s9584_s15 = smov 15  }
   0xf   :  { %s9678_s24 = sld [smem:[%s10776_s0 + %s9580_s20]]   ;;  %s9586_s28 = smov 17  }
  0x10   :  { %s9683_s30 = sld [smem:[%s10776_s0 + %s9581_s26]]  }
  0x11   :  { %10803 = sst [smem:[#allocation8_spill]] %s9658_s3 }
  0x12   :  { %10804 = sst [smem:[#allocation9_spill]] %s9663_s8 }
  0x13   :  { %10805 = sst [smem:[#allocation10_spill]] %s9668_s14 }
  0x14   :  { %s9688_s6 = sld [smem:[%s10776_s0 + %s9582_s1]]  }
  0x15   :  { %s9693_s12 = sld [smem:[%s10776_s0 + %s9583_s7]]   ;;  %s9587_s7 = smov 18  }
  0x16   :  { %10806 = sst [smem:[#allocation11_spill]] %s9683_s30 }
  0x17   :  { %s9698_s20 = sld [smem:[%s10776_s0 + %s9584_s15]]   ;;  %s9588_s15 = smov 19  }
  0x18   :  { %s9703_s27 = sld [smem:[%s10776_s0 + %s9585_s22]]   ;;  %s9589_s22 = smov 20  }
  0x19   :  { %s9708_s4 = sld [smem:[%s10776_s0 + %s9586_s28]]   ;;  %s9590_s28 = smov 21  }
  0x1a   :  { %10807 = sst [smem:[#allocation12_spill]] %s9688_s6 }
  0x1b   :  { %10808 = sst [smem:[#allocation13_spill]] %s9693_s12 }
  0x1c   :  { %s9713_s6 = sld [smem:[%s10776_s0 + %s9587_s7]]   ;;  %s9591_s7 = smov 22  }
  0x1d   :  { %10809 = sst [smem:[#allocation14_spill]] %s9698_s20 }
  0x1e   :  { %s9718_s20 = sld [smem:[%s10776_s0 + %s9588_s15]]   ;;  %s9592_s15 = smov 23  }
  0x1f   :  { %10810 = sst [smem:[#allocation15_spill]] %s9708_s4 }
  0x20   :  { %s9723_s30 = sld [smem:[%s10776_s0 + %s9589_s22]]   ;;  %s9593_s22 = smov 24  }
  0x21   :  { %s9728_s4 = sld [smem:[%s10776_s0 + %s9590_s28]]   ;;  %s9594_s28 = smov 25  }
  0x22   :  { %10811 = sst [smem:[#allocation16_spill]] %s9713_s6 }
  0x23   :  { %s9733_s6 = sld [smem:[%s10776_s0 + %s9591_s7]]   ;;  %s9595_s7 = smov 26  }
  0x24   :  { %10812 = sst [smem:[#allocation17_spill]] %s9718_s20 }
  0x25   :  { %s9738_s20 = sld [smem:[%s10776_s0 + %s9592_s15]]   ;;  %s9596_s15 = smov 27  }
  0x26   :  { %10813 = sst [smem:[#allocation18_spill]] %s9723_s30 }
  0x27   :  { %10814 = sst [smem:[#allocation19_spill]] %s9728_s4 }
  0x28   :  { %s9743_s30 = sld [smem:[%s10776_s0 + %s9593_s22]]   ;;  %s9597_s22 = smov 28  }
  0x29   :  { %10815 = sst [smem:[#allocation20_spill]] %s9733_s6 }
  0x2a   :  { %s9748_s4 = sld [smem:[%s10776_s0 + %s9594_s28]]   ;;  %s9598_s28 = smov 29  }
  0x2b   :  { %10816 = sst [smem:[#allocation21_spill]] %s9738_s20 }
  0x2c   :  { %s9753_s6 = sld [smem:[%s10776_s0 + %s9595_s7]]   ;;  %s9599_s7 = smov 30  }
  0x2d   :  { %s9758_s20 = sld [smem:[%s10776_s0 + %s9596_s15]]   ;;  %s9600_s15 = smov 31  }
  0x2e   :  { %10817 = sst [smem:[#allocation22_spill]] %s9743_s30 }
  0x2f   :  { %s9763_s30 = sld [smem:[%s10776_s0 + %s9597_s22]]   ;;  %s9601_s22 = smov 32  }
  0x30   :  { %10818 = sst [smem:[#allocation23_spill]] %s9748_s4 }
  0x31   :  { %s9768_s4 = sld [smem:[%s10776_s0 + %s9598_s28]]   ;;  %s9602_s28 = smov 33  }
  0x32   :  { %10819 = sst [smem:[#allocation24_spill]] %s9753_s6 }
  0x33   :  { %10820 = sst [smem:[#allocation25_spill]] %s9758_s20 }
  0x34   :  { %s9773_s6 = sld [smem:[%s10776_s0 + %s9599_s7]]   ;;  %s9603_s7 = smov 34  }
  0x35   :  { %10821 = sst [smem:[#allocation26_spill]] %s9763_s30 }
  0x36   :  { %s9778_s20 = sld [smem:[%s10776_s0 + %s9600_s15]]   ;;  %s9604_s15 = smov 35  }
  0x37   :  { %10822 = sst [smem:[#allocation27_spill]] %s9768_s4 }
  0x38   :  { %s9783_s30 = sld [smem:[%s10776_s0 + %s9601_s22]]   ;;  %s9605_s22 = smov 36  }
  0x39   :  { %s9788_s4 = sld [smem:[%s10776_s0 + %s9602_s28]]   ;;  %s9606_s28 = smov 37  }
  0x3a   :  { %10823 = sst [smem:[#allocation28_spill]] %s9773_s6 }
  0x3b   :  { %s9793_s6 = sld [smem:[%s10776_s0 + %s9603_s7]]   ;;  %s9607_s7 = smov 38  }
  0x3c   :  { %10824 = sst [smem:[#allocation29_spill]] %s9778_s20 }
  0x3d   :  { %s9798_s20 = sld [smem:[%s10776_s0 + %s9604_s15]]   ;;  %s9608_s15 = smov 39  }
  0x3e   :  { %10825 = sst [smem:[#allocation30_spill]] %s9783_s30 }
  0x3f   :  { %10826 = sst [smem:[#allocation31_spill]] %s9788_s4 }
  0x40   :  { %s9803_s30 = sld [smem:[%s10776_s0 + %s9605_s22]]   ;;  %s9609_s22 = smov 40  }
  0x41   :  { %10827 = sst [smem:[#allocation32_spill]] %s9793_s6 }
  0x42   :  { %s9808_s4 = sld [smem:[%s10776_s0 + %s9606_s28]]   ;;  %s9610_s28 = smov 41  }
  0x43   :  { %10828 = sst [smem:[#allocation33_spill]] %s9798_s20 }
  0x44   :  { %s9813_s6 = sld [smem:[%s10776_s0 + %s9607_s7]]  }
  0x45   :  { %s9818_s20 = sld [smem:[%s10776_s0 + %s9608_s15]]  }
  0x46   :  { %10829 = sst [smem:[#allocation34_spill]] %s9803_s30 }
  0x47   :  { %s9823_s30 = sld [smem:[%s10776_s0 + %s9609_s22]]  }
  0x48   :  { %10830 = sst [smem:[#allocation35_spill]] %s9808_s4 }
  0x49   :  { %s9828_s4 = sld [smem:[%s10776_s0 + %s9610_s28]]  }
  0x4a   :  { %10831 = sst [smem:[#allocation36_spill]] %s9813_s6 }
  0x4b   :  { %88 = vsyncpa [#allocation3], 0 }
  0x4c   :  { %90 = vsyncpa [#allocation3 + $0x1], 0  ;;  %s9830_s7 = smov 0   ;;  %s9832_s10 = smov 0  }
  0x4d   :  { %s9834_s11 = smov 0   ;;  %s9836_s15 = smov 0  }
  0x4e LB: > { %s10832_s14 = sld [smem:[#allocation10_spill]]  ;;  %s10833_s13 = sld [smem:[#allocation7_spill]]  ;;  %s9560_s10 = sphi %s9832_s10, %s10867_s10   ;;  %s9556_s7 = sphi %s9830_s7, %s10866_s7   ;;  %s9568_s15 = sphi %s9836_s15, %s10869_s15   ;;  %s9564_s11 = sphi %s9834_s11, %s10868_s11  }
  0x4f   : > { %s10834_s12 = sld [smem:[#allocation13_spill]]  ;;  %s10835_s9 = sld [smem:[#allocation6_spill]] }
  0x50   : > { %s10836_s8 = sld [smem:[#allocation9_spill]]  ;;  %s10837_s3 = sld [smem:[#allocation8_spill]] }
  0x51   : > { %s9851_s0 = sadd.s32 4294967295, %s9568_s15   ;;  %s7244_s16 = sadd.s32 4294967294, %s9568_s15  }
  0x52   : > { %s9855_s18 = sadd.s32 1, %s9568_s15   ;;  %s969_s22 = sadd.s32 1, %s9564_s11 }
  0x53   : > { %s966_s23 = ssub.s32 %s9568_s15, %s9855_s18  ;;  %p979_p0 = scmp.ne.s32.totalorder %s9564_s11, %s9560_s10 }
  0x54   : > { %p967_p1 = scmp.eq.s32.totalorder %s966_s23, 0  ;;  %p980_p2 = scmp.eq.s32.totalorder %s9851_s0, 1 }
  0x55   : > { %p985_p3 = scmp.ne.s32.totalorder %s9560_s10, %s9556_s7  ;;  %p986_p4 = scmp.eq.s32.totalorder %s7244_s16, 1 }
  0x56   : > { %s9866_s26 = scalar_select %p967_p1, %s9564_s11, %s969_s22  }
  0x57   : > { %p9868_p5 = por %p980_p2, %p979_p0  ;;  %p9872_p6 = por %p986_p4, %p985_p3 }
  0x58   : > { %p7247_p7 = scmp.ge.s32.totalorder %s9568_s15, 1  ;;  %p1132_p8 = scmp.lt.s32.totalorder %s9568_s15, 3 }
  0x5a   : > { %p1133_p9 = pnand %p7247_p7, %p1132_p8 }
  0x5b   : > { %v9159_v0 = vld [vmem:[%s10833_s13 + $0x40] sm:$0xff] (!%p1133_p9)   ;;  %v9163_v4 = vld [vmem:[%s10833_s13 + $0x48] sm:$0xff] (!%p1133_p9)   ;;  %v9167_v8 = vld [vmem:[%s10833_s13 + $0x50] sm:$0xff] (!%p1133_p9)   ;;  %p1231_p10 = scmp.lt.s32.totalorder (!%p1133_p9), %s9851_s0, 1  ;;  %s10840_s5 = sld [smem:[#allocation5_spill]] (!%p1133_p9)  ;;  %vm9612_vm0 = vmmov (!%p1133_p9), 0  }
  0x5c   : > { %1136 = sbr.rel (%p1133_p9) target bundleno = 10262 (0x2816), region = 184  ;;  %v9160_v1 = vld [vmem:[%s10833_s13 + $0xc0] sm:$0xff] (!%p1133_p9)   ;;  %7941 = vmatprep.subr.bf16.mxu0 (!%p1133_p9), %v9159_v0  ;;  %v9164_v5 = vld [vmem:[%s10833_s13 + $0xc8] sm:$0xff] (!%p1133_p9)   ;;  %v9168_v9 = vld [vmem:[%s10833_s13 + $0xd0] sm:$0xff] (!%p1133_p9)   ;;  %vm2269_vm1 = vcmask (!%p1133_p9), 64512   ;;  %vm2939_vm2 = vcmask (!%p1133_p9), 1043456  }
  0x5d   : > { %v9161_v2 = vld [vmem:[%s10833_s13] sm:$0xff] (!%p1133_p9)   ;;  %7963 = vmatprep.subr.bf16.mxu1 (!%p1133_p9), %v9160_v1  ;;  %v9165_v6 = vld [vmem:[%s10833_s13 + $0x8] sm:$0xff] (!%p1133_p9)   ;;  %v9169_v10 = vld [vmem:[%s10833_s13 + $0x10] sm:$0xff] (!%p1133_p9)   ;;  %s10841_s23 = sld [smem:[#allocation11_spill]] (!%p1133_p9)  ;;  %s10865_s6 = sld [smem:[#allocation36_spill]] (!%p1133_p9) }
  0x5e   : > { %v9162_v3 = vld [vmem:[%s10833_s13 + $0x80] sm:$0xff] (!%p1133_p9)   ;;  %7942 = vmatpush3.bf16.msra.mxu0 (!%p1133_p9), %v9161_v2  ;;  %v9166_v7 = vld [vmem:[%s10833_s13 + $0x88] sm:$0xff] (!%p1133_p9)   ;;  %v9170_v11 = vld [vmem:[%s10833_s13 + $0x90] sm:$0xff] (!%p1133_p9)  }
  0x5f   : > { %7964 = vmatpush3.bf16.msra.mxu1 (!%p1133_p9), %v9162_v3  ;;  %7943 = vmatprep.subr.bf16.mxu0 (!%p1133_p9), %v9163_v4  ;;  %v9171_v12 = vld [vmem:[%s10833_s13 + $0x58] sm:$0xff] (!%p1133_p9)   ;;  %v9175_v16 = vld [vmem:[%s10833_s13 + $0x60] sm:$0xff] (!%p1133_p9)   ;;  %v9179_v20 = vld [vmem:[%s10833_s13 + $0x68] sm:$0xff] (!%p1133_p9)  }
  0x60   : > { %7965 = vmatprep.subr.bf16.mxu1 (!%p1133_p9), %v9164_v5  ;;  %v9172_v13 = vld [vmem:[%s10833_s13 + $0xd8] sm:$0xff] (!%p1133_p9)   ;;  %v9176_v17 = vld [vmem:[%s10833_s13 + $0xe0] sm:$0xff] (!%p1133_p9)   ;;  %v9180_v21 = vld [vmem:[%s10833_s13 + $0xe8] sm:$0xff] (!%p1133_p9)  }
  0x61   : > { %v9173_v14 = vld [vmem:[%s10833_s13 + $0x18] sm:$0xff] (!%p1133_p9)   ;;  %v9177_v18 = vld [vmem:[%s10833_s13 + $0x20] sm:$0xff] (!%p1133_p9)   ;;  %v9181_v22 = vld [vmem:[%s10833_s13 + $0x28] sm:$0xff] (!%p1133_p9)  }
  0x62   : > { %7944 = vmatpush3.bf16.msra.mxu0 (!%p1133_p9), %v9165_v6  ;;  %v9174_v15 = vld [vmem:[%s10833_s13 + $0x98] sm:$0xff] (!%p1133_p9)   ;;  %v9178_v19 = vld [vmem:[%s10833_s13 + $0xa0] sm:$0xff] (!%p1133_p9)   ;;  %v9182_v23 = vld [vmem:[%s10833_s13 + $0xa8] sm:$0xff] (!%p1133_p9)  }
  0x63   : > { %7966 = vmatpush3.bf16.msra.mxu1 %v9166_v7  ;;  %7945 = vmatprep.subr.bf16.mxu0 %v9167_v8  ;;  %s1232_s2 = scalar_select %p1231_p10, %s9851_s0, 1  ;;  %v9183_v24 = vld [vmem:[%s10833_s13 + $0x70] sm:$0xff]   ;;  %v9187_v28 = vld [vmem:[%s10833_s13 + $0x78] sm:$0xff]   ;;  %v9191_v40 = vld [vmem:[%s10833_s13 + $0x140] sm:$0xff]  }
  0x64   : > { %7967 = vmatprep.subr.bf16.mxu1 %v9168_v9  ;;  %v9184_v25 = vld [vmem:[%s10833_s13 + $0xf0] sm:$0xff]   ;;  %v9188_v29 = vld [vmem:[%s10833_s13 + $0xf8] sm:$0xff]   ;;  %v9192_v41 = vld [vmem:[%s10833_s13 + $0x1c0] sm:$0xff]  }
  0x65   : > { %v9185_v26 = vld [vmem:[%s10833_s13 + $0x30] sm:$0xff]   ;;  %s7940_s16 = sshll.u32 %s1232_s2, 6  ;;  %v9189_v30 = vld [vmem:[%s10833_s13 + $0x38] sm:$0xff]   ;;  %v9193_v42 = vld [vmem:[%s10833_s13 + $0x100] sm:$0xff]   ;;  %s10842_s2 = sld [smem:[#allocation12_spill]] }
  0x66   : > { %7946 = vmatpush3.bf16.msra.mxu0 %v9169_v10  ;;  %v9186_v27 = vld [vmem:[%s10833_s13 + $0xb0] sm:$0xff]   ;;  %s9911_s22 = scalar_lea.vmem %s10840_s5, %s7940_s16  ;;  %v9190_v31 = vld [vmem:[%s10833_s13 + $0xb8] sm:$0xff]   ;;  %v9194_v43 = vld [vmem:[%s10833_s13 + $0x180] sm:$0xff]   ;;  %s10843_s16 = sld [smem:[#allocation14_spill]] }
  0x67   : > { %7968 = vmatpush3.bf16.msra.mxu1 %v9170_v11  ;;  %7947 = vmatprep.subr.bf16.mxu0 %v9171_v12  ;;  %v1239_v32 = vld [vmem:[%s9911_s22 + $0x8] sm:$0xff]  ;;  %v1241_v33 = vld [vmem:[%s9911_s22 + $0x18] sm:$0xff]  ;;  %v1238_v34 = vld [vmem:[%s9911_s22] sm:$0xff]  ;;  %s10852_s5 = sld [smem:[#allocation23_spill]] }
  0x68   : > { %7969 = vmatprep.subr.bf16.mxu1 %v9172_v13  ;;  %v1247_v35 = vpack.c.bf16 %v1239_v32, %v1239_v32  ;;  %v1249_v36 = vpack.c.bf16 %v1241_v33, %v1241_v33  ;;  %v1246_v37 = vpack.c.bf16 %v1238_v34, %v1238_v34  ;;  %v1240_v38 = vld [vmem:[%s9911_s22 + $0x10] sm:$0xff]  ;;  %v9195_v44 = vld [vmem:[%s10833_s13 + $0x148] sm:$0xff]   ;;  %v9203_v52 = vld [vmem:[%s10833_s13 + $0x158] sm:$0xff]  }
  0x69   : > { %v1248_v39 = vpack.c.bf16 %v1240_v38, %v1240_v38  ;;  %v9196_v45 = vld [vmem:[%s10833_s13 + $0x1c8] sm:$0xff]   ;;  %v9199_v48 = vld [vmem:[%s10833_s13 + $0x150] sm:$0xff]   ;;  %v9204_v53 = vld [vmem:[%s10833_s13 + $0x1d8] sm:$0xff]  }
  0x6a   : > { %7948 = vmatpush3.bf16.msra.mxu0 %v9173_v14  ;;  %1805 = vmatprep.mubr.bf16.mxu0 %v1247_v35  ;;  %v9197_v46 = vld [vmem:[%s10833_s13 + $0x108] sm:$0xff]   ;;  %v9200_v49 = vld [vmem:[%s10833_s13 + $0x1d0] sm:$0xff]   ;;  %v9205_v54 = vld [vmem:[%s10833_s13 + $0x118] sm:$0xff]  }
  0x6b   : > { %7970 = vmatpush3.bf16.msra.mxu1 %v9174_v15  ;;  %7949 = vmatprep.subr.bf16.mxu0 %v9175_v16  ;;  %v9198_v47 = vld [vmem:[%s10833_s13 + $0x188] sm:$0xff]   ;;  %v9201_v50 = vld [vmem:[%s10833_s13 + $0x110] sm:$0xff]   ;;  %v9206_v55 = vld [vmem:[%s10833_s13 + $0x198] sm:$0xff]  }
  0x6c   : > { %7971 = vmatprep.subr.bf16.mxu1 %v9176_v17  ;;  %1845 = vmatprep.mubr.bf16.mxu1 %v1249_v36  ;;  %v9202_v51 = vld [vmem:[%s10833_s13 + $0x190] sm:$0xff]   ;;  %v9207_v56 = vld [vmem:[%s10833_s13 + $0x160] sm:$0xff]   ;;  %v9211_v60 = vld [vmem:[%s10833_s13 + $0x168] sm:$0xff]  }
  0x6d   : > { %v9208_v57 = vld [vmem:[%s10833_s13 + $0x1e0] sm:$0xff]   ;;  %v9212_v61 = vld [vmem:[%s10833_s13 + $0x1e8] sm:$0xff]   ;;  %v9215_v0 = vld [vmem:[%s10833_s13 + $0x170] sm:$0xff]  }
  0x6e   : > { %7950 = vmatpush3.bf16.msra.mxu0 %v9177_v18  ;;  %v9209_v58 = vld [vmem:[%s10833_s13 + $0x120] sm:$0xff]   ;;  %v9213_v62 = vld [vmem:[%s10833_s13 + $0x128] sm:$0xff]   ;;  %v9216_v1 = vld [vmem:[%s10833_s13 + $0x1f0] sm:$0xff]   ;;  %v9611_v18 = vmov 0.0  }
  0x6f   : > { %7972 = vmatpush3.bf16.msra.mxu1 %v9178_v19  ;;  %7951 = vmatprep.subr.bf16.mxu0 %v9179_v20  ;;  %v9210_v59 = vld [vmem:[%s10833_s13 + $0x1a0] sm:$0xff]   ;;  %v9214_v63 = vld [vmem:[%s10833_s13 + $0x1a8] sm:$0xff]   ;;  %v9217_v2 = vld [vmem:[%s10833_s13 + $0x130] sm:$0xff]  }
  0x70   : > { %7973 = vmatprep.subr.bf16.mxu1 %v9180_v21  ;;  %v9218_v3 = vld [vmem:[%s10833_s13 + $0x1b0] sm:$0xff]   ;;  %v9219_v4 = vld [vmem:[%s10833_s13 + $0x178] sm:$0xff]   ;;  %v1243_v8 = vld [vmem:[%s9911_s22 + $0x28] sm:$0xff] }
  0x71   : > { %v9220_v5 = vld [vmem:[%s10833_s13 + $0x1f8] sm:$0xff]   ;;  %v1251_v10 = vpack.c.bf16 %v1243_v8, %v1243_v8  ;;  %v1242_v12 = vld [vmem:[%s9911_s22 + $0x20] sm:$0xff]  ;;  %v1244_v13 = vld [vmem:[%s9911_s22 + $0x30] sm:$0xff] }
  0x72   : > { %7952 = vmatpush3.bf16.msra.mxu0 %v9181_v22  ;;  %v9221_v6 = vld [vmem:[%s10833_s13 + $0x138] sm:$0xff]   ;;  %v1250_v14 = vpack.c.bf16 %v1242_v12, %v1242_v12  ;;  %v1252_v15 = vpack.c.bf16 %v1244_v13, %v1244_v13  ;;  %v9223_v16 = vld [vmem:[%s9643_s21] sm:$0xff]   ;;  %v9225_v19 = vld [vmem:[%s9643_s21 + $0x8] sm:$0xff]  }
  0x73   : > { %7974 = vmatpush3.bf16.msra.mxu1 %v9182_v23  ;;  %7953 = vmatprep.subr.bf16.mxu0 %v9183_v24  ;;  %v9222_v7 = vld [vmem:[%s10833_s13 + $0x1b8] sm:$0xff]   ;;  %v9224_v17 = vld [vmem:[%s9653_s29] sm:$0xff]   ;;  %v9226_v20 = vld [vmem:[%s9653_s29 + $0x8] sm:$0xff]  }
  0x74   : > { %7975 = vmatprep.subr.bf16.mxu1 %v9184_v25  ;;  %v1245_v9 = vld [vmem:[%s9911_s22 + $0x38] sm:$0xff]  ;;  %v9227_v21 = vld [vmem:[%s9643_s21 + $0x10] sm:$0xff]   ;;  %v9231_v25 = vld [vmem:[%s9643_s21 + $0x20] sm:$0xff]   ;;  %s10844_s22 = sld [smem:[#allocation18_spill]] }
  0x75   : > { %v1253_v11 = vpack.c.bf16 %v1245_v9, %v1245_v9  ;;  %v9228_v22 = vld [vmem:[%s9653_s29 + $0x10] sm:$0xff]   ;;  %v9229_v23 = vld [vmem:[%s9643_s21 + $0x18] sm:$0xff]   ;;  %v7250_v35 = vld [vmem:[%s9638_s17] ss:$0 sm:$0xff] }
  0x76   : > { %7954 = vmatpush3.bf16.msra.mxu0 %v9185_v26  ;;  %v9230_v24 = vld [vmem:[%s9653_s29 + $0x18] sm:$0xff]   ;;  %v9232_v26 = vld [vmem:[%s9653_s29 + $0x20] sm:$0xff]   ;;  %v9249_v8 = vld [vmem:[%s9653_s29 + $0x50] sm:$0xff]  }
  0x77   : > { %7976 = vmatpush3.bf16.msra.mxu1 %v9186_v27  ;;  %7955 = vmatprep.subr.bf16.mxu0 %v9187_v28  ;;  %v9233_v27 = vld [vmem:[%s9643_s21 + $0x28] sm:$0xff]   ;;  %v9238_v32 = vld [vmem:[%s9653_s29 + $0x38] sm:$0xff]   ;;  %v9253_v12 = vld [vmem:[%s9653_s29 + $0x70] sm:$0xff]  }
  0x78   : > { %7977 = vmatprep.subr.bf16.mxu1 %v9188_v29  ;;  %v9234_v28 = vld [vmem:[%s9653_s29 + $0x28] sm:$0xff]   ;;  %v9235_v29 = vld [vmem:[%s9643_s21 + $0x30] sm:$0xff]   ;;  %v9250_v9 = vld [vmem:[%s9653_s29 + $0x58] sm:$0xff]  }
  0x79   : > { %v9254_v13 = vld [vmem:[%s9653_s29 + $0x78] sm:$0xff]  }
  0x7a   : > { %7956 = vmatpush3.bf16.msra.mxu0 %v9189_v30  ;;  %v9236_v30 = vld [vmem:[%s9653_s29 + $0x30] sm:$0xff]  }
  0x7b   : > { %7978 = vmatpush3.bf16.msra.mxu1 %v9190_v31  ;;  %7985 = vmatprep.subr.bf16.mxu0 %v9191_v40  ;;  %v9237_v31 = vld [vmem:[%s9643_s21 + $0x38] sm:$0xff]  }
  0x7c   : > { %8007 = vmatprep.subr.bf16.mxu1 %v9192_v41 }
  0x7d   : > { %1806 = vmatmul.mubr.bf16.vlgmr.msra.gmra.mrb[0].mxu0 %v1246_v37 }
  0x7e   : > { %1846 = vmatmul.mubr.bf16.vlgmr.msra.gmra.mrb[0].mxu1 %v1248_v39  ;;  %7986 = vmatpush3.bf16.msra.mxu0 %v9193_v42 }
  0x7f   : > { %8008 = vmatpush3.bf16.msra.mxu1 %v9194_v43  ;;  %7987 = vmatprep.subr.bf16.mxu0 %v9195_v44 }
  0x80   : > { %8009 = vmatprep.subr.bf16.mxu1 %v9196_v45  ;;  %1885 = vmatprep.mubr.bf16.mxu0 %v1251_v10  ;;  %v9251_v10 = vld [vmem:[%s9653_s29 + $0x60] sm:$0xff]  }
  0x81   : > { %1925 = vmatprep.mubr.bf16.mxu1 %v1253_v11  ;;  %v9252_v11 = vld [vmem:[%s9653_s29 + $0x68] sm:$0xff]  }
  0x82   : > { %7988 = vmatpush3.bf16.msra.mxu0 %v9197_v46 }
  0x83   : > { %8010 = vmatpush3.bf16.msra.mxu1 %v9198_v47  ;;  %7989 = vmatprep.subr.bf16.mxu0 %v9199_v48 }
  0x84   : > { %8011 = vmatprep.subr.bf16.mxu1 %v9200_v49 }
  0x86   : > { %7990 = vmatpush3.bf16.msra.mxu0 %v9201_v50 }
  0x87   : > { %8012 = vmatpush3.bf16.msra.mxu1 %v9202_v51  ;;  %7991 = vmatprep.subr.bf16.mxu0 %v9203_v52 }
  0x88   : > { %8013 = vmatprep.subr.bf16.mxu1 %v9204_v53 }
  0x8a   : > { %7992 = vmatpush3.bf16.msra.mxu0 %v9205_v54 }
  0x8b   : > { %8014 = vmatpush3.bf16.msra.mxu1 %v9206_v55  ;;  %7993 = vmatprep.subr.bf16.mxu0 %v9207_v56 }
  0x8c   : > { %8015 = vmatprep.subr.bf16.mxu1 %v9208_v57 }
  0x8e   : > { %7994 = vmatpush3.bf16.msra.mxu0 %v9209_v58  ;;  %v1237_v58 = vld [vmem:[%s10835_s9] sm:$0xff] }
  0x8f   : > { %8016 = vmatpush3.bf16.msra.mxu1 %v9210_v59  ;;  %7995 = vmatprep.subr.bf16.mxu0 %v9211_v60 }
  0x90   : > { %8017 = vmatprep.subr.bf16.mxu1 %v9212_v61  ;;  %v9239_v61 = vld [vmem:[%s10836_s8] sm:$0xff]  }
  0x92   : > { %7996 = vmatpush3.bf16.msra.mxu0 %v9213_v62 }
  0x93   : > { %8018 = vmatpush3.bf16.msra.mxu1 %v9214_v63  ;;  %7997 = vmatprep.subr.bf16.mxu0 %v9215_v0  ;;  %v9240_v63 = vld [vmem:[%s10836_s8 + $0x8] sm:$0xff]   ;;  %v9241_v0 = vld [vmem:[%s10836_s8 + $0x10] sm:$0xff]  }
  0x94   : > { %8019 = vmatprep.subr.bf16.mxu1 %v9216_v1  ;;  %v9242_v1 = vld [vmem:[%s10836_s8 + $0x18] sm:$0xff]  }
  0x96   : > { %7998 = vmatpush3.bf16.msra.mxu0 %v9217_v2  ;;  %v9243_v2 = vld [vmem:[%s10836_s8 + $0x20] sm:$0xff]  }
  0x97   : > { %8020 = vmatpush3.bf16.msra.mxu1 %v9218_v3  ;;  %7999 = vmatprep.subr.bf16.mxu0 %v9219_v4  ;;  %v9244_v3 = vld [vmem:[%s10836_s8 + $0x28] sm:$0xff]   ;;  %v9245_v4 = vld [vmem:[%s10836_s8 + $0x30] sm:$0xff]  }
  0x98   : > { %8021 = vmatprep.subr.bf16.mxu1 %v9220_v5  ;;  %v9246_v5 = vld [vmem:[%s10836_s8 + $0x38] sm:$0xff]  }
  0x9a   : > { %8000 = vmatpush3.bf16.msra.mxu0 %v9221_v6  ;;  %v9247_v6 = vld [vmem:[%s9653_s29 + $0x40] sm:$0xff]  }
  0x9b   : > { %8022 = vmatpush3.bf16.msra.mxu1 %v9222_v7  ;;  %8347 = vmatprep.subr.bf16.mxu0 %v9611_v18  ;;  %v9248_v7 = vld [vmem:[%s9653_s29 + $0x48] sm:$0xff]  }
  0x9c   : > { %8367 = vmatprep.subr.bf16.mxu1 %v9611_v18 }
  0x9d   : > { %1886 = vmatmul.mubr.bf16.vlgmr.msra.gmra.mrb[4].mxu0 %v1250_v14  ;;  %v7324_v14 = vld [vmem:[%s10837_s3] ss:$0 sm:$0xff] }
  0x9e   : > { %1926 = vmatmul.mubr.bf16.vlgmr.msra.gmra.mrb[4].mxu1 %v1252_v15  ;;  %8348 = vmatpush3.bf16.msra.mxu0 %v9223_v16 }
  0x9f   : > { %8368 = vmatpush3.bf16.msra.mxu1 %v9224_v17  ;;  %8349 = vmatprep.subr.bf16.mxu0 %v9611_v18  ;;  %v7315_v17 = vld [vmem:[%s9648_s25] ss:$0 sm:$0xff] }
  0xa0   : > { %8369 = vmatprep.subr.bf16.mxu1 %v9611_v18  ;;  %8363 = vmatprep.mubr.msk.bf16.mxu0 %vm9612_vm0, %v9611_v18 }
  0xa1   : > { %8383 = vmatprep.mubr.msk.bf16.mxu1 %vm9612_vm0, %v9611_v18 }
  0xa2   : > { %8350 = vmatpush3.bf16.msra.mxu0 %v9225_v19 }
  0xa3   : > { %8370 = vmatpush3.bf16.msra.mxu1 %v9226_v20  ;;  %8351 = vmatprep.subr.bf16.mxu0 %v9611_v18 }
  0xa4   : > { %8371 = vmatprep.subr.bf16.mxu1 %v9611_v18 }
  0xa6   : > { %8352 = vmatpush3.bf16.msra.mxu0 %v9227_v21 }
  0xa7   : > { %8372 = vmatpush3.bf16.msra.mxu1 %v9228_v22  ;;  %8353 = vmatprep.subr.bf16.mxu0 %v9611_v18 }
  0xa8   : > { %8373 = vmatprep.subr.bf16.mxu1 %v9611_v18 }
  0xaa   : > { %8354 = vmatpush3.bf16.msra.mxu0 %v9229_v23 }
  0xab   : > { %8374 = vmatpush3.bf16.msra.mxu1 %v9230_v24  ;;  %8355 = vmatprep.subr.bf16.mxu0 %v9611_v18 }
  0xac   : > { %8375 = vmatprep.subr.bf16.mxu1 %v9611_v18 }
  0xae   : > { %8356 = vmatpush3.bf16.msra.mxu0 %v9231_v25 }
  0xaf   : > { %8376 = vmatpush3.bf16.msra.mxu1 %v9232_v26  ;;  %8357 = vmatprep.subr.bf16.mxu0 %v9611_v18 }
  0xb0   : > { %8377 = vmatprep.subr.bf16.mxu1 %v9611_v18 }
  0xb2   : > { %8358 = vmatpush3.bf16.msra.mxu0 %v9233_v27  ;;  %v7333_v27 = vld [vmem:[%s10832_s14] ss:$0 sm:$0xff] }
  0xb3   : > { %8378 = vmatpush3.bf16.msra.mxu1 %v9234_v28  ;;  %8359 = vmatprep.subr.bf16.mxu0 %v9611_v18 }
  0xb4   : > { %8379 = vmatprep.subr.bf16.mxu1 %v9611_v18 }
  0xb6   : > { %8360 = vmatpush3.bf16.msra.mxu0 %v9235_v29 }
  0xb7   : > { %8380 = vmatpush3.bf16.msra.mxu1 %v9236_v30  ;;  %8361 = vmatprep.subr.bf16.mxu0 %v9611_v18 }
  0xb8   : > { %8381 = vmatprep.subr.bf16.mxu1 %v9611_v18 }
  0xba   : > { %8362 = vmatpush3.bf16.msra.mxu0 %v9237_v31 }
  0xbb   : > { %8382 = vmatpush3.bf16.msra.mxu1 %v9238_v32  ;;  %8387 = vmatprep.subr.bf16.mxu0 %v9611_v18 }
  0xbc   : > { %8407 = vmatprep.subr.mxu1 %v9611_v18 }
 0x150   : > { %v7957_v33 = vpop.f32.mrb[0].mxu0 }
 0x151   : > { %v7979_v34 = vpop.f32.mrb[0].mxu1  ;;  %v7958_v36 = vpop.f32.mrb[1].mxu0 }
 0x152   : > { %v7980_v37 = vpop.f32.mrb[1].mxu1  ;;  %v7959_v38 = vadd.f32 %v7958_v36, %v7957_v33  ;;  %v7960_v40 = vpop.f32.mrb[2].mxu0 }
 0x153   : > { %v7981_v39 = vadd.f32 %v7980_v37, %v7979_v34  ;;  %v7982_v41 = vpop.f32.mrb[2].mxu1  ;;  %v7961_v42 = vpop.f32.mrb[3].mxu0 }
 0x154   : > { %v7983_v43 = vpop.f32.mrb[3].mxu1  ;;  %v1808_v44 = vadd.f32 %v7959_v38, %v7250_v35 }
 0x156   : > { %v1848_v45 = vadd.f32 %v7981_v39, %v1808_v44 }
 0x170   : > { %v8001_v46 = vpop.f32.mrb[4].mxu0 }
 0x171   : > { %v8023_v47 = vpop.f32.mrb[4].mxu1  ;;  %v8002_v48 = vpop.f32.mrb[5].mxu0 }
 0x172   : > { %v8003_v49 = vadd.f32 %v8002_v48, %v8001_v46  ;;  %v8024_v50 = vpop.f32.mrb[5].mxu1  ;;  %v8004_v51 = vpop.f32.mrb[6].mxu0  ;;  %v9255_v48 = vld [vmem:[%s9643_s21 + $0x40] sm:$0xff]  }
 0x173   : > { %v8025_v52 = vadd.f32 %v8024_v50, %v8023_v47  ;;  %v8026_v53 = vpop.f32.mrb[6].mxu1  ;;  %v8005_v54 = vpop.f32.mrb[7].mxu0  ;;  %v9256_v50 = vld [vmem:[%s9643_s21 + $0x48] sm:$0xff]   ;;  %v9257_v51 = vld [vmem:[%s9643_s21 + $0x50] sm:$0xff]  }
 0x174   : > { %v1888_v55 = vadd.f32 %v8003_v49, %v1848_v45  ;;  %v8027_v56 = vpop.f32.mrb[7].mxu1  ;;  %v9259_v53 = vld [vmem:[%s9643_s21 + $0x60] sm:$0xff]   ;;  %v9260_v54 = vld [vmem:[%s9643_s21 + $0x68] sm:$0xff]  }
 0x175   : > { %v9262_v56 = vld [vmem:[%s9643_s21 + $0x78] sm:$0xff]  }
 0x176   : > { %v1928_v57 = vadd.f32 %v8025_v52, %v1888_v55  ;;  %v9258_v52 = vld [vmem:[%s9643_s21 + $0x58] sm:$0xff]   ;;  %v9261_v55 = vld [vmem:[%s9643_s21 + $0x70] sm:$0xff]  }
 0x178   : > { %v1933_v59 = vmax.f32 %v1928_v57, 0.0  ;;  %v9263_v57 = vld [vmem:[%s10836_s8 + $0x40] sm:$0xff]  }
 0x17a   : > { %v9995_v60 = vadd.f32 %v1933_v59, %v1237_v58  ;;  %v9264_v58 = vld [vmem:[%s10836_s8 + $0x48] sm:$0xff]   ;;  %v9265_v59 = vld [vmem:[%s10836_s8 + $0x50] sm:$0xff]  }
 0x17c   : > { %v10000_v62 = vpack.c.bf16 %v9995_v60, %v9995_v60 }
 0x17e   : > { %8364 = vmatmul.mubr.bf16.vlgmr.msra.gmra.mrb[8].mxu0 %v10000_v62  ;;  %8384 = vmatmul.mubr.bf16.vlgmr.msra.gmra.mrb[8].mxu1 %v10000_v62 }
 0x17f   : > { %8388 = vmatpush3.bf16.msra.mxu0 %v9239_v61  ;;  %8403 = vmatprep.mubr.msk.bf16.mxu0 %vm9612_vm0, %v9611_v18  ;;  %v9266_v61 = vld [vmem:[%s10836_s8 + $0x58] sm:$0xff]  }
 0x180   : > { %8389 = vmatprep.subr.bf16.mxu0 %v9611_v18  ;;  %8409 = vmatprep.mubr.msk.f32.mxu1 %vm9612_vm0, %v9611_v18 }
 0x183   : > { %8390 = vmatpush3.bf16.msra.mxu0 %v9240_v63  ;;  %v9267_v63 = vld [vmem:[%s10836_s8 + $0x60] sm:$0xff]  }
 0x184   : > { %8391 = vmatprep.subr.bf16.mxu0 %v9611_v18 }
 0x187   : > { %8392 = vmatpush3.bf16.msra.mxu0 %v9241_v0  ;;  %v9268_v0 = vld [vmem:[%s10836_s8 + $0x68] sm:$0xff]  }
 0x188   : > { %8393 = vmatprep.subr.bf16.mxu0 %v9611_v18 }
 0x18b   : > { %8394 = vmatpush3.bf16.msra.mxu0 %v9242_v1  ;;  %v9269_v1 = vld [vmem:[%s10836_s8 + $0x70] sm:$0xff]  }
 0x18c   : > { %8395 = vmatprep.subr.bf16.mxu0 %v9611_v18 }
 0x18f   : > { %8396 = vmatpush3.bf16.msra.mxu0 %v9243_v2  ;;  %v9270_v2 = vld [vmem:[%s10836_s8 + $0x78] sm:$0xff]  }
 0x190   : > { %8397 = vmatprep.subr.bf16.mxu0 %v9611_v18 }
 0x193   : > { %8398 = vmatpush3.bf16.msra.mxu0 %v9244_v3  ;;  %v7388_v3 = vld [vmem:[%s10837_s3 + $0x1] ss:$0 sm:$0xff] }
 0x194   : > { %8399 = vmatprep.subr.bf16.mxu0 %v9611_v18 }
 0x197   : > { %8400 = vmatpush3.bf16.msra.mxu0 %v9245_v4 }
 0x198   : > { %8401 = vmatprep.subr.bf16.mxu0 %v9611_v18 }
 0x19b   : > { %8402 = vmatpush3.bf16.msra.mxu0 %v9246_v5 }
 0x19c   : > { %8437 = vmatprep.subr.bf16.mxu0 %v9611_v18 }
 0x19e   : > { %8404 = vmatmul.mubr.bf16.vlgmr.msra.gmra.mrb[12].mxu0 %v10000_v62 }
 0x19f   : > { %8438 = vmatpush3.bf16.msra.mxu0 %v9247_v6  ;;  %8453 = vmatprep.mubr.msk.bf16.mxu0 %vm9612_vm0, %v9611_v18 }
 0x1a0   : > { %8439 = vmatprep.subr.bf16.mxu0 %v9611_v18 }
 0x1a3   : > { %8440 = vmatpush3.bf16.msra.mxu0 %v9248_v7  ;;  %v7362_v7 = vld [vmem:[%s9648_s25 + $0x1] ss:$0 sm:$0xff] }
 0x1a4   : > { %8441 = vmatprep.subr.bf16.mxu0 %v9611_v18 }
 0x1a7   : > { %8442 = vmatpush3.bf16.msra.mxu0 %v9249_v8  ;;  %v2432_v8 = vld [vmem:[%s9673_s19] sm:$0xf] }
 0x1a8   : > { %8443 = vmatprep.subr.bf16.mxu0 %v9611_v18 }
 0x1ab   : > { %8444 = vmatpush3.bf16.msra.mxu0 %v9250_v9 }
 0x1ac   : > { %8445 = vmatprep.subr.bf16.mxu0 %v9611_v18 }
 0x1af   : > { %8446 = vmatpush3.bf16.msra.mxu0 %v9251_v10 }
 0x1b0   : > { %8447 = vmatprep.subr.bf16.mxu0 %v9611_v18 }
 0x1b3   : > { %8448 = vmatpush3.bf16.msra.mxu0 %v9252_v11 }
 0x1b4   : > { %8449 = vmatprep.subr.bf16.mxu0 %v9611_v18 }
 0x1b7   : > { %8450 = vmatpush3.bf16.msra.mxu0 %v9253_v12  ;;  %v2987_v12 = vsel %vm2939_vm2, %v2432_v8, 0  ;;  %v9291_v8 = vld [vmem:[%s10836_s8 + $0xa0] sm:$0xff]  }
 0x1b8   : > { %8451 = vmatprep.subr.bf16.mxu0 %v9611_v18 }
 0x1bb   : > { %8452 = vmatpush3.bf16.msra.mxu0 %v9254_v13 }
 0x1bc   : > { %8482 = vmatprep.subr.mxu0 %v9611_v18 }
 0x1be   : > { %8454 = vmatmul.mubr.bf16.vlgmr.msra.gmra.mrb[16].mxu0 %v10000_v62 }
 0x1bf   : > { %8484 = vmatprep.mubr.msk.f32.mxu0 %vm9612_vm0, %v9611_v18 }
 0x251   : > { %v2041_v15 = vpop.f32.mrb[8].mxu0  ;;  %v2152_v16 = vpop.f32.mrb[8].mxu1 }
 0x252   : > { %v2153_v19 = vadd.f32 %v7324_v14, %v2152_v16  ;;  %v8365_v20 = vpop.f32.mrb[9].mxu0  ;;  %v8385_v21 = vpop.f32.mrb[9].mxu1  ;;  %v2042_v26 = vadd.f32 %v7315_v17, %v2041_v15  ;;  %v9271_v15 = vld [vmem:[%s9653_s29 + $0x80] sm:$0xff]   ;;  %v9272_v17 = vld [vmem:[%s9653_s29 + $0x88] sm:$0xff]  }
 0x253   : > { %v2044_v22 = vpop.f32.mrb[10].mxu0  ;;  %v2155_v23 = vpop.f32.mrb[10].mxu1  ;;  %v9274_v20 = vld [vmem:[%s9653_s29 + $0x98] sm:$0xff]   ;;  %v9275_v21 = vld [vmem:[%s9653_s29 + $0xa0] sm:$0xff]  }
 0x254   : > { %v8366_v24 = vpop.f32.mrb[11].mxu0  ;;  %v8386_v25 = vpop.f32.mrb[11].mxu1  ;;  %8408 = vmatpush3.xpose.msk.msra.mxu1 %vm2269_vm1, %v2153_v19  ;;  %v9273_v19 = vld [vmem:[%s9653_s29 + $0x90] sm:$0xff]   ;;  %v9276_v22 = vld [vmem:[%s9653_s29 + $0xa8] sm:$0xff]  }
 0x255   : > { %8412 = vmatprep.subr.mxu1 %v9611_v18  ;;  %v9277_v23 = vld [vmem:[%s9653_s29 + $0xb0] sm:$0xff]   ;;  %v7414_v24 = vld [vmem:[%s10832_s14 + $0x1] ss:$0 sm:$0xff] }
 0x257   : > { %8410 = vmatmul.mubr.msk.f32.vlgmr.msra.gmra.mrb[12].mxu1 %vm2269_vm1, %v2042_v26  ;;  %v9278_v26 = vld [vmem:[%s9653_s29 + $0xb8] sm:$0xff]  }
 0x258   : > { %8414 = vmatprep.mubr.msk.f32.mxu1 %vm9612_vm0, %v9611_v18 }
 0x271   : > { %v2263_v28 = vpop.f32.mrb[12].mxu0 }
 0x272   : > { %v2264_v29 = vadd.f32 %v7333_v27, %v2263_v28  ;;  %v8405_v30 = vpop.f32.mrb[13].mxu0 }
 0x273   : > { %v2266_v31 = vpop.f32.mrb[14].mxu0 }
 0x274   : > { %v8406_v32 = vpop.f32.mrb[15].mxu0  ;;  %8413 = vmatpush3.msra.mxu1 %v2264_v29 }
 0x275   : > { %8417 = vmatprep.subr.bf16.mxu1 %v9611_v18 }
 0x291   : > { %v10054_v33 = vpop.f32.mrb[16].mxu0 }
 0x292   : > { %v8455_v34 = vpop.f32.mrb[17].mxu0  ;;  %v2654_v4 = vadd.f32 %v7388_v3, %v10054_v33  ;;  %v9286_v3 = vld [vmem:[%s9643_s21 + $0xb8] sm:$0xff]  }
 0x293   : > { %v2656_v35 = vpop.f32.mrb[18].mxu0 }
 0x294   : > { %v8456_v36 = vpop.f32.mrb[19].mxu0 }
 0x32a   : > { %v2342_v37 = vpop.f32.mrb[12].mxu1 }
 0x32b   : > { %v2346_v38 = vmul.f32 0.35355338, %v2342_v37  ;;  %v8411_v39 = vpop.f32.mrb[13].mxu1 }
 0x32c   : > { %v7472_v39 = vld [vmem:[%s10837_s3 + $0x2] ss:$0 sm:$0xff] }
 0x32d   : > { %v2347_v40 = vsel %vm2269_vm1, %v2346_v38, -inf }
 0x32e   : > { %2348 = vmax.xlane.f32.xlu0 %v2347_v40 }
 0x3bb   : > { %v2349_v41 = vpop.xlane.xlu0 %2348 }
 0x3bc   : > { %v2350_v42 = vsub.f32 %v2346_v38, %v2349_v41 }
 0x3be   : > { %v2351_v43 = vmul.f32 1.442695, %v2350_v42 }
 0x3c0   : > { %9463 = vpow2.f32 %v2351_v43 }
 0x3ca   : > { %v9464_v44 = vpop.eup %9463 }
 0x3cb   : > { %v2353_v45 = vsel %vm2269_vm1, %v9464_v44, 0.0 }
 0x3cc   : > { %2354 = vadd.xlane.f32.xlu0 %v2353_v45 }
 0x459   : > { %v2355_v46 = vpop.xlane.xlu0 %2354 }
 0x45a   : > { %9465 = vrcp.f32 %v2355_v46 }
 0x464   : > { %v9466_v47 = vpop.eup %9465 }
 0x465   : > { %v2357_v49 = vmul.f32 %v9466_v47, %v9464_v44 }
 0x467   : > { %8415 = vmatmul.mubr.msk.f32.vlgmr.msra.gmra.mrb[14].mxu1 %vm2269_vm1, %v2357_v49 }
 0x468   : > { %8418 = vmatpush3.bf16.msra.mxu1 %v9255_v48  ;;  %8433 = vmatprep.mubr.msk.bf16.mxu1 %vm9612_vm0, %v9611_v18 }
 0x469   : > { %8419 = vmatprep.subr.bf16.mxu1 %v9611_v18 }
 0x46c   : > { %8420 = vmatpush3.bf16.msra.mxu1 %v9256_v50 }
 0x46d   : > { %8421 = vmatprep.subr.bf16.mxu1 %v9611_v18 }
 0x470   : > { %8422 = vmatpush3.bf16.msra.mxu1 %v9257_v51  ;;  %v7426_v51 = vld [vmem:[%s9673_s19 + $0x4] sm:$0xf] }
 0x471   : > { %8423 = vmatprep.subr.bf16.mxu1 %v9611_v18 }
 0x474   : > { %8424 = vmatpush3.bf16.msra.mxu1 %v9258_v52 }
 0x475   : > { %8425 = vmatprep.subr.bf16.mxu1 %v9611_v18 }
 0x478   : > { %8426 = vmatpush3.bf16.msra.mxu1 %v9259_v53 }
 0x479   : > { %8427 = vmatprep.subr.bf16.mxu1 %v9611_v18 }
 0x47c   : > { %8428 = vmatpush3.bf16.msra.mxu1 %v9260_v54  ;;  %v2941_v54 = vsel %vm2939_vm2, %v7426_v51, 0 }
 0x47d   : > { %8429 = vmatprep.subr.bf16.mxu1 %v9611_v18 }
 0x480   : > { %8430 = vmatpush3.bf16.msra.mxu1 %v9261_v55 }
 0x481   : > { %8431 = vmatprep.subr.bf16.mxu1 %v9611_v18 }
 0x484   : > { %8432 = vmatpush3.bf16.msra.mxu1 %v9262_v56  ;;  %v9279_v56 = vld [vmem:[%s9643_s21 + $0x80] sm:$0xff]  }
 0x485   : > { %8457 = vmatprep.subr.bf16.mxu1 %v9611_v18 }
 0x487   : > { %8434 = vmatmul.mubr.bf16.vlgmr.msra.gmra.mrb[16].mxu1 %v10000_v62 }
 0x488   : > { %8458 = vmatpush3.bf16.msra.mxu1 %v9263_v57  ;;  %8473 = vmatprep.mubr.msk.bf16.mxu1 %vm9612_vm0, %v9611_v18 }
 0x489   : > { %8459 = vmatprep.subr.bf16.mxu1 %v9611_v18 }
 0x48c   : > { %8460 = vmatpush3.bf16.msra.mxu1 %v9264_v58 }
 0x48d   : > { %8461 = vmatprep.subr.bf16.mxu1 %v9611_v18 }
 0x490   : > { %8462 = vmatpush3.bf16.msra.mxu1 %v9265_v59  ;;  %v9280_v59 = vld [vmem:[%s9643_s21 + $0x88] sm:$0xff]  }
 0x491   : > { %8463 = vmatprep.subr.bf16.mxu1 %v9611_v18 }
 0x494   : > { %8464 = vmatpush3.bf16.msra.mxu1 %v9266_v61  ;;  %v9281_v61 = vld [vmem:[%s9643_s21 + $0x90] sm:$0xff]  }
 0x495   : > { %8465 = vmatprep.subr.bf16.mxu1 %v9611_v18 }
 0x498   : > { %8466 = vmatpush3.bf16.msra.mxu1 %v9267_v63  ;;  %v9282_v63 = vld [vmem:[%s9643_s21 + $0x98] sm:$0xff]  }
 0x499   : > { %8467 = vmatprep.subr.bf16.mxu1 %v9611_v18 }
 0x49c   : > { %8468 = vmatpush3.bf16.msra.mxu1 %v9268_v0  ;;  %v9283_v0 = vld [vmem:[%s9643_s21 + $0xa0] sm:$0xff]  }
 0x49d   : > { %8469 = vmatprep.subr.bf16.mxu1 %v9611_v18 }
 0x4a0   : > { %8470 = vmatpush3.bf16.msra.mxu1 %v9269_v1  ;;  %v9284_v1 = vld [vmem:[%s9643_s21 + $0xa8] sm:$0xff]  }
 0x4a1   : > { %8471 = vmatprep.subr.bf16.mxu1 %v9611_v18 }
 0x4a4   : > { %8472 = vmatpush3.bf16.msra.mxu1 %v9270_v2  ;;  %v9285_v2 = vld [vmem:[%s9643_s21 + $0xb0] sm:$0xff]  }
 0x4a5   : > { %8477 = vmatprep.subr.mxu1 %v9611_v18 }
 0x4a7   : > { %8474 = vmatmul.mubr.bf16.vlgmr.msra.gmra.mrb[20].mxu1 %v10000_v62 }
 0x4a8   : > { %8479 = vmatprep.mubr.msk.f32.mxu1 %vm9612_vm0, %v9611_v18 }
 0x4ad   : > { %8478 = vmatpush3.xpose.msk.msra.mxu1 %vm2269_vm1, %v2654_v4  ;;  %v9287_v4 = vld [vmem:[%s10836_s8 + $0x80] sm:$0xff]  }
 0x4ae   : > { %8493 = vmatprep.subr.bf16.mxu1 %v9611_v18 }
 0x53a   : > { %v2427_v5 = vpop.f32.mrb[14].mxu1 }
 0x53b   : > { %v8416_v6 = vpop.f32.mrb[15].mxu1  ;;  %v2431_v16 = vpack.c.bf16 %v2427_v5, %v2427_v5  ;;  %v9288_v5 = vld [vmem:[%s10836_s8 + $0x88] sm:$0xff]  }
 0x53c   : > { %v9289_v6 = vld [vmem:[%s10836_s8 + $0x90] sm:$0xff]  }
 0x55a   : > { %v2540_v9 = vpop.f32.mrb[16].mxu1 }
 0x55b   : > { %v2541_v10 = vadd.f32 %v7362_v7, %v2540_v9  ;;  %v8435_v11 = vpop.f32.mrb[17].mxu1  ;;  %v9290_v7 = vld [vmem:[%s10836_s8 + $0x98] sm:$0xff]   ;;  %v9292_v9 = vld [vmem:[%s10836_s8 + $0xa8] sm:$0xff]  }
 0x55c   : > { %v2543_v13 = vpop.f32.mrb[18].mxu1  ;;  %v9294_v11 = vld [vmem:[%s10836_s8 + $0xb8] sm:$0xff]  }
 0x55d   : > { %v8436_v14 = vpop.f32.mrb[19].mxu1  ;;  %8480 = vmatmul.mubr.msk.f32.vlgmr.msra.gmra.mrb[24].mxu1 %vm2269_vm1, %v2541_v10  ;;  %v9293_v10 = vld [vmem:[%s10836_s8 + $0xb0] sm:$0xff]   ;;  %v9296_v13 = vld [vmem:[%s9653_s29 + $0xc8] sm:$0xff]  }
 0x55e   : > { %8494 = vmatpush3.bf16.msra.mxu1 %v2987_v12  ;;  %8495 = vmatprep.mubr.msk.bf16.mxu1 %vm9612_vm0, %v9611_v18  ;;  %v9295_v12 = vld [vmem:[%s9653_s29 + $0xc0] sm:$0xff]   ;;  %v9297_v14 = vld [vmem:[%s9653_s29 + $0xd0] sm:$0xff]  }
 0x55f   : > { %8519 = vmatprep.subr.bf16.mxu1 %v9611_v18 }
 0x561   : > { %8496 = vmatmul.mubr.msk.bf16.vlgmr.msra.gmra.mrb[28].mxu1 %vm2269_vm1, %v2431_v16  ;;  %v9299_v16 = vld [vmem:[%s9653_s29 + $0xe0] sm:$0xff]  }
 0x562   : > { %8520 = vmatpush3.bf16.msra.mxu1 %v9271_v15  ;;  %8535 = vmatprep.mubr.msk.bf16.mxu1 %vm9612_vm0, %v9611_v18  ;;  %v9298_v15 = vld [vmem:[%s9653_s29 + $0xd8] sm:$0xff]  }
 0x563   : > { %8521 = vmatprep.subr.bf16.mxu1 %v9611_v18 }
 0x566   : > { %8522 = vmatpush3.bf16.msra.mxu1 %v9272_v17  ;;  %v9300_v17 = vld [vmem:[%s9653_s29 + $0xe8] sm:$0xff]  }
 0x567   : > { %8523 = vmatprep.subr.bf16.mxu1 %v9611_v18 }
 0x56a   : > { %8524 = vmatpush3.bf16.msra.mxu1 %v9273_v19  ;;  %v9301_v19 = vld [vmem:[%s9653_s29 + $0xf0] sm:$0xff]  }
 0x56b   : > { %8525 = vmatprep.subr.bf16.mxu1 %v9611_v18 }
 0x56e   : > { %8526 = vmatpush3.bf16.msra.mxu1 %v9274_v20  ;;  %v9302_v20 = vld [vmem:[%s9653_s29 + $0xf8] sm:$0xff]  }
 0x56f   : > { %8527 = vmatprep.subr.bf16.mxu1 %v9611_v18 }
 0x572   : > { %8528 = vmatpush3.bf16.msra.mxu1 %v9275_v21 }
 0x573   : > { %8529 = vmatprep.subr.bf16.mxu1 %v9611_v18 }
 0x576   : > { %8530 = vmatpush3.bf16.msra.mxu1 %v9276_v22 }
 0x577   : > { %8531 = vmatprep.subr.bf16.mxu1 %v9611_v18 }
 0x57a   : > { %8532 = vmatpush3.bf16.msra.mxu1 %v9277_v23  ;;  %v2766_v25 = vpop.f32.mrb[20].mxu1 }
 0x57b   : > { %v2767_v27 = vadd.f32 %v7414_v24, %v2766_v25  ;;  %v8475_v28 = vpop.f32.mrb[21].mxu1  ;;  %8533 = vmatprep.subr.bf16.mxu1 %v9611_v18 }
 0x57c   : > { %v2769_v29 = vpop.f32.mrb[22].mxu1 }
 0x57d   : > { %v8476_v30 = vpop.f32.mrb[23].mxu1  ;;  %8483 = vmatpush3.msra.mxu0 %v2767_v27 }
 0x57e   : > { %8534 = vmatpush3.bf16.msra.mxu1 %v9278_v26  ;;  %8487 = vmatprep.subr.bf16.mxu0 %v9611_v18  ;;  %v7446_v26 = vld [vmem:[%s9648_s25 + $0x2] ss:$0 sm:$0xff] }
 0x57f   : > { %8559 = vmatprep.subr.mxu1 %v9611_v18 }
 0x581   : > { %8536 = vmatmul.mubr.bf16.vlgmr.msra.gmra.mrb[32].mxu1 %v10000_v62 }
 0x582   : > { %8561 = vmatprep.mubr.msk.f32.mxu1 %vm9612_vm0, %v9611_v18 }
 0x630   : > { %v2844_v31 = vpop.f32.mrb[24].mxu1 }
 0x631   : > { %v2848_v32 = vmul.f32 0.35355338, %v2844_v31  ;;  %v8481_v33 = vpop.f32.mrb[25].mxu1 }
 0x633   : > { %v2849_v34 = vsel %vm2269_vm1, %v2848_v32, -inf }
 0x634   : > { %2850 = vmax.xlane.f32.xlu1 %v2849_v34  ;;  %v10135_v35 = vpop.f32.mrb[28].mxu1 }
 0x635   : > { %v8497_v36 = vpop.f32.mrb[29].mxu1 }
 0x636   : > { %v3026_v37 = vpop.f32.mrb[30].mxu1 }
 0x637   : > { %v8498_v38 = vpop.f32.mrb[31].mxu1 }
 0x638   : > { %v7555_v38 = vld [vmem:[%s10837_s3 + $0x3] ss:$0 sm:$0xff]  ;;  %s10845_s3 = sld [smem:[#allocation20_spill]] }
 0x654   : > { %v3249_v40 = vpop.f32.mrb[32].mxu1 }
 0x655   : > { %v3250_v41 = vadd.f32 %v7472_v39, %v3249_v40  ;;  %v8537_v42 = vpop.f32.mrb[33].mxu1 }
 0x656   : > { %v3252_v43 = vpop.f32.mrb[34].mxu1 }
 0x657   : > { %v8538_v44 = vpop.f32.mrb[35].mxu1  ;;  %8560 = vmatpush3.xpose.msk.msra.mxu1 %vm2269_vm1, %v3250_v41 }
 0x658   : > { %8564 = vmatprep.subr.mxu1 %v9611_v18 }
 0x6c1   : > { %v2851_v45 = vpop.xlane.xlu1 %2850 }
 0x6c2   : > { %v2852_v46 = vsub.f32 %v2848_v32, %v2851_v45  ;;  %v7498_v32 = vld [vmem:[%s10832_s14 + $0x2] ss:$0 sm:$0xff] }
 0x6c4   : > { %v2853_v47 = vmul.f32 1.442695, %v2852_v46 }
 0x6c6   : > { %9467 = vpow2.f32 %v2853_v47 }
 0x6d0   : > { %v9468_v48 = vpop.eup %9467 }
 0x6d1   : > { %v2855_v49 = vsel %vm2269_vm1, %v9468_v48, 0.0 }
 0x6d2   : > { %2856 = vadd.xlane.f32.xlu1 %v2855_v49 }
 0x75f   : > { %v2857_v50 = vpop.xlane.xlu1 %2856 }
 0x760   : > { %9469 = vrcp.f32 %v2857_v50 }
 0x76a   : > { %v9470_v52 = vpop.eup %9469 }
 0x76b   : > { %v2859_v53 = vmul.f32 %v9470_v52, %v9468_v48 }
 0x76d   : > { %8485 = vmatmul.mubr.msk.f32.vlgmr.msra.gmra.mrb[20].mxu0 %vm2269_vm1, %v2859_v53 }
 0x76e   : > { %8488 = vmatpush3.bf16.msra.mxu0 %v2941_v54  ;;  %8489 = vmatprep.mubr.msk.bf16.mxu0 %vm9612_vm0, %v9611_v18  ;;  %v7510_v54 = vld [vmem:[%s9673_s19 + $0x8] sm:$0xf] }
 0x76f   : > { %8499 = vmatprep.subr.bf16.mxu0 %v9611_v18 }
 0x840   : > { %v2929_v55 = vpop.f32.mrb[20].mxu0 }
 0x841   : > { %v2933_v57 = vpack.c.bf16 %v2929_v55, %v2929_v55  ;;  %v8486_v58 = vpop.f32.mrb[21].mxu0 }
 0x843   : > { %8490 = vmatmul.mubr.msk.bf16.vlgmr.msra.gmra.mrb[24].mxu0 %vm2269_vm1, %v2933_v57  ;;  %v3536_v57 = vsel %vm2939_vm2, %v7510_v54, 0 }
 0x844   : > { %8500 = vmatpush3.bf16.msra.mxu0 %v9279_v56  ;;  %8515 = vmatprep.mubr.msk.bf16.mxu0 %vm9612_vm0, %v9611_v18 }
 0x845   : > { %8501 = vmatprep.subr.bf16.mxu0 %v9611_v18 }
 0x848   : > { %8502 = vmatpush3.bf16.msra.mxu0 %v9280_v59  ;;  %v9303_v59 = vld [vmem:[%s9643_s21 + $0xc0] sm:$0xff]  }
 0x849   : > { %8503 = vmatprep.subr.bf16.mxu0 %v9611_v18 }
 0x84c   : > { %8504 = vmatpush3.bf16.msra.mxu0 %v9281_v61 }
 0x84d   : > { %8505 = vmatprep.subr.bf16.mxu0 %v9611_v18 }
 0x850   : > { %8506 = vmatpush3.bf16.msra.mxu0 %v9282_v63 }
 0x851   : > { %8507 = vmatprep.subr.bf16.mxu0 %v9611_v18 }
 0x854   : > { %8508 = vmatpush3.bf16.msra.mxu0 %v9283_v0  ;;  %v9304_v0 = vld [vmem:[%s9643_s21 + $0xc8] sm:$0xff]  }
 0x855   : > { %8509 = vmatprep.subr.bf16.mxu0 %v9611_v18 }
 0x858   : > { %8510 = vmatpush3.bf16.msra.mxu0 %v9284_v1  ;;  %v9305_v1 = vld [vmem:[%s9643_s21 + $0xd0] sm:$0xff]  }
 0x859   : > { %8511 = vmatprep.subr.bf16.mxu0 %v9611_v18 }
 0x85c   : > { %8512 = vmatpush3.bf16.msra.mxu0 %v9285_v2  ;;  %v9306_v2 = vld [vmem:[%s9643_s21 + $0xd8] sm:$0xff]  }
 0x85d   : > { %8513 = vmatprep.subr.bf16.mxu0 %v9611_v18 }
 0x860   : > { %8514 = vmatpush3.bf16.msra.mxu0 %v9286_v3  ;;  %v9307_v3 = vld [vmem:[%s9643_s21 + $0xe0] sm:$0xff]  }
 0x861   : > { %8539 = vmatprep.subr.bf16.mxu0 %v9611_v18 }
 0x863   : > { %8516 = vmatmul.mubr.bf16.vlgmr.msra.gmra.mrb[28].mxu0 %v10000_v62 }
 0x864   : > { %8540 = vmatpush3.bf16.msra.mxu0 %v9287_v4  ;;  %8555 = vmatprep.mubr.msk.bf16.mxu0 %vm9612_vm0, %v9611_v18  ;;  %v9308_v4 = vld [vmem:[%s9643_s21 + $0xe8] sm:$0xff]  }
 0x865   : > { %8541 = vmatprep.subr.bf16.mxu0 %v9611_v18 }
 0x868   : > { %8542 = vmatpush3.bf16.msra.mxu0 %v9288_v5  ;;  %v9309_v5 = vld [vmem:[%s9643_s21 + $0xf0] sm:$0xff]  }
 0x869   : > { %8543 = vmatprep.subr.bf16.mxu0 %v9611_v18 }
 0x86c   : > { %8544 = vmatpush3.bf16.msra.mxu0 %v9289_v6  ;;  %v9310_v6 = vld [vmem:[%s9643_s21 + $0xf8] sm:$0xff]  }
 0x86d   : > { %8545 = vmatprep.subr.bf16.mxu0 %v9611_v18 }
 0x870   : > { %8546 = vmatpush3.bf16.msra.mxu0 %v9290_v7  ;;  %v9311_v7 = vld [vmem:[%s10836_s8 + $0xc0] sm:$0xff]  }
 0x871   : > { %8547 = vmatprep.subr.bf16.mxu0 %v9611_v18 }
 0x874   : > { %8548 = vmatpush3.bf16.msra.mxu0 %v9291_v8  ;;  %v9312_v8 = vld [vmem:[%s10836_s8 + $0xc8] sm:$0xff]  }
 0x875   : > { %8549 = vmatprep.subr.bf16.mxu0 %v9611_v18 }
 0x878   : > { %8550 = vmatpush3.bf16.msra.mxu0 %v9292_v9  ;;  %v9313_v9 = vld [vmem:[%s10836_s8 + $0xd0] sm:$0xff]  }
 0x879   : > { %8551 = vmatprep.subr.bf16.mxu0 %v9611_v18 }
 0x87c   : > { %8552 = vmatpush3.bf16.msra.mxu0 %v9293_v10  ;;  %v9314_v10 = vld [vmem:[%s10836_s8 + $0xd8] sm:$0xff]  }
 0x87d   : > { %8553 = vmatprep.subr.bf16.mxu0 %v9611_v18 }
 0x880   : > { %8554 = vmatpush3.bf16.msra.mxu0 %v9294_v11  ;;  %v9315_v11 = vld [vmem:[%s10836_s8 + $0xe0] sm:$0xff]  }
 0x881   : > { %8595 = vmatprep.subr.bf16.mxu0 %v9611_v18 }
 0x883   : > { %8556 = vmatmul.mubr.bf16.vlgmr.msra.gmra.mrb[32].mxu0 %v10000_v62 }
 0x884   : > { %8596 = vmatpush3.bf16.msra.mxu0 %v9295_v12  ;;  %8611 = vmatprep.mubr.msk.bf16.mxu0 %vm9612_vm0, %v9611_v18  ;;  %v9316_v12 = vld [vmem:[%s10836_s8 + $0xe8] sm:$0xff]  }
 0x885   : > { %8597 = vmatprep.subr.bf16.mxu0 %v9611_v18 }
 0x888   : > { %8598 = vmatpush3.bf16.msra.mxu0 %v9296_v13  ;;  %v9317_v13 = vld [vmem:[%s10836_s8 + $0xf0] sm:$0xff]  }
 0x889   : > { %8599 = vmatprep.subr.bf16.mxu0 %v9611_v18 }
 0x88c   : > { %8600 = vmatpush3.bf16.msra.mxu0 %v9297_v14  ;;  %v9318_v14 = vld [vmem:[%s10836_s8 + $0xf8] sm:$0xff]   ;;  %s10853_s8 = sld [smem:[#allocation24_spill]] }
 0x88d   : > { %8601 = vmatprep.subr.bf16.mxu0 %v9611_v18 }
 0x890   : > { %8602 = vmatpush3.bf16.msra.mxu0 %v9298_v15 }
 0x891   : > { %8603 = vmatprep.subr.bf16.mxu0 %v9611_v18 }
 0x894   : > { %8604 = vmatpush3.bf16.msra.mxu0 %v9299_v16 }
 0x895   : > { %8605 = vmatprep.subr.bf16.mxu0 %v9611_v18 }
 0x898   : > { %8606 = vmatpush3.bf16.msra.mxu0 %v9300_v17 }
 0x899   : > { %8607 = vmatprep.subr.bf16.mxu0 %v9611_v18 }
 0x89c   : > { %8608 = vmatpush3.bf16.msra.mxu0 %v9301_v19 }
 0x89d   : > { %8609 = vmatprep.subr.bf16.mxu0 %v9611_v18 }
 0x8a0   : > { %8610 = vmatpush3.bf16.msra.mxu0 %v9302_v20 }
 0x8a1   : > { %8635 = vmatprep.subr.mxu0 %v9611_v18 }
 0x8a3   : > { %8612 = vmatmul.mubr.bf16.vlgmr.msra.gmra.mrb[36].mxu0 %v10000_v62 }
 0x8a4   : > { %8637 = vmatprep.mubr.msk.f32.mxu0 %vm9612_vm0, %v9611_v18 }
 0x916   : > { %v2977_v21 = vpop.f32.mrb[24].mxu0 }
 0x917   : > { %v10208_v22 = vadd.f32 %v10135_v35, %v2977_v21  ;;  %v8491_v23 = vpop.f32.mrb[25].mxu0  ;;  %v7529_v21 = vld [vmem:[%s9648_s25 + $0x3] ss:$0 sm:$0xff] }
 0x918   : > { %v2980_v24 = vpop.f32.mrb[26].mxu0 }
 0x919   : > { %v8492_v25 = vpop.f32.mrb[27].mxu0 }
 0x936   : > { %v3136_v27 = vpop.f32.mrb[28].mxu0 }
 0x937   : > { %v3137_v28 = vadd.f32 %v7446_v26, %v3136_v27  ;;  %v8517_v29 = vpop.f32.mrb[29].mxu0 }
 0x938   : > { %v3139_v30 = vpop.f32.mrb[30].mxu0 }
 0x939   : > { %v8518_v31 = vpop.f32.mrb[31].mxu0  ;;  %8562 = vmatmul.mubr.msk.f32.vlgmr.msra.gmra.mrb[26].mxu1 %vm2269_vm1, %v3137_v28 }
 0x93a   : > { %8566 = vmatprep.mubr.msk.f32.mxu1 %vm9612_vm0, %v9611_v18 }
 0x956   : > { %v3362_v33 = vpop.f32.mrb[32].mxu0 }
 0x957   : > { %v3363_v34 = vadd.f32 %v7498_v32, %v3362_v33  ;;  %v8557_v35 = vpop.f32.mrb[33].mxu0 }
 0x958   : > { %v3365_v36 = vpop.f32.mrb[34].mxu0 }
 0x959   : > { %v8558_v37 = vpop.f32.mrb[35].mxu0  ;;  %8565 = vmatpush3.msra.mxu1 %v3363_v34 }
 0x95a   : > { %8569 = vmatprep.subr.bf16.mxu1 %v9611_v18 }
 0x976   : > { %v3799_v39 = vpop.f32.mrb[36].mxu0 }
 0x977   : > { %v3800_v40 = vadd.f32 %v7555_v38, %v3799_v39  ;;  %v8613_v41 = vpop.f32.mrb[37].mxu0 }
 0x978   : > { %v3802_v42 = vpop.f32.mrb[38].mxu0 }
 0x979   : > { %v8614_v43 = vpop.f32.mrb[39].mxu0  ;;  %8636 = vmatpush3.xpose.msk.msra.mxu0 %vm2269_vm1, %v3800_v40 }
 0x97a   : > { %8640 = vmatprep.subr.mxu0 %v9611_v18 }
 0xa0c   : > { %v3440_v44 = vpop.f32.mrb[26].mxu1 }
 0xa0d   : > { %v3444_v45 = vmul.f32 0.35355338, %v3440_v44  ;;  %v8563_v46 = vpop.f32.mrb[27].mxu1  ;;  %v7593_v44 = vld [vmem:[%s9673_s19 + $0xc] sm:$0xf] }
 0xa0f   : > { %v3445_v47 = vsel %vm2269_vm1, %v3444_v45, -inf }
 0xa10   : > { %3446 = vmax.xlane.f32.xlu0 %v3445_v47 }
 0xa9d   : > { %v3447_v48 = vpop.xlane.xlu0 %3446 }
 0xa9e   : > { %v3448_v49 = vsub.f32 %v3444_v45, %v3447_v48  ;;  %v4086_v45 = vsel %vm2939_vm2, %v7593_v44, 0  ;;  %v9337_v44 = vld [vmem:[%s10844_s22 + $0x8] sm:$0xff]  }
 0xaa0   : > { %v3449_v50 = vmul.f32 1.442695, %v3448_v49  ;;  %v9319_v49 = vld [vmem:[%s10834_s12] sm:$0xff]  }
 0xaa2   : > { %9471 = vpow2.f32 %v3449_v50 }
 0xaac   : > { %v9472_v51 = vpop.eup %9471 }
 0xaad   : > { %v3451_v52 = vsel %vm2269_vm1, %v9472_v51, 0.0 }
 0xaae   : > { %3452 = vadd.xlane.f32.xlu1 %v3451_v52 }
 0xb3b   : > { %v3453_v53 = vpop.xlane.xlu1 %3452 }
 0xb3c   : > { %9473 = vrcp.f32 %v3453_v53 }
 0xb46   : > { %v9474_v55 = vpop.eup %9473 }
 0xb47   : > { %v3455_v56 = vmul.f32 %v9474_v55, %v9472_v51  ;;  %v7595_v51 = vld [vmem:[%s9678_s24] ss:$0 sm:$0xff] }
 0xb49   : > { %8567 = vmatmul.mubr.msk.f32.vlgmr.msra.gmra.mrb[36].mxu1 %vm2269_vm1, %v3455_v56 }
 0xb4a   : > { %8570 = vmatpush3.bf16.msra.mxu1 %v3536_v57  ;;  %8571 = vmatprep.mubr.msk.bf16.mxu1 %vm9612_vm0, %v9611_v18 }
 0xb4b   : > { %8575 = vmatprep.subr.bf16.mxu1 %v9611_v18 }
 0xc1c   : > { %v3525_v58 = vpop.f32.mrb[36].mxu1 }
 0xc1d   : > { %v3529_v61 = vpack.c.bf16 %v3525_v58, %v3525_v58  ;;  %v8568_v63 = vpop.f32.mrb[37].mxu1 }
 0xc1e   : > { %v9322_v63 = vld [vmem:[%s10834_s12 + $0x18] sm:$0xff]  }
 0xc1f   : > { %8572 = vmatmul.mubr.msk.bf16.vlgmr.msra.gmra.mrb[40].mxu1 %vm2269_vm1, %v3529_v61  ;;  %v9321_v61 = vld [vmem:[%s10834_s12 + $0x10] sm:$0xff]  }
 0xc20   : > { %8576 = vmatpush3.bf16.msra.mxu1 %v9303_v59  ;;  %8591 = vmatprep.mubr.msk.bf16.mxu1 %vm9612_vm0, %v9611_v18  ;;  %v9320_v59 = vld [vmem:[%s10834_s12 + $0x8] sm:$0xff]  }
 0xc21   : > { %8577 = vmatprep.subr.bf16.mxu1 %v9611_v18 }
 0xc24   : > { %8578 = vmatpush3.bf16.msra.mxu1 %v9304_v0  ;;  %v9323_v0 = vld [vmem:[%s10834_s12 + $0x20] sm:$0xff]  }
 0xc25   : > { %8579 = vmatprep.subr.bf16.mxu1 %v9611_v18 }
 0xc28   : > { %8580 = vmatpush3.bf16.msra.mxu1 %v9305_v1  ;;  %v9325_v1 = vld [vmem:[%s10834_s12 + $0x30] sm:$0xff]  }
 0xc29   : > { %8581 = vmatprep.subr.bf16.mxu1 %v9611_v18 }
 0xc2c   : > { %8582 = vmatpush3.bf16.msra.mxu1 %v9306_v2  ;;  %v9326_v2 = vld [vmem:[%s10834_s12 + $0x38] sm:$0xff]  }
 0xc2d   : > { %8583 = vmatprep.subr.bf16.mxu1 %v9611_v18 }
 0xc30   : > { %8584 = vmatpush3.bf16.msra.mxu1 %v9307_v3  ;;  %v9327_v3 = vld [vmem:[%s9703_s27] sm:$0xff]  }
 0xc31   : > { %8585 = vmatprep.subr.bf16.mxu1 %v9611_v18 }
 0xc34   : > { %8586 = vmatpush3.bf16.msra.mxu1 %v9308_v4  ;;  %v9328_v4 = vld [vmem:[%s9703_s27 + $0x8] sm:$0xff]  }
 0xc35   : > { %8587 = vmatprep.subr.bf16.mxu1 %v9611_v18 }
 0xc38   : > { %8588 = vmatpush3.bf16.msra.mxu1 %v9309_v5  ;;  %v9329_v5 = vld [vmem:[%s9703_s27 + $0x10] sm:$0xff]  }
 0xc39   : > { %8589 = vmatprep.subr.bf16.mxu1 %v9611_v18 }
 0xc3c   : > { %8590 = vmatpush3.bf16.msra.mxu1 %v9310_v6  ;;  %v9330_v6 = vld [vmem:[%s9703_s27 + $0x18] sm:$0xff]  }
 0xc3d   : > { %8615 = vmatprep.subr.bf16.mxu1 %v9611_v18 }
 0xc3f   : > { %8592 = vmatmul.mubr.bf16.vlgmr.msra.gmra.mrb[44].mxu1 %v10000_v62 }
 0xc40   : > { %8616 = vmatpush3.bf16.msra.mxu1 %v9311_v7  ;;  %8631 = vmatprep.mubr.msk.bf16.mxu1 %vm9612_vm0, %v9611_v18  ;;  %v9331_v7 = vld [vmem:[%s9703_s27 + $0x20] sm:$0xff]  }
 0xc41   : > { %8617 = vmatprep.subr.bf16.mxu1 %v9611_v18 }
 0xc44   : > { %8618 = vmatpush3.bf16.msra.mxu1 %v9312_v8  ;;  %v9332_v8 = vld [vmem:[%s9703_s27 + $0x28] sm:$0xff]  }
 0xc45   : > { %8619 = vmatprep.subr.bf16.mxu1 %v9611_v18 }
 0xc48   : > { %8620 = vmatpush3.bf16.msra.mxu1 %v9313_v9 }
 0xc49   : > { %8621 = vmatprep.subr.bf16.mxu1 %v9611_v18 }
 0xc4c   : > { %8622 = vmatpush3.bf16.msra.mxu1 %v9314_v10 }
 0xc4d   : > { %8623 = vmatprep.subr.bf16.mxu1 %v9611_v18 }
 0xc50   : > { %8624 = vmatpush3.bf16.msra.mxu1 %v9315_v11 }
 0xc51   : > { %8625 = vmatprep.subr.bf16.mxu1 %v9611_v18 }
 0xc54   : > { %8626 = vmatpush3.bf16.msra.mxu1 %v9316_v12 }
 0xc55   : > { %8627 = vmatprep.subr.bf16.mxu1 %v9611_v18 }
 0xc58   : > { %8628 = vmatpush3.bf16.msra.mxu1 %v9317_v13 }
 0xc59   : > { %8629 = vmatprep.subr.bf16.mxu1 %v9611_v18 }
 0xc5c   : > { %8630 = vmatpush3.bf16.msra.mxu1 %v9318_v14 }
 0xc5d   : > { %8671 = vmatprep.subr.bf16.mxu1 %v9611_v18 }
 0xc5f   : > { %8632 = vmatmul.mubr.bf16.vlgmr.msra.gmra.mrb[48].mxu1 %v10000_v62  ;;  %v7581_v62 = vld [vmem:[%s10832_s14 + $0x3] ss:$0 sm:$0xff] }
 0xc60   : > { %8687 = vmatprep.mubr.msk.bf16.mxu1 %vm9612_vm0, %v9611_v18  ;;  %8672 = vmatpush3.bf16.msra.mxu1 %v9327_v3 }
 0xc61   : > { %8673 = vmatprep.subr.bf16.mxu1 %v9611_v18 }
 0xc64   : > { %8674 = vmatpush3.bf16.msra.mxu1 %v9328_v4 }
 0xc65   : > { %8675 = vmatprep.subr.bf16.mxu1 %v9611_v18 }
 0xc68   : > { %8676 = vmatpush3.bf16.msra.mxu1 %v9329_v5 }
 0xc69   : > { %8677 = vmatprep.subr.bf16.mxu1 %v9611_v18 }
 0xc6c   : > { %8678 = vmatpush3.bf16.msra.mxu1 %v9330_v6 }
 0xc6d   : > { %8679 = vmatprep.subr.bf16.mxu1 %v9611_v18 }
 0xc70   : > { %8680 = vmatpush3.bf16.msra.mxu1 %v9331_v7 }
 0xc71   : > { %8681 = vmatprep.subr.bf16.mxu1 %v9611_v18 }
 0xc74   : > { %8682 = vmatpush3.bf16.msra.mxu1 %v9332_v8 }
 0xc75   : > { %8683 = vmatprep.subr.bf16.mxu1 %v9611_v18 }
 0xcf2   : > { %v3572_v15 = vpop.f32.mrb[40].mxu1 }
 0xcf3   : > { %v3578_v16 = vadd.f32 %v3572_v15, %v10208_v22  ;;  %v8573_v17 = vpop.f32.mrb[41].mxu1 }
 0xcf4   : > { %v3575_v19 = vpop.f32.mrb[42].mxu1 }
 0xcf5   : > { %v8574_v20 = vpop.f32.mrb[43].mxu1  ;;  %v7596_v19 = vld [vmem:[%s10841_s23] ss:$0 sm:$0xff]  ;;  %s10846_s23 = sld [smem:[#allocation15_spill]] }
 0xd12   : > { %v3686_v23 = vpop.f32.mrb[44].mxu1 }
 0xd13   : > { %v3687_v24 = vadd.f32 %v7529_v21, %v3686_v23  ;;  %v8593_v25 = vpop.f32.mrb[45].mxu1  ;;  %v7597_v21 = vld [vmem:[%s10842_s2] ss:$0 sm:$0xff]  ;;  %s10847_s2 = sld [smem:[#allocation16_spill]] }
 0xd14   : > { %v3689_v26 = vpop.f32.mrb[46].mxu1 }
 0xd15   : > { %v8594_v27 = vpop.f32.mrb[47].mxu1  ;;  %8638 = vmatmul.mubr.msk.f32.vlgmr.msra.gmra.mrb[22].mxu0 %vm2269_vm1, %v3687_v24  ;;  %v9333_v26 = vld [vmem:[%s9703_s27 + $0x30] sm:$0xff]  }
 0xd16   : > { %8642 = vmatprep.mubr.msk.f32.mxu0 %vm9612_vm0, %v9611_v18  ;;  %8684 = vmatpush3.bf16.msra.mxu1 %v9333_v26  ;;  %v9334_v27 = vld [vmem:[%s9703_s27 + $0x38] sm:$0xff]   ;;  %v9363_v26 = vld [vmem:[%s10845_s3 + $0x60] sm:$0xff]  }
 0xd17   : > { %8685 = vmatprep.subr.bf16.mxu1 %v9611_v18 }
 0xd19   : > { %v7616_v4 = vld [vmem:[%s10847_s2] ss:$0 sm:$0xff]  ;;  %s10850_s2 = sld [smem:[#allocation21_spill]] }
 0xd1a   : > { %8686 = vmatpush3.bf16.msra.mxu1 %v9334_v27  ;;  %v9364_v27 = vld [vmem:[%s10845_s3 + $0x68] sm:$0xff]  }
 0xd1b   : > { %8711 = vmatprep.subr.bf16.mxu1 %v9611_v18 }
 0xd32   : > { %v3912_v28 = vpop.f32.mrb[48].mxu1 }
 0xd33   : > { %v3913_v29 = vadd.f32 %v7581_v62, %v3912_v28  ;;  %v8633_v30 = vpop.f32.mrb[49].mxu1  ;;  %v7598_v62 = vld [vmem:[%s10843_s16] ss:$0 sm:$0xff]  ;;  %s10848_s16 = sld [smem:[#allocation17_spill]] }
 0xd34   : > { %v3915_v31 = vpop.f32.mrb[50].mxu1 }
 0xd35   : > { %v8634_v22 = vpop.f32.mrb[51].mxu1  ;;  %8641 = vmatpush3.msra.mxu0 %v3913_v29 }
 0xd36   : > { %8645 = vmatprep.subr.bf16.mxu0 %v9611_v18 }
 0xd39   : > { %v7617_v6 = vld [vmem:[%s10848_s16] ss:$0 sm:$0xff]  ;;  %s10851_s16 = sld [smem:[#allocation19_spill]] }
 0xde8   : > { %v3990_v32 = vpop.f32.mrb[22].mxu0 }
 0xde9   : > { %v3994_v33 = vmul.f32 0.35355338, %v3990_v32  ;;  %v8639_v34 = vpop.f32.mrb[23].mxu0 }
 0xdea   : > { %v9335_v34 = vld [vmem:[%s10844_s22] sm:$0xff]  }
 0xdeb   : > { %v3995_v35 = vsel %vm2269_vm1, %v3994_v33, -inf }
 0xdec   : > { %3996 = vmax.xlane.f32.xlu0 %v3995_v35  ;;  %v9336_v35 = vld [vmem:[%s10845_s3] sm:$0xff]  }
 0xe79   : > { %v3997_v36 = vpop.xlane.xlu0 %3996 }
 0xe7a   : > { %v3998_v37 = vsub.f32 %v3994_v33, %v3997_v36  ;;  %v7607_v36 = vld [vmem:[%s10846_s23] ss:$0 sm:$0xff]  ;;  %s10849_s23 = sld [smem:[#allocation22_spill]] }
 0xe7c   : > { %v3999_v38 = vmul.f32 1.442695, %v3998_v37 }
 0xe7e   : > { %9475 = vpow2.f32 %v3999_v38 }
 0xe88   : > { %v9476_v39 = vpop.eup %9475 }
 0xe89   : > { %v4001_v40 = vsel %vm2269_vm1, %v9476_v39, 0.0 }
 0xe8a   : > { %4002 = vadd.xlane.f32.xlu1 %v4001_v40 }
 0xf17   : > { %v4003_v41 = vpop.xlane.xlu1 %4002 }
 0xf18   : > { %9477 = vrcp.f32 %v4003_v41 }
 0xf22   : > { %v9478_v42 = vpop.eup %9477 }
 0xf23   : > { %v4005_v43 = vmul.f32 %v9478_v42, %v9476_v39 }
 0xf25   : > { %8643 = vmatmul.mubr.msk.f32.vlgmr.msra.gmra.mrb[40].mxu0 %vm2269_vm1, %v4005_v43 }
 0xf26   : > { %8647 = vmatprep.mubr.msk.bf16.mxu0 %vm9612_vm0, %v9611_v18  ;;  %8646 = vmatpush3.bf16.msra.mxu0 %v4086_v45  ;;  %v9338_v45 = vld [vmem:[%s10845_s3 + $0x8] sm:$0xff]  }
 0xf27   : > { %8651 = vmatprep.subr.bf16.mxu0 %v9611_v18 }
 0xff8   : > { %v4075_v46 = vpop.f32.mrb[40].mxu0 }
 0xff9   : > { %v4079_v47 = vpack.c.bf16 %v4075_v46, %v4075_v46  ;;  %v8644_v48 = vpop.f32.mrb[41].mxu0  ;;  %v9339_v46 = vld [vmem:[%s10844_s22 + $0x10] sm:$0xff]  }
 0xffa   : > { %v9341_v48 = vld [vmem:[%s10844_s22 + $0x18] sm:$0xff]  }
 0xffb   : > { %8648 = vmatmul.mubr.msk.bf16.vlgmr.msra.gmra.mrb[44].mxu0 %vm2269_vm1, %v4079_v47  ;;  %v9340_v47 = vld [vmem:[%s10845_s3 + $0x10] sm:$0xff]  }
 0xffc   : > { %8667 = vmatprep.mubr.msk.bf16.mxu0 %vm9612_vm0, %v9611_v18  ;;  %8652 = vmatpush3.bf16.msra.mxu0 %v9319_v49  ;;  %v9342_v49 = vld [vmem:[%s10845_s3 + $0x18] sm:$0xff]  }
 0xffd   : > { %8653 = vmatprep.subr.bf16.mxu0 %v9611_v18 }
0x1000   : > { %8654 = vmatpush3.bf16.msra.mxu0 %v9320_v59 }
0x1001   : > { %8655 = vmatprep.subr.bf16.mxu0 %v9611_v18 }
0x1004   : > { %8656 = vmatpush3.bf16.msra.mxu0 %v9321_v61 }
0x1005   : > { %8657 = vmatprep.subr.bf16.mxu0 %v9611_v18 }
0x1008   : > { %8658 = vmatpush3.bf16.msra.mxu0 %v9322_v63 }
0x1009   : > { %8659 = vmatprep.subr.bf16.mxu0 %v9611_v18 }
0x100c   : > { %8660 = vmatpush3.bf16.msra.mxu0 %v9323_v0 }
0x100d   : > { %8661 = vmatprep.subr.bf16.mxu0 %v9611_v18 }
0x10ce   : > { %v4122_v50 = vpop.f32.mrb[44].mxu0 }
0x10cf   : > { %v4128_v52 = vadd.f32 %v4122_v50, %v3578_v16  ;;  %v8649_v53 = vpop.f32.mrb[45].mxu0  ;;  %v9343_v50 = vld [vmem:[%s10844_s22 + $0x20] sm:$0xff]  }
0x10d0   : > { %v4125_v54 = vpop.f32.mrb[46].mxu0  ;;  %v9346_v53 = vld [vmem:[%s10845_s3 + $0x28] sm:$0xff]  }
0x10d1   : > { %v4136_v55 = vadd.f32 %v7595_v51, %v4128_v52  ;;  %v8650_v56 = vpop.f32.mrb[47].mxu0  ;;  %v9344_v51 = vld [vmem:[%s10845_s3 + $0x20] sm:$0xff]   ;;  %v9345_v52 = vld [vmem:[%s10844_s22 + $0x28] sm:$0xff]   ;;  %v9347_v54 = vld [vmem:[%s10844_s22 + $0x30] sm:$0xff]  }
0x10d2   : > { %v9349_v56 = vld [vmem:[%s10844_s22 + $0x38] sm:$0xff]  }
0x10d3   : > { %v4137_v57 = vadd.f32 %v4136_v55, %v9995_v60  ;;  %v9324_v60 = vld [vmem:[%s10834_s12 + $0x28] sm:$0xff]   ;;  %v9348_v55 = vld [vmem:[%s10845_s3 + $0x30] sm:$0xff]  }
0x10d4   : > { %8662 = vmatpush3.bf16.msra.mxu0 %v9324_v60 }
0x10d5   : > { %4140 = vadd.xlane.f32.xlu0 %v4137_v57  ;;  %v4143_v58 = vmul.f32 %v4137_v57, %v4137_v57  ;;  %8663 = vmatprep.subr.bf16.mxu0 %v9611_v18 }
0x10d7   : > { %4144 = vadd.xlane.f32.xlu1 %v4143_v58 }
0x10d8   : > { %8664 = vmatpush3.bf16.msra.mxu0 %v9325_v1 }
0x10d9   : > { %8665 = vmatprep.subr.bf16.mxu0 %v9611_v18 }
0x10dc   : > { %8666 = vmatpush3.bf16.msra.mxu0 %v9326_v2 }
0x10dd   : > { %8691 = vmatprep.subr.bf16.mxu0 %v9611_v18 }
0x1162   : > { %v4141_v9 = vpop.xlane.xlu0 %4140 }
0x1163   : > { %v4142_v10 = vmul.f32 0.03125, %v4141_v9  ;;  %v9505_v9 = vld [vmem:[%s10835_s9] sm:$0xff]  ;;  %s10860_s9 = sld [smem:[#allocation31_spill]] }
0x1164   : > { %v4145_v11 = vpop.xlane.xlu1 %4144 }
0x1165   : > { %v4147_v12 = vmul.f32 %v4142_v10, %v4142_v10  ;;  %v4146_v13 = vmul.f32 0.03125, %v4145_v11  ;;  %v4149_v16 = vsub.f32 %v4137_v57, %v4142_v10  ;;  %v9350_v57 = vld [vmem:[%s10845_s3 + $0x38] sm:$0xff]   ;;  %v9351_v11 = vld [vmem:[%s10849_s23] sm:$0xff]  }
0x1167   : > { %v4148_v14 = vsub.f32 %v4146_v13, %v4147_v12  ;;  %v9352_v13 = vld [vmem:[%s10849_s23 + $0x8] sm:$0xff]  }
0x1169   : > { %v4150_v15 = vadd.f32 1e-05, %v4148_v14  ;;  %v9353_v14 = vld [vmem:[%s10849_s23 + $0x10] sm:$0xff]  }
0x116b   : > { %9479 = vrsqrt.f32 %v4150_v15  ;;  %v9354_v15 = vld [vmem:[%s10849_s23 + $0x18] sm:$0xff]  }
0x1175   : > { %v9480_v17 = vpop.eup %9479 }
0x1176   : > { %v4152_v20 = vmul.f32 %v9480_v17, %v4149_v16  ;;  %v9355_v16 = vld [vmem:[%s10849_s23 + $0x20] sm:$0xff]   ;;  %v9356_v17 = vld [vmem:[%s10849_s23 + $0x28] sm:$0xff]  }
0x1178   : > { %v4159_v23 = vmul.f32 %v7596_v19, %v4152_v20  ;;  %v9357_v19 = vld [vmem:[%s10849_s23 + $0x30] sm:$0xff]   ;;  %v9358_v20 = vld [vmem:[%s10849_s23 + $0x38] sm:$0xff]  }
0x117a   : > { %v4166_v24 = vadd.f32 %v7597_v21, %v4159_v23  ;;  %v9359_v21 = vld [vmem:[%s10845_s3 + $0x40] sm:$0xff]   ;;  %v9360_v23 = vld [vmem:[%s10845_s3 + $0x48] sm:$0xff]  }
0x117c   : > { %v4167_v25 = vpack.c.bf16 %v4166_v24, %v4166_v24 }
0x117e   : > { %8668 = vmatmul.mubr.bf16.vlgmr.msra.gmra.mrb[48].mxu0 %v4167_v25  ;;  %v9362_v25 = vld [vmem:[%s10845_s3 + $0x58] sm:$0xff]  }
0x117f   : > { %8707 = vmatprep.mubr.msk.bf16.mxu0 %vm9612_vm0, %v9611_v18  ;;  %8692 = vmatpush3.bf16.msra.mxu0 %v9335_v34 }
0x1180   : > { %8693 = vmatprep.subr.bf16.mxu0 %v9611_v18 }
0x1183   : > { %8694 = vmatpush3.bf16.msra.mxu0 %v9337_v44 }
0x1184   : > { %8695 = vmatprep.subr.bf16.mxu0 %v9611_v18 }
0x1187   : > { %8696 = vmatpush3.bf16.msra.mxu0 %v9339_v46  ;;  %v7691_v46 = vld [vmem:[%s10850_s2 + $0x1] ss:$0 sm:$0xff] }
0x1188   : > { %8697 = vmatprep.subr.bf16.mxu0 %v9611_v18 }
0x118b   : > { %8698 = vmatpush3.bf16.msra.mxu0 %v9341_v48 }
0x118c   : > { %8699 = vmatprep.subr.bf16.mxu0 %v9611_v18 }
0x118f   : > { %8700 = vmatpush3.bf16.msra.mxu0 %v9343_v50 }
0x1190   : > { %8701 = vmatprep.subr.bf16.mxu0 %v9611_v18 }
0x1193   : > { %8702 = vmatpush3.bf16.msra.mxu0 %v9345_v52 }
0x1194   : > { %8703 = vmatprep.subr.bf16.mxu0 %v9611_v18 }
0x1197   : > { %8704 = vmatpush3.bf16.msra.mxu0 %v9347_v54 }
0x1198   : > { %8705 = vmatprep.subr.bf16.mxu0 %v9611_v18 }
0x119b   : > { %8706 = vmatpush3.bf16.msra.mxu0 %v9349_v56 }
0x119c   : > { %8731 = vmatprep.subr.bf16.mxu0 %v9611_v18 }
0x1251   : > { %v4273_v28 = vpop.f32.mrb[48].mxu0 }
0x1252   : > { %v4274_v29 = vadd.f32 %v7598_v62, %v4273_v28  ;;  %v8669_v30 = vpop.f32.mrb[49].mxu0  ;;  %v9365_v62 = vld [vmem:[%s10845_s3 + $0x70] sm:$0xff]   ;;  %v9366_v28 = vld [vmem:[%s10845_s3 + $0x78] sm:$0xff]  }
0x1253   : > { %v4276_v31 = vpop.f32.mrb[50].mxu0 }
0x1254   : > { %v4279_v22 = vmax.f32 %v4274_v29, 0.0  ;;  %v8670_v32 = vpop.f32.mrb[51].mxu0  ;;  %v7627_v29 = vld [vmem:[%s10850_s2] ss:$0 sm:$0xff] }
0x1256   : > { %v4280_v33 = vpack.c.bf16 %v4279_v22, %v4279_v22  ;;  %v7618_v22 = vld [vmem:[%s10851_s16] ss:$0 sm:$0xff] }
0x1258   : > { %8688 = vmatmul.mubr.bf16.vlgmr.msra.gmra.mrb[52].mxu1 %v4280_v33 }
0x1259   : > { %8727 = vmatprep.mubr.msk.bf16.mxu1 %vm9612_vm0, %v9611_v18  ;;  %8712 = vmatpush3.bf16.msra.mxu1 %v9336_v35 }
0x125a   : > { %8713 = vmatprep.subr.bf16.mxu1 %v9611_v18 }
0x125d   : > { %8714 = vmatpush3.bf16.msra.mxu1 %v9338_v45 }
0x125e   : > { %8715 = vmatprep.subr.bf16.mxu1 %v9611_v18 }
0x1261   : > { %8716 = vmatpush3.bf16.msra.mxu1 %v9340_v47 }
0x1262   : > { %8717 = vmatprep.subr.bf16.mxu1 %v9611_v18 }
0x1265   : > { %8718 = vmatpush3.bf16.msra.mxu1 %v9342_v49 }
0x1266   : > { %8719 = vmatprep.subr.bf16.mxu1 %v9611_v18 }
0x1269   : > { %8720 = vmatpush3.bf16.msra.mxu1 %v9344_v51 }
0x126a   : > { %8721 = vmatprep.subr.bf16.mxu1 %v9611_v18 }
0x126d   : > { %8722 = vmatpush3.bf16.msra.mxu1 %v9346_v53 }
0x126e   : > { %8723 = vmatprep.subr.bf16.mxu1 %v9611_v18 }
0x1271   : > { %8724 = vmatpush3.bf16.msra.mxu1 %v9348_v55 }
0x1272   : > { %8725 = vmatprep.subr.bf16.mxu1 %v9611_v18 }
0x1275   : > { %8726 = vmatpush3.bf16.msra.mxu1 %v9350_v57 }
0x1276   : > { %8751 = vmatprep.subr.mxu1 %v9611_v18 }
0x132b   : > { %v4386_v37 = vpop.f32.mrb[52].mxu1 }
0x132c   : > { %v4387_v38 = vadd.f32 %v7607_v36, %v4386_v37  ;;  %v8689_v39 = vpop.f32.mrb[53].mxu1 }
0x132d   : > { %v4389_v40 = vpop.f32.mrb[54].mxu1 }
0x132e   : > { %v4392_v41 = vadd.f32 %v4387_v38, %v4166_v24  ;;  %v8690_v42 = vpop.f32.mrb[55].mxu1  ;;  %v9361_v24 = vld [vmem:[%s10845_s3 + $0x50] sm:$0xff]   ;;  %v7636_v40 = vld [vmem:[%s10852_s5] ss:$0 sm:$0xff] }
0x1330   : > { %4395 = vadd.xlane.f32.xlu0 %v4392_v41  ;;  %v4398_v43 = vmul.f32 %v4392_v41, %v4392_v41 }
0x1332   : > { %4399 = vadd.xlane.f32.xlu1 %v4398_v43 }
0x13bd   : > { %v4396_v58 = vpop.xlane.xlu0 %4395 }
0x13be   : > { %v4397_v59 = vmul.f32 0.03125, %v4396_v58 }
0x13bf   : > { %v4400_v61 = vpop.xlane.xlu1 %4399 }
0x13c0   : > { %v4402_v63 = vmul.f32 %v4397_v59, %v4397_v59  ;;  %v4401_v0 = vmul.f32 0.03125, %v4400_v61  ;;  %v4404_v2 = vsub.f32 %v4392_v41, %v4397_v59 }
0x13c2   : > { %v4403_v60 = vsub.f32 %v4401_v0, %v4402_v63 }
0x13c4   : > { %v4405_v1 = vadd.f32 1e-05, %v4403_v60  ;;  %v9367_v60 = vld [vmem:[%s10844_s22 + $0x40] sm:$0xff]  }
0x13c6   : > { %9481 = vrsqrt.f32 %v4405_v1 }
0x13d0   : > { %v9482_v3 = vpop.eup %9481 }
0x13d1   : > { %v4407_v5 = vmul.f32 %v9482_v3, %v4404_v2  ;;  %v9368_v2 = vld [vmem:[%s10844_s22 + $0x48] sm:$0xff]   ;;  %v9369_v3 = vld [vmem:[%s10844_s22 + $0x50] sm:$0xff]  }
0x13d3   : > { %v4414_v7 = vmul.f32 %v7616_v4, %v4407_v5  ;;  %v9370_v4 = vld [vmem:[%s10844_s22 + $0x58] sm:$0xff]   ;;  %v9371_v5 = vld [vmem:[%s10844_s22 + $0x60] sm:$0xff]  }
0x13d5   : > { %v4421_v8 = vadd.f32 %v7617_v6, %v4414_v7  ;;  %v9372_v6 = vld [vmem:[%s10844_s22 + $0x68] sm:$0xff]   ;;  %v9373_v7 = vld [vmem:[%s10844_s22 + $0x70] sm:$0xff]  }
0x13d7   : > { %v10363_v10 = vadd.f32 %v9505_v9, %v4421_v8  ;;  %v9374_v8 = vld [vmem:[%s10844_s22 + $0x78] sm:$0xff]   ;;  %v9375_v9 = vld [vmem:[%s10849_s23 + $0x40] sm:$0xff]  }
0x13d9   : > { %v10368_v12 = vpack.c.bf16 %v10363_v10, %v10363_v10 }
0x13db   : > { %8708 = vmatmul.mubr.bf16.vlgmr.msra.gmra.mrb[52].mxu0 %v10368_v12  ;;  %8728 = vmatmul.mubr.bf16.vlgmr.msra.gmra.mrb[56].mxu1 %v10368_v12 }
0x13dc   : > { %8732 = vmatpush3.bf16.msra.mxu0 %v9351_v11  ;;  %8747 = vmatprep.mubr.msk.bf16.mxu0 %vm9612_vm0, %v9611_v18  ;;  %v9376_v11 = vld [vmem:[%s10849_s23 + $0x48] sm:$0xff]  }
0x13dd   : > { %8733 = vmatprep.subr.bf16.mxu0 %v9611_v18  ;;  %8753 = vmatprep.mubr.msk.f32.mxu1 %vm9612_vm0, %v9611_v18 }
0x13e0   : > { %8734 = vmatpush3.bf16.msra.mxu0 %v9352_v13  ;;  %v9377_v13 = vld [vmem:[%s10849_s23 + $0x50] sm:$0xff]  }
0x13e1   : > { %8735 = vmatprep.subr.bf16.mxu0 %v9611_v18 }
0x13e4   : > { %8736 = vmatpush3.bf16.msra.mxu0 %v9353_v14  ;;  %v9378_v14 = vld [vmem:[%s10849_s23 + $0x58] sm:$0xff]  }
0x13e5   : > { %8737 = vmatprep.subr.bf16.mxu0 %v9611_v18 }
0x13e8   : > { %8738 = vmatpush3.bf16.msra.mxu0 %v9354_v15  ;;  %v9379_v15 = vld [vmem:[%s10849_s23 + $0x60] sm:$0xff]  }
0x13e9   : > { %8739 = vmatprep.subr.bf16.mxu0 %v9611_v18 }
0x13ec   : > { %8740 = vmatpush3.bf16.msra.mxu0 %v9355_v16  ;;  %v9380_v16 = vld [vmem:[%s10849_s23 + $0x68] sm:$0xff]  }
0x13ed   : > { %8741 = vmatprep.subr.bf16.mxu0 %v9611_v18 }
0x13f0   : > { %8742 = vmatpush3.bf16.msra.mxu0 %v9356_v17  ;;  %v9381_v17 = vld [vmem:[%s10849_s23 + $0x70] sm:$0xff]  }
0x13f1   : > { %8743 = vmatprep.subr.bf16.mxu0 %v9611_v18 }
0x13f4   : > { %8744 = vmatpush3.bf16.msra.mxu0 %v9357_v19  ;;  %v9382_v19 = vld [vmem:[%s10849_s23 + $0x78] sm:$0xff]  }
0x13f5   : > { %8745 = vmatprep.subr.bf16.mxu0 %v9611_v18 }
0x13f8   : > { %8746 = vmatpush3.bf16.msra.mxu0 %v9358_v20  ;;  %v9383_v20 = vld [vmem:[%s10844_s22 + $0x80] sm:$0xff]  }
0x13f9   : > { %8781 = vmatprep.subr.bf16.mxu0 %v9611_v18 }
0x13fb   : > { %8748 = vmatmul.mubr.bf16.vlgmr.msra.gmra.mrb[56].mxu0 %v10368_v12 }
0x13fc   : > { %8782 = vmatpush3.bf16.msra.mxu0 %v9359_v21  ;;  %8797 = vmatprep.mubr.msk.bf16.mxu0 %vm9612_vm0, %v9611_v18  ;;  %v9384_v21 = vld [vmem:[%s10844_s22 + $0x88] sm:$0xff]  }
0x13fd   : > { %8783 = vmatprep.subr.bf16.mxu0 %v9611_v18 }
0x1400   : > { %8784 = vmatpush3.bf16.msra.mxu0 %v9360_v23  ;;  %v9385_v23 = vld [vmem:[%s10844_s22 + $0x90] sm:$0xff]  }
0x1401   : > { %8785 = vmatprep.subr.bf16.mxu0 %v9611_v18 }
0x1404   : > { %8786 = vmatpush3.bf16.msra.mxu0 %v9361_v24  ;;  %v9386_v24 = vld [vmem:[%s10844_s22 + $0x98] sm:$0xff]  }
0x1405   : > { %8787 = vmatprep.subr.bf16.mxu0 %v9611_v18 }
0x1408   : > { %8788 = vmatpush3.bf16.msra.mxu0 %v9362_v25  ;;  %v9387_v25 = vld [vmem:[%s10844_s22 + $0xa0] sm:$0xff]  }
0x1409   : > { %8789 = vmatprep.subr.bf16.mxu0 %v9611_v18 }
0x140c   : > { %8790 = vmatpush3.bf16.msra.mxu0 %v9363_v26  ;;  %v9388_v26 = vld [vmem:[%s10844_s22 + $0xa8] sm:$0xff]  }
0x140d   : > { %8791 = vmatprep.subr.bf16.mxu0 %v9611_v18 }
0x1410   : > { %8792 = vmatpush3.bf16.msra.mxu0 %v9364_v27  ;;  %v9389_v27 = vld [vmem:[%s10844_s22 + $0xb0] sm:$0xff]  }
0x1411   : > { %8793 = vmatprep.subr.bf16.mxu0 %v9611_v18 }
0x1414   : > { %8794 = vmatpush3.bf16.msra.mxu0 %v9365_v62  ;;  %v9390_v62 = vld [vmem:[%s10844_s22 + $0xb8] sm:$0xff]  }
0x1415   : > { %8795 = vmatprep.subr.bf16.mxu0 %v9611_v18 }
0x1418   : > { %8796 = vmatpush3.bf16.msra.mxu0 %v9366_v28  ;;  %v9391_v28 = vld [vmem:[%s10849_s23 + $0x80] sm:$0xff]  }
0x1419   : > { %8821 = vmatprep.subr.mxu0 %v9611_v18 }
0x141b   : > { %8798 = vmatmul.mubr.bf16.vlgmr.msra.gmra.mrb[60].mxu0 %v10368_v12 }
0x141c   : > { %8823 = vmatprep.mubr.msk.f32.mxu0 %vm9612_vm0, %v9611_v18 }
0x14ae   : > { %v4529_v30 = vpop.f32.mrb[52].mxu0  ;;  %v4640_v31 = vpop.f32.mrb[56].mxu1 }
0x14af   : > { %v4641_v32 = vadd.f32 %v7627_v29, %v4640_v31  ;;  %v8709_v33 = vpop.f32.mrb[53].mxu0  ;;  %v8729_v34 = vpop.f32.mrb[57].mxu1  ;;  %v4530_v39 = vadd.f32 %v7618_v22, %v4529_v30  ;;  %v9392_v29 = vld [vmem:[%s10849_s23 + $0x88] sm:$0xff]   ;;  %v9393_v30 = vld [vmem:[%s10849_s23 + $0x90] sm:$0xff]   ;;  %v9394_v31 = vld [vmem:[%s10849_s23 + $0x98] sm:$0xff]  }
0x14b0   : > { %v4532_v35 = vpop.f32.mrb[54].mxu0  ;;  %v4643_v36 = vpop.f32.mrb[58].mxu1  ;;  %v9395_v22 = vld [vmem:[%s10849_s23 + $0xa0] sm:$0xff]   ;;  %v9397_v33 = vld [vmem:[%s10849_s23 + $0xb0] sm:$0xff]   ;;  %v9398_v34 = vld [vmem:[%s10849_s23 + $0xb8] sm:$0xff]  }
0x14b1   : > { %v8710_v37 = vpop.f32.mrb[55].mxu0  ;;  %v8730_v38 = vpop.f32.mrb[59].mxu1  ;;  %8752 = vmatpush3.xpose.msk.msra.mxu1 %vm2269_vm1, %v4641_v32  ;;  %v9396_v32 = vld [vmem:[%s10849_s23 + $0xa8] sm:$0xff]   ;;  %v9399_v35 = vld [vmem:[%s10845_s3 + $0xc0] sm:$0xff]  }
0x14b2   : > { %8756 = vmatprep.subr.mxu1 %v9611_v18  ;;  %v9400_v36 = vld [vmem:[%s10845_s3 + $0xc8] sm:$0xff]   ;;  %v9401_v37 = vld [vmem:[%s10845_s3 + $0xd0] sm:$0xff]   ;;  %v9402_v38 = vld [vmem:[%s10845_s3 + $0xd8] sm:$0xff]  }
0x14b4   : > { %8754 = vmatmul.mubr.msk.f32.vlgmr.msra.gmra.mrb[38].mxu1 %vm2269_vm1, %v4530_v39  ;;  %v9403_v39 = vld [vmem:[%s10845_s3 + $0xe0] sm:$0xff]  }
0x14b5   : > { %8758 = vmatprep.mubr.msk.f32.mxu1 %vm9612_vm0, %v9611_v18 }
0x14ce   : > { %v4751_v41 = vpop.f32.mrb[56].mxu0 }
0x14cf   : > { %v4752_v42 = vadd.f32 %v7636_v40, %v4751_v41  ;;  %v8749_v43 = vpop.f32.mrb[57].mxu0  ;;  %v9404_v40 = vld [vmem:[%s10845_s3 + $0xe8] sm:$0xff]   ;;  %v9405_v41 = vld [vmem:[%s10845_s3 + $0xf0] sm:$0xff]  }
0x14d0   : > { %v4754_v44 = vpop.f32.mrb[58].mxu0 }
0x14d1   : > { %v8750_v45 = vpop.f32.mrb[59].mxu0  ;;  %8757 = vmatpush3.msra.mxu1 %v4752_v42  ;;  %v9406_v42 = vld [vmem:[%s10845_s3 + $0xf8] sm:$0xff]  }
0x14d2   : > { %8761 = vmatprep.subr.bf16.mxu1 %v9611_v18  ;;  %v7665_v45 = vld [vmem:[%s10851_s16 + $0x1] ss:$0 sm:$0xff] }
0x14ee   : > { %v5140_v47 = vpop.f32.mrb[60].mxu0 }
0x14ef   : > { %v5141_v48 = vadd.f32 %v7691_v46, %v5140_v47  ;;  %v8799_v49 = vpop.f32.mrb[61].mxu0 }
0x14f0   : > { %v5143_v50 = vpop.f32.mrb[62].mxu0 }
0x14f1   : > { %v8800_v51 = vpop.f32.mrb[63].mxu0  ;;  %8822 = vmatpush3.xpose.msk.msra.mxu0 %vm2269_vm1, %v5141_v48 }
0x14f2   : > { %8826 = vmatprep.subr.mxu0 %v9611_v18  ;;  %v7717_v51 = vld [vmem:[%s10852_s5 + $0x1] ss:$0 sm:$0xff] }
0x1587   : > { %v4829_v52 = vpop.f32.mrb[38].mxu1 }
0x1588   : > { %v4833_v53 = vmul.f32 0.35355338, %v4829_v52  ;;  %v8755_v54 = vpop.f32.mrb[39].mxu1 }
0x158a   : > { %v4834_v55 = vsel %vm2269_vm1, %v4833_v53, -inf }
0x158b   : > { %4835 = vmax.xlane.f32.xlu0 %v4834_v55 }
0x1618   : > { %v4836_v56 = vpop.xlane.xlu0 %4835 }
0x1619   : > { %v4837_v57 = vsub.f32 %v4833_v53, %v4836_v56 }
0x161b   : > { %v4838_v58 = vmul.f32 1.442695, %v4837_v57 }
0x161d   : > { %9483 = vpow2.f32 %v4838_v58 }
0x1627   : > { %v9484_v59 = vpop.eup %9483 }
0x1628   : > { %v4840_v61 = vsel %vm2269_vm1, %v9484_v59, 0.0 }
0x1629   : > { %4841 = vadd.xlane.f32.xlu1 %v4840_v61 }
0x16b6   : > { %v4842_v63 = vpop.xlane.xlu1 %4841 }
0x16b7   : > { %9485 = vrcp.f32 %v4842_v63 }
0x16c1   : > { %v9486_v0 = vpop.eup %9485 }
0x16c2   : > { %v4844_v1 = vmul.f32 %v9486_v0, %v9484_v59 }
0x16c4   : > { %8759 = vmatmul.mubr.msk.f32.vlgmr.msra.gmra.mrb[60].mxu1 %vm2269_vm1, %v4844_v1 }
0x16c5   : > { %8762 = vmatpush3.bf16.msra.mxu1 %v9367_v60  ;;  %8777 = vmatprep.mubr.msk.bf16.mxu1 %vm9612_vm0, %v9611_v18 }
0x16c6   : > { %8763 = vmatprep.subr.bf16.mxu1 %v9611_v18 }
0x16c9   : > { %8764 = vmatpush3.bf16.msra.mxu1 %v9368_v2  ;;  %v7858_v2 = vld [vmem:[%s10850_s2 + $0x3] ss:$0 sm:$0xff] }
0x16ca   : > { %8765 = vmatprep.subr.bf16.mxu1 %v9611_v18 }
0x16cd   : > { %8766 = vmatpush3.bf16.msra.mxu1 %v9369_v3 }
0x16ce   : > { %8767 = vmatprep.subr.bf16.mxu1 %v9611_v18 }
0x16d1   : > { %8768 = vmatpush3.bf16.msra.mxu1 %v9370_v4 }
0x16d2   : > { %8769 = vmatprep.subr.bf16.mxu1 %v9611_v18 }
0x16d5   : > { %8770 = vmatpush3.bf16.msra.mxu1 %v9371_v5 }
0x16d6   : > { %8771 = vmatprep.subr.bf16.mxu1 %v9611_v18 }
0x16d9   : > { %8772 = vmatpush3.bf16.msra.mxu1 %v9372_v6 }
0x16da   : > { %8773 = vmatprep.subr.bf16.mxu1 %v9611_v18 }
0x16dd   : > { %8774 = vmatpush3.bf16.msra.mxu1 %v9373_v7 }
0x16de   : > { %8775 = vmatprep.subr.bf16.mxu1 %v9611_v18 }
0x16e1   : > { %8776 = vmatpush3.bf16.msra.mxu1 %v9374_v8 }
0x16e2   : > { %8801 = vmatprep.subr.bf16.mxu1 %v9611_v18 }
0x16e4   : > { %8778 = vmatmul.mubr.bf16.vlgmr.msra.gmra.mrb[64].mxu1 %v10368_v12 }
0x16e5   : > { %8802 = vmatpush3.bf16.msra.mxu1 %v9375_v9  ;;  %8817 = vmatprep.mubr.msk.bf16.mxu1 %vm9612_vm0, %v9611_v18 }
0x16e6   : > { %8803 = vmatprep.subr.bf16.mxu1 %v9611_v18 }
0x16e9   : > { %8804 = vmatpush3.bf16.msra.mxu1 %v9376_v11 }
0x16ea   : > { %8805 = vmatprep.subr.bf16.mxu1 %v9611_v18 }
0x16ed   : > { %8806 = vmatpush3.bf16.msra.mxu1 %v9377_v13 }
0x16ee   : > { %8807 = vmatprep.subr.bf16.mxu1 %v9611_v18 }
0x16f1   : > { %8808 = vmatpush3.bf16.msra.mxu1 %v9378_v14 }
0x16f2   : > { %8809 = vmatprep.subr.bf16.mxu1 %v9611_v18 }
0x16f5   : > { %8810 = vmatpush3.bf16.msra.mxu1 %v9379_v15 }
0x16f6   : > { %8811 = vmatprep.subr.bf16.mxu1 %v9611_v18 }
0x16f9   : > { %8812 = vmatpush3.bf16.msra.mxu1 %v9380_v16 }
0x16fa   : > { %8813 = vmatprep.subr.bf16.mxu1 %v9611_v18 }
0x16fd   : > { %8814 = vmatpush3.bf16.msra.mxu1 %v9381_v17 }
0x16fe   : > { %8815 = vmatprep.subr.bf16.mxu1 %v9611_v18 }
0x1701   : > { %8816 = vmatpush3.bf16.msra.mxu1 %v9382_v19 }
0x1702   : > { %8843 = vmatprep.subr.bf16.mxu1 %v9611_v18 }
0x1704   : > { %8818 = vmatmul.mubr.bf16.vlgmr.msra.gmra.mrb[68].mxu1 %v10368_v12 }
0x1705   : > { %8844 = vmatpush3.bf16.msra.mxu1 %v9383_v20  ;;  %8859 = vmatprep.mubr.msk.bf16.mxu1 %vm9612_vm0, %v9611_v18 }
0x1706   : > { %8845 = vmatprep.subr.bf16.mxu1 %v9611_v18 }
0x1709   : > { %8846 = vmatpush3.bf16.msra.mxu1 %v9384_v21 }
0x170a   : > { %8847 = vmatprep.subr.bf16.mxu1 %v9611_v18 }
0x170d   : > { %8848 = vmatpush3.bf16.msra.mxu1 %v9385_v23 }
0x170e   : > { %8849 = vmatprep.subr.bf16.mxu1 %v9611_v18 }
0x1711   : > { %8850 = vmatpush3.bf16.msra.mxu1 %v9386_v24  ;;  %v7729_v24 = vld [vmem:[%s10853_s8 + $0x4] sm:$0xf] }
0x1712   : > { %8851 = vmatprep.subr.bf16.mxu1 %v9611_v18 }
0x1715   : > { %8852 = vmatpush3.bf16.msra.mxu1 %v9387_v25  ;;  %v5427_v25 = vsel %vm2939_vm2, %v7729_v24, 0  ;;  %v9424_v24 = vld [vmem:[%s10849_s23 + $0xc8] sm:$0xff]  }
0x1716   : > { %8853 = vmatprep.subr.bf16.mxu1 %v9611_v18 }
0x1719   : > { %8854 = vmatpush3.bf16.msra.mxu1 %v9388_v26  ;;  %v4919_v26 = vld [vmem:[%s10853_s8] sm:$0xf] }
0x171a   : > { %8855 = vmatprep.subr.bf16.mxu1 %v9611_v18 }
0x171d   : > { %8856 = vmatpush3.bf16.msra.mxu1 %v9389_v27 }
0x171e   : > { %8857 = vmatprep.subr.bf16.mxu1 %v9611_v18 }
0x1721   : > { %8858 = vmatpush3.bf16.msra.mxu1 %v9390_v62 }
0x1722   : > { %8883 = vmatprep.subr.bf16.mxu1 %v9611_v18 }
0x1724   : > { %8860 = vmatmul.mubr.bf16.vlgmr.msra.gmra.mrb[72].mxu1 %v10368_v12 }
0x1725   : > { %8884 = vmatpush3.bf16.msra.mxu1 %v9391_v28  ;;  %8899 = vmatprep.mubr.msk.bf16.mxu1 %vm9612_vm0, %v9611_v18 }
0x1726   : > { %8885 = vmatprep.subr.bf16.mxu1 %v9611_v18 }
0x1729   : > { %8886 = vmatpush3.bf16.msra.mxu1 %v9392_v29  ;;  %v5473_v29 = vsel %vm2939_vm2, %v4919_v26, 0  ;;  %v9426_v26 = vld [vmem:[%s10849_s23 + $0xd8] sm:$0xff]  }
0x172a   : > { %8887 = vmatprep.subr.bf16.mxu1 %v9611_v18 }
0x172d   : > { %8888 = vmatpush3.bf16.msra.mxu1 %v9393_v30  ;;  %v9407_v30 = vld [vmem:[%s10845_s3 + $0x80] sm:$0xff]  }
0x172e   : > { %8889 = vmatprep.subr.bf16.mxu1 %v9611_v18 }
0x1731   : > { %8890 = vmatpush3.bf16.msra.mxu1 %v9394_v31 }
0x1732   : > { %8891 = vmatprep.subr.bf16.mxu1 %v9611_v18 }
0x1735   : > { %8892 = vmatpush3.bf16.msra.mxu1 %v9395_v22  ;;  %v9408_v22 = vld [vmem:[%s10845_s3 + $0x88] sm:$0xff]  }
0x1736   : > { %8893 = vmatprep.subr.bf16.mxu1 %v9611_v18 }
0x1739   : > { %8894 = vmatpush3.bf16.msra.mxu1 %v9396_v32  ;;  %v9409_v32 = vld [vmem:[%s10845_s3 + $0x90] sm:$0xff]  }
0x173a   : > { %8895 = vmatprep.subr.bf16.mxu1 %v9611_v18 }
0x173d   : > { %8896 = vmatpush3.bf16.msra.mxu1 %v9397_v33  ;;  %v9410_v33 = vld [vmem:[%s10845_s3 + $0x98] sm:$0xff]  }
0x173e   : > { %8897 = vmatprep.subr.bf16.mxu1 %v9611_v18 }
0x1741   : > { %8898 = vmatpush3.bf16.msra.mxu1 %v9398_v34  ;;  %v9411_v34 = vld [vmem:[%s10845_s3 + $0xa0] sm:$0xff]  }
0x1742   : > { %8939 = vmatprep.subr.bf16.mxu1 %v9611_v18 }
0x1744   : > { %8900 = vmatmul.mubr.bf16.vlgmr.msra.gmra.mrb[76].mxu1 %v10368_v12 }
0x1745   : > { %8940 = vmatpush3.bf16.msra.mxu1 %v9399_v35  ;;  %8955 = vmatprep.mubr.msk.bf16.mxu1 %vm9612_vm0, %v9611_v18  ;;  %v9412_v35 = vld [vmem:[%s10845_s3 + $0xa8] sm:$0xff]  }
0x1746   : > { %8941 = vmatprep.subr.bf16.mxu1 %v9611_v18 }
0x1749   : > { %8942 = vmatpush3.bf16.msra.mxu1 %v9400_v36  ;;  %v9413_v36 = vld [vmem:[%s10845_s3 + $0xb0] sm:$0xff]  }
0x174a   : > { %8943 = vmatprep.subr.bf16.mxu1 %v9611_v18 }
0x174d   : > { %8944 = vmatpush3.bf16.msra.mxu1 %v9401_v37  ;;  %v9414_v37 = vld [vmem:[%s10845_s3 + $0xb8] sm:$0xff]   ;;  %s10855_s3 = sld [smem:[#allocation25_spill]] }
0x174e   : > { %8945 = vmatprep.subr.bf16.mxu1 %v9611_v18 }
0x1751   : > { %8946 = vmatpush3.bf16.msra.mxu1 %v9402_v38 }
0x1752   : > { %8947 = vmatprep.subr.bf16.mxu1 %v9611_v18 }
0x1755   : > { %8948 = vmatpush3.bf16.msra.mxu1 %v9403_v39 }
0x1756   : > { %8949 = vmatprep.subr.bf16.mxu1 %v9611_v18 }
0x1759   : > { %8950 = vmatpush3.bf16.msra.mxu1 %v9404_v40 }
0x175a   : > { %8951 = vmatprep.subr.bf16.mxu1 %v9611_v18 }
0x175d   : > { %8952 = vmatpush3.bf16.msra.mxu1 %v9405_v41 }
0x175e   : > { %8953 = vmatprep.subr.bf16.mxu1 %v9611_v18 }
0x1761   : > { %8954 = vmatpush3.bf16.msra.mxu1 %v9406_v42 }
0x1762   : > { %8979 = vmatprep.subr.mxu1 %v9611_v18 }
0x1764   : > { %8956 = vmatmul.mubr.bf16.vlgmr.msra.gmra.mrb[80].mxu1 %v10368_v12 }
0x1765   : > { %8981 = vmatprep.mubr.msk.f32.mxu1 %vm9612_vm0, %v9611_v18 }
0x1797   : > { %v10525_v43 = vpop.f32.mrb[60].mxu1 }
0x1798   : > { %v8760_v44 = vpop.f32.mrb[61].mxu1  ;;  %v4918_v31 = vpack.c.bf16 %v10525_v43, %v10525_v43 }
0x17b7   : > { %v5027_v46 = vpop.f32.mrb[64].mxu1 }
0x17b8   : > { %v5028_v47 = vadd.f32 %v7665_v45, %v5027_v46  ;;  %v8779_v48 = vpop.f32.mrb[65].mxu1 }
0x17b9   : > { %v5030_v49 = vpop.f32.mrb[66].mxu1 }
0x17ba   : > { %v8780_v50 = vpop.f32.mrb[67].mxu1  ;;  %8824 = vmatmul.mubr.msk.f32.vlgmr.msra.gmra.mrb[42].mxu0 %vm2269_vm1, %v5028_v47  ;;  %v7775_v47 = vld [vmem:[%s10850_s2 + $0x2] ss:$0 sm:$0xff]  ;;  %s10854_s2 = sld [smem:[#allocation28_spill]] }
0x17bb   : > { %8828 = vmatprep.mubr.msk.f32.mxu0 %vm9612_vm0, %v9611_v18  ;;  %v7749_v49 = vld [vmem:[%s10851_s16 + $0x2] ss:$0 sm:$0xff] }
0x17d7   : > { %v5253_v52 = vpop.f32.mrb[68].mxu1 }
0x17d8   : > { %v5254_v53 = vadd.f32 %v7717_v51, %v5253_v52  ;;  %v8819_v54 = vpop.f32.mrb[69].mxu1  ;;  %v7801_v52 = vld [vmem:[%s10852_s5 + $0x2] ss:$0 sm:$0xff] }
0x17d9   : > { %v5256_v55 = vpop.f32.mrb[70].mxu1 }
0x17da   : > { %v8820_v56 = vpop.f32.mrb[71].mxu1  ;;  %8827 = vmatpush3.msra.mxu0 %v5254_v53 }
0x17db   : > { %8831 = vmatprep.subr.bf16.mxu0 %v9611_v18 }
0x17f7   : > { %v10533_v57 = vpop.f32.mrb[72].mxu1 }
0x17f8   : > { %v8861_v58 = vpop.f32.mrb[73].mxu1  ;;  %v5623_v55 = vadd.f32 %v7749_v49, %v10533_v57 }
0x17f9   : > { %v5625_v59 = vpop.f32.mrb[74].mxu1 }
0x17fa   : > { %v8862_v61 = vpop.f32.mrb[75].mxu1 }
0x1817   : > { %v10535_v63 = vpop.f32.mrb[76].mxu1 }
0x1818   : > { %v8901_v0 = vpop.f32.mrb[77].mxu1  ;;  %v5849_v56 = vadd.f32 %v7801_v52, %v10535_v63 }
0x1819   : > { %v5851_v60 = vpop.f32.mrb[78].mxu1 }
0x181a   : > { %v8902_v1 = vpop.f32.mrb[79].mxu1 }
0x1837   : > { %v6285_v3 = vpop.f32.mrb[80].mxu1 }
0x1838   : > { %v6286_v4 = vadd.f32 %v7858_v2, %v6285_v3  ;;  %v8957_v5 = vpop.f32.mrb[81].mxu1 }
0x1839   : > { %v6288_v6 = vpop.f32.mrb[82].mxu1 }
0x183a   : > { %v8958_v7 = vpop.f32.mrb[83].mxu1  ;;  %8980 = vmatpush3.xpose.msk.msra.mxu1 %vm2269_vm1, %v6286_v4  ;;  %v7813_v4 = vld [vmem:[%s10853_s8 + $0x8] sm:$0xf] }
0x183b   : > { %8984 = vmatprep.subr.mxu1 %v9611_v18  ;;  %v6022_v7 = vsel %vm2939_vm2, %v7813_v4, 0 }
0x188d   : > { %v5331_v8 = vpop.f32.mrb[42].mxu0 }
0x188e   : > { %v5335_v9 = vmul.f32 0.35355338, %v5331_v8  ;;  %v8825_v11 = vpop.f32.mrb[43].mxu0 }
0x1890   : > { %v5336_v13 = vsel %vm2269_vm1, %v5335_v9, -inf }
0x1891   : > { %5337 = vmax.xlane.f32.xlu0 %v5336_v13 }
0x191e   : > { %v5338_v14 = vpop.xlane.xlu0 %5337 }
0x191f   : > { %v5339_v15 = vsub.f32 %v5335_v9, %v5338_v14  ;;  %v9415_v9 = vld [vmem:[%s10844_s22 + $0xc0] sm:$0xff]   ;;  %v9416_v14 = vld [vmem:[%s10844_s22 + $0xc8] sm:$0xff]  }
0x1921   : > { %v5340_v16 = vmul.f32 1.442695, %v5339_v15  ;;  %v9417_v15 = vld [vmem:[%s10844_s22 + $0xd0] sm:$0xff]  }
0x1923   : > { %9487 = vpow2.f32 %v5340_v16  ;;  %v9418_v16 = vld [vmem:[%s10844_s22 + $0xd8] sm:$0xff]  }
0x192d   : > { %v9488_v17 = vpop.eup %9487 }
0x192e   : > { %v5342_v19 = vsel %vm2269_vm1, %v9488_v17, 0.0 }
0x192f   : > { %5343 = vadd.xlane.f32.xlu1 %v5342_v19  ;;  %v9420_v19 = vld [vmem:[%s10844_s22 + $0xe8] sm:$0xff]  }
0x19bc   : > { %v5344_v20 = vpop.xlane.xlu1 %5343 }
0x19bd   : > { %9489 = vrcp.f32 %v5344_v20  ;;  %v9421_v20 = vld [vmem:[%s10844_s22 + $0xf0] sm:$0xff]  }
0x19c7   : > { %v9490_v21 = vpop.eup %9489 }
0x19c8   : > { %v5346_v23 = vmul.f32 %v9490_v21, %v9488_v17  ;;  %v9419_v17 = vld [vmem:[%s10844_s22 + $0xe0] sm:$0xff]   ;;  %v9422_v21 = vld [vmem:[%s10844_s22 + $0xf8] sm:$0xff]  }
0x19ca   : > { %8829 = vmatmul.mubr.msk.f32.vlgmr.msra.gmra.mrb[64].mxu0 %vm2269_vm1, %v5346_v23  ;;  %v9423_v23 = vld [vmem:[%s10849_s23 + $0xc0] sm:$0xff]  }
0x19cb   : > { %8833 = vmatprep.mubr.msk.bf16.mxu0 %vm9612_vm0, %v9611_v18  ;;  %8832 = vmatpush3.bf16.msra.mxu0 %v5427_v25  ;;  %v9425_v25 = vld [vmem:[%s10849_s23 + $0xd0] sm:$0xff]  }
0x19cc   : > { %8837 = vmatprep.subr.bf16.mxu0 %v9611_v18 }
0x1a9d   : > { %v5416_v27 = vpop.f32.mrb[64].mxu0 }
0x1a9e   : > { %v5420_v62 = vpack.c.bf16 %v5416_v27, %v5416_v27  ;;  %v8830_v28 = vpop.f32.mrb[65].mxu0  ;;  %v9427_v27 = vld [vmem:[%s10849_s23 + $0xe0] sm:$0xff]  }
0x1a9f   : > { %v9429_v28 = vld [vmem:[%s10849_s23 + $0xf0] sm:$0xff]  }
0x1aa0   : > { %8834 = vmatmul.mubr.msk.bf16.vlgmr.msra.gmra.mrb[68].mxu0 %vm2269_vm1, %v5420_v62  ;;  %v9428_v62 = vld [vmem:[%s10849_s23 + $0xe8] sm:$0xff]  }
0x1aa1   : > { %8838 = vmatpush3.bf16.msra.mxu0 %v5473_v29  ;;  %8839 = vmatprep.mubr.msk.bf16.mxu0 %vm9612_vm0, %v9611_v18  ;;  %v9430_v29 = vld [vmem:[%s10849_s23 + $0xf8] sm:$0xff]  }
0x1aa2   : > { %8863 = vmatprep.subr.bf16.mxu0 %v9611_v18 }
0x1aa8   : > { %8840 = vmatmul.mubr.msk.bf16.vlgmr.msra.gmra.mrb[72].mxu0 %vm2269_vm1, %v4918_v31 }
0x1aa9   : > { %8864 = vmatpush3.bf16.msra.mxu0 %v9407_v30  ;;  %8879 = vmatprep.mubr.msk.bf16.mxu0 %vm9612_vm0, %v9611_v18 }
0x1aaa   : > { %8865 = vmatprep.subr.bf16.mxu0 %v9611_v18 }
0x1aad   : > { %8866 = vmatpush3.bf16.msra.mxu0 %v9408_v22 }
0x1aae   : > { %8867 = vmatprep.subr.bf16.mxu0 %v9611_v18 }
0x1ab1   : > { %8868 = vmatpush3.bf16.msra.mxu0 %v9409_v32 }
0x1ab2   : > { %8869 = vmatprep.subr.bf16.mxu0 %v9611_v18 }
0x1ab5   : > { %8870 = vmatpush3.bf16.msra.mxu0 %v9410_v33 }
0x1ab6   : > { %8871 = vmatprep.subr.bf16.mxu0 %v9611_v18 }
0x1ab9   : > { %8872 = vmatpush3.bf16.msra.mxu0 %v9411_v34  ;;  %v7832_v34 = vld [vmem:[%s10851_s16 + $0x3] ss:$0 sm:$0xff] }
0x1aba   : > { %8873 = vmatprep.subr.bf16.mxu0 %v9611_v18 }
0x1abd   : > { %8874 = vmatpush3.bf16.msra.mxu0 %v9412_v35 }
0x1abe   : > { %8875 = vmatprep.subr.bf16.mxu0 %v9611_v18 }
0x1ac1   : > { %8876 = vmatpush3.bf16.msra.mxu0 %v9413_v36 }
0x1ac2   : > { %8877 = vmatprep.subr.bf16.mxu0 %v9611_v18 }
0x1ac5   : > { %8878 = vmatpush3.bf16.msra.mxu0 %v9414_v37 }
0x1ac6   : > { %8903 = vmatprep.subr.mxu0 %v9611_v18 }
0x1ac8   : > { %8880 = vmatmul.mubr.bf16.vlgmr.msra.gmra.mrb[76].mxu0 %v10368_v12 }
0x1ac9   : > { %8905 = vmatprep.mubr.msk.f32.mxu0 %vm9612_vm0, %v9611_v18 }
0x1b73   : > { %v5463_v38 = vpop.f32.mrb[68].mxu0 }
0x1b74   : > { %v8835_v39 = vpop.f32.mrb[69].mxu0 }
0x1b75   : > { %v5466_v40 = vpop.f32.mrb[70].mxu0 }
0x1b76   : > { %v8836_v41 = vpop.f32.mrb[71].mxu0 }
0x1b7b   : > { %v5509_v42 = vpop.f32.mrb[72].mxu0 }
0x1b7c   : > { %v10578_v43 = vadd.f32 %v5509_v42, %v5463_v38  ;;  %v8841_v44 = vpop.f32.mrb[73].mxu0 }
0x1b7d   : > { %v5512_v45 = vpop.f32.mrb[74].mxu0 }
0x1b7e   : > { %v8842_v46 = vpop.f32.mrb[75].mxu0 }
0x1b9b   : > { %v5735_v48 = vpop.f32.mrb[76].mxu0 }
0x1b9c   : > { %v5736_v50 = vadd.f32 %v7775_v47, %v5735_v48  ;;  %v8881_v51 = vpop.f32.mrb[77].mxu0 }
0x1b9d   : > { %v5738_v53 = vpop.f32.mrb[78].mxu0 }
0x1b9e   : > { %v8882_v54 = vpop.f32.mrb[79].mxu0  ;;  %8904 = vmatpush3.xpose.msk.msra.mxu0 %vm2269_vm1, %v5736_v50 }
0x1b9f   : > { %8908 = vmatprep.subr.mxu0 %v9611_v18 }
0x1ba1   : > { %8906 = vmatmul.mubr.msk.f32.vlgmr.msra.gmra.mrb[66].mxu0 %vm2269_vm1, %v5623_v55 }
0x1ba2   : > { %8909 = vmatpush3.msra.mxu0 %v5849_v56  ;;  %8910 = vmatprep.mubr.msk.f32.mxu0 %vm9612_vm0, %v9611_v18 }
0x1ba3   : > { %8913 = vmatprep.subr.bf16.mxu0 %v9611_v18 }
0x1c74   : > { %v5926_v58 = vpop.f32.mrb[66].mxu0 }
0x1c75   : > { %v5930_v59 = vmul.f32 0.35355338, %v5926_v58  ;;  %v8907_v61 = vpop.f32.mrb[67].mxu0  ;;  %v7896_v58 = vld [vmem:[%s10853_s8 + $0xc] sm:$0xf]  ;;  %s10859_s8 = sld [smem:[#allocation29_spill]] }
0x1c77   : > { %v5931_v0 = vsel %vm2269_vm1, %v5930_v59, -inf }
0x1c78   : > { %5932 = vmax.xlane.f32.xlu0 %v5931_v0 }
0x1d05   : > { %v5933_v57 = vpop.xlane.xlu0 %5932 }
0x1d06   : > { %v5934_v60 = vsub.f32 %v5930_v59, %v5933_v57  ;;  %v6572_v59 = vsel %vm2939_vm2, %v7896_v58, 0 }
0x1d08   : > { %v5935_v1 = vmul.f32 1.442695, %v5934_v60  ;;  %v9431_v60 = vld [vmem:[%s10854_s2] sm:$0xff]  }
0x1d0a   : > { %9491 = vpow2.f32 %v5935_v1 }
0x1d14   : > { %v9492_v63 = vpop.eup %9491 }
0x1d15   : > { %v5937_v2 = vsel %vm2269_vm1, %v9492_v63, 0.0 }
0x1d16   : > { %5938 = vadd.xlane.f32.xlu1 %v5937_v2 }
0x1da3   : > { %v5939_v3 = vpop.xlane.xlu1 %5938 }
0x1da4   : > { %9493 = vrcp.f32 %v5939_v3 }
0x1dae   : > { %v9494_v5 = vpop.eup %9493 }
0x1daf   : > { %v5941_v6 = vmul.f32 %v9494_v5, %v9492_v63  ;;  %v7898_v63 = vld [vmem:[%s10855_s3] ss:$0 sm:$0xff]  ;;  %s10856_s3 = sld [smem:[#allocation30_spill]] }
0x1db1   : > { %8911 = vmatmul.mubr.msk.f32.vlgmr.msra.gmra.mrb[80].mxu0 %vm2269_vm1, %v5941_v6 }
0x1db2   : > { %8914 = vmatpush3.bf16.msra.mxu0 %v6022_v7  ;;  %8915 = vmatprep.mubr.msk.bf16.mxu0 %vm9612_vm0, %v9611_v18 }
0x1db3   : > { %8919 = vmatprep.subr.bf16.mxu0 %v9611_v18 }
0x1e84   : > { %v6011_v8 = vpop.f32.mrb[80].mxu0 }
0x1e85   : > { %v6015_v11 = vpack.c.bf16 %v6011_v8, %v6011_v8  ;;  %v8912_v13 = vpop.f32.mrb[81].mxu0 }
0x1e86   : > { %v9434_v13 = vld [vmem:[%s10854_s2 + $0x18] sm:$0xff]  }
0x1e87   : > { %8916 = vmatmul.mubr.msk.bf16.vlgmr.msra.gmra.mrb[84].mxu0 %vm2269_vm1, %v6015_v11  ;;  %v9433_v11 = vld [vmem:[%s10854_s2 + $0x10] sm:$0xff]  }
0x1e88   : > { %8920 = vmatpush3.bf16.msra.mxu0 %v9415_v9  ;;  %8935 = vmatprep.mubr.msk.bf16.mxu0 %vm9612_vm0, %v9611_v18  ;;  %v9432_v9 = vld [vmem:[%s10854_s2 + $0x8] sm:$0xff]  }
0x1e89   : > { %8921 = vmatprep.subr.bf16.mxu0 %v9611_v18 }
0x1e8c   : > { %8922 = vmatpush3.bf16.msra.mxu0 %v9416_v14  ;;  %v9435_v14 = vld [vmem:[%s10854_s2 + $0x20] sm:$0xff]  }
0x1e8d   : > { %8923 = vmatprep.subr.bf16.mxu0 %v9611_v18 }
0x1e90   : > { %8924 = vmatpush3.bf16.msra.mxu0 %v9417_v15  ;;  %v9437_v15 = vld [vmem:[%s10854_s2 + $0x30] sm:$0xff]  }
0x1e91   : > { %8925 = vmatprep.subr.bf16.mxu0 %v9611_v18 }
0x1e94   : > { %8926 = vmatpush3.bf16.msra.mxu0 %v9418_v16  ;;  %v9438_v16 = vld [vmem:[%s10854_s2 + $0x38] sm:$0xff]  }
0x1e95   : > { %8927 = vmatprep.subr.bf16.mxu0 %v9611_v18 }
0x1e98   : > { %8928 = vmatpush3.bf16.msra.mxu0 %v9419_v17  ;;  %v9439_v17 = vld [vmem:[%s10856_s3] sm:$0xff]  }
0x1e99   : > { %8929 = vmatprep.subr.bf16.mxu0 %v9611_v18 }
0x1e9c   : > { %8930 = vmatpush3.bf16.msra.mxu0 %v9420_v19  ;;  %v9440_v19 = vld [vmem:[%s10856_s3 + $0x8] sm:$0xff]  }
0x1e9d   : > { %8931 = vmatprep.subr.bf16.mxu0 %v9611_v18 }
0x1ea0   : > { %8932 = vmatpush3.bf16.msra.mxu0 %v9421_v20  ;;  %v9441_v20 = vld [vmem:[%s10856_s3 + $0x10] sm:$0xff]  }
0x1ea1   : > { %8933 = vmatprep.subr.bf16.mxu0 %v9611_v18 }
0x1ea4   : > { %8934 = vmatpush3.bf16.msra.mxu0 %v9422_v21  ;;  %v9442_v21 = vld [vmem:[%s10856_s3 + $0x18] sm:$0xff]  }
0x1ea5   : > { %8959 = vmatprep.subr.bf16.mxu0 %v9611_v18 }
0x1ea7   : > { %8936 = vmatmul.mubr.bf16.vlgmr.msra.gmra.mrb[88].mxu0 %v10368_v12 }
0x1ea8   : > { %8960 = vmatpush3.bf16.msra.mxu0 %v9423_v23  ;;  %8975 = vmatprep.mubr.msk.bf16.mxu0 %vm9612_vm0, %v9611_v18  ;;  %v9443_v23 = vld [vmem:[%s10856_s3 + $0x20] sm:$0xff]  }
0x1ea9   : > { %8961 = vmatprep.subr.bf16.mxu0 %v9611_v18 }
0x1eac   : > { %8962 = vmatpush3.bf16.msra.mxu0 %v9424_v24  ;;  %v9444_v24 = vld [vmem:[%s10856_s3 + $0x28] sm:$0xff]  }
0x1ead   : > { %8963 = vmatprep.subr.bf16.mxu0 %v9611_v18 }
0x1eb0   : > { %8964 = vmatpush3.bf16.msra.mxu0 %v9425_v25 }
0x1eb1   : > { %8965 = vmatprep.subr.bf16.mxu0 %v9611_v18 }
0x1eb4   : > { %8966 = vmatpush3.bf16.msra.mxu0 %v9426_v26 }
0x1eb5   : > { %8967 = vmatprep.subr.bf16.mxu0 %v9611_v18 }
0x1eb8   : > { %8968 = vmatpush3.bf16.msra.mxu0 %v9427_v27 }
0x1eb9   : > { %8969 = vmatprep.subr.bf16.mxu0 %v9611_v18 }
0x1ebc   : > { %8970 = vmatpush3.bf16.msra.mxu0 %v9428_v62 }
0x1ebd   : > { %8971 = vmatprep.subr.bf16.mxu0 %v9611_v18 }
0x1ec0   : > { %8972 = vmatpush3.bf16.msra.mxu0 %v9429_v28 }
0x1ec1   : > { %8973 = vmatprep.subr.bf16.mxu0 %v9611_v18 }
0x1ec4   : > { %8974 = vmatpush3.bf16.msra.mxu0 %v9430_v29 }
0x1ec5   : > { %9015 = vmatprep.subr.bf16.mxu0 %v9611_v18 }
0x1ec7   : > { %8976 = vmatmul.mubr.bf16.vlgmr.msra.gmra.mrb[92].mxu0 %v10368_v12  ;;  %v7884_v12 = vld [vmem:[%s10852_s5 + $0x3] ss:$0 sm:$0xff]  ;;  %s10858_s5 = sld [smem:[#allocation27_spill]] }
0x1ec8   : > { %9031 = vmatprep.mubr.msk.bf16.mxu0 %vm9612_vm0, %v9611_v18  ;;  %9016 = vmatpush3.bf16.msra.mxu0 %v9439_v17 }
0x1ec9   : > { %9017 = vmatprep.subr.bf16.mxu0 %v9611_v18 }
0x1ecc   : > { %9018 = vmatpush3.bf16.msra.mxu0 %v9440_v19 }
0x1ecd   : > { %9019 = vmatprep.subr.bf16.mxu0 %v9611_v18 }
0x1ed0   : > { %9020 = vmatpush3.bf16.msra.mxu0 %v9441_v20 }
0x1ed1   : > { %9021 = vmatprep.subr.bf16.mxu0 %v9611_v18 }
0x1ed4   : > { %9022 = vmatpush3.bf16.msra.mxu0 %v9442_v21 }
0x1ed5   : > { %9023 = vmatprep.subr.bf16.mxu0 %v9611_v18 }
0x1ed8   : > { %9024 = vmatpush3.bf16.msra.mxu0 %v9443_v23 }
0x1ed9   : > { %9025 = vmatprep.subr.bf16.mxu0 %v9611_v18 }
0x1edc   : > { %9026 = vmatpush3.bf16.msra.mxu0 %v9444_v24 }
0x1edd   : > { %9027 = vmatprep.subr.bf16.mxu0 %v9611_v18 }
0x1f5a   : > { %v6058_v30 = vpop.f32.mrb[84].mxu0 }
0x1f5b   : > { %v6064_v31 = vadd.f32 %v6058_v30, %v10578_v43  ;;  %v8917_v22 = vpop.f32.mrb[85].mxu0 }
0x1f5c   : > { %v6061_v32 = vpop.f32.mrb[86].mxu0 }
0x1f5d   : > { %v8918_v33 = vpop.f32.mrb[87].mxu0 }
0x1f7a   : > { %v6172_v35 = vpop.f32.mrb[88].mxu0 }
0x1f7b   : > { %v6173_v36 = vadd.f32 %v7832_v34, %v6172_v35  ;;  %v8937_v37 = vpop.f32.mrb[89].mxu0  ;;  %v7900_v34 = vld [vmem:[%s10858_s5] ss:$0 sm:$0xff]  ;;  %s10861_s5 = sld [smem:[#allocation34_spill]] }
0x1f7c   : > { %v6175_v38 = vpop.f32.mrb[90].mxu0 }
0x1f7d   : > { %v8938_v39 = vpop.f32.mrb[91].mxu0  ;;  %8982 = vmatmul.mubr.msk.f32.vlgmr.msra.gmra.mrb[62].mxu1 %vm2269_vm1, %v6173_v36  ;;  %v9445_v38 = vld [vmem:[%s10856_s3 + $0x30] sm:$0xff]  }
0x1f7e   : > { %8986 = vmatprep.mubr.msk.f32.mxu1 %vm9612_vm0, %v9611_v18  ;;  %9028 = vmatpush3.bf16.msra.mxu0 %v9445_v38  ;;  %v9446_v39 = vld [vmem:[%s10856_s3 + $0x38] sm:$0xff]  }
0x1f7f   : > { %9029 = vmatprep.subr.bf16.mxu0 %v9611_v18 }
0x1f82   : > { %9030 = vmatpush3.bf16.msra.mxu0 %v9446_v39 }
0x1f83   : > { %9055 = vmatprep.subr.bf16.mxu0 %v9611_v18 }
0x1f9a   : > { %v6398_v40 = vpop.f32.mrb[92].mxu0 }
0x1f9b   : > { %v6399_v41 = vadd.f32 %v7884_v12, %v6398_v40  ;;  %v8977_v42 = vpop.f32.mrb[93].mxu0  ;;  %v7901_v12 = vld [vmem:[%s10859_s8] ss:$0 sm:$0xff]  ;;  %s10864_s8 = sld [smem:[#allocation33_spill]] }
0x1f9c   : > { %v6401_v44 = vpop.f32.mrb[94].mxu0 }
0x1f9d   : > { %v8978_v43 = vpop.f32.mrb[95].mxu0  ;;  %8985 = vmatpush3.msra.mxu1 %v6399_v41 }
0x1f9e   : > { %8989 = vmatprep.subr.bf16.mxu1 %v9611_v18 }
0x1fa1   : > { %v7920_v19 = vld [vmem:[%s10864_s8] ss:$0 sm:$0xff] }
0x2050   : > { %v6476_v45 = vpop.f32.mrb[62].mxu1 }
0x2051   : > { %v6480_v46 = vmul.f32 0.35355338, %v6476_v45  ;;  %v8983_v47 = vpop.f32.mrb[63].mxu1 }
0x2052   : > { %v9613_v47 = vmov 0  }
0x2053   : > { %v6481_v48 = vsel %vm2269_vm1, %v6480_v46, -inf  ;;  %9158 = vset.pattern.permute.xlu0 %v9613_v47 }
0x2054   : > { %6482 = vmax.xlane.f32.xlu0 %v6481_v48  ;;  %v7910_v48 = vld [vmem:[%s10860_s9] ss:$0 sm:$0xff]  ;;  %s10863_s9 = sld [smem:[#allocation32_spill]] }
0x20e1   : > { %v6483_v49 = vpop.xlane.xlu0 %6482 }
0x20e2   : > { %v6484_v50 = vsub.f32 %v6480_v46, %v6483_v49 }
0x20e4   : > { %v6485_v51 = vmul.f32 1.442695, %v6484_v50 }
0x20e6   : > { %9495 = vpow2.f32 %v6485_v51 }
0x20f0   : > { %v9496_v52 = vpop.eup %9495 }
0x20f1   : > { %v6487_v53 = vsel %vm2269_vm1, %v9496_v52, 0.0 }
0x20f2   : > { %6488 = vadd.xlane.f32.xlu1 %v6487_v53 }
0x217f   : > { %v6489_v54 = vpop.xlane.xlu1 %6488 }
0x2180   : > { %9497 = vrcp.f32 %v6489_v54 }
0x218a   : > { %v9498_v55 = vpop.eup %9497 }
0x218b   : > { %v6491_v56 = vmul.f32 %v9498_v55, %v9496_v52 }
0x218d   : > { %8987 = vmatmul.mubr.msk.f32.vlgmr.msra.gmra.mrb[84].mxu1 %vm2269_vm1, %v6491_v56  ;;  %v6908_v56 = vld [vmem:[%s10861_s5] sm:$0xff]  ;;  %s1229_s5 = sand.u32 1, %s9560_s10  }
0x218e   : > { %8991 = vmatprep.mubr.msk.bf16.mxu1 %vm9612_vm0, %v9611_v18  ;;  %8990 = vmatpush3.bf16.msra.mxu1 %v6572_v59  ;;  %s1230_s8 = scalar_lea.vmem [#allocation2], %s1229_s5 }
0x218f   : > { %8995 = vmatprep.subr.bf16.mxu1 %v9611_v18 }
0x2260   : > { %v6561_v61 = vpop.f32.mrb[84].mxu1 }
0x2261   : > { %v6565_v0 = vpack.c.bf16 %v6561_v61, %v6561_v61  ;;  %v8988_v57 = vpop.f32.mrb[85].mxu1 }
0x2263   : > { %8992 = vmatmul.mubr.msk.bf16.vlgmr.msra.gmra.mrb[88].mxu1 %vm2269_vm1, %v6565_v0 }
0x2264   : > { %9011 = vmatprep.mubr.msk.bf16.mxu1 %vm9612_vm0, %v9611_v18  ;;  %8996 = vmatpush3.bf16.msra.mxu1 %v9431_v60 }
0x2265   : > { %8997 = vmatprep.subr.bf16.mxu1 %v9611_v18 }
0x2268   : > { %8998 = vmatpush3.bf16.msra.mxu1 %v9432_v9 }
0x2269   : > { %8999 = vmatprep.subr.bf16.mxu1 %v9611_v18 }
0x226c   : > { %9000 = vmatpush3.bf16.msra.mxu1 %v9433_v11 }
0x226d   : > { %9001 = vmatprep.subr.bf16.mxu1 %v9611_v18 }
0x2270   : > { %9002 = vmatpush3.bf16.msra.mxu1 %v9434_v13 }
0x2271   : > { %9003 = vmatprep.subr.bf16.mxu1 %v9611_v18 }
0x2274   : > { %9004 = vmatpush3.bf16.msra.mxu1 %v9435_v14 }
0x2275   : > { %9005 = vmatprep.subr.bf16.mxu1 %v9611_v18 }
0x2336   : > { %v6608_v1 = vpop.f32.mrb[88].mxu1 }
0x2337   : > { %v6614_v2 = vadd.f32 %v6608_v1, %v6064_v31  ;;  %v8993_v3 = vpop.f32.mrb[89].mxu1 }
0x2338   : > { %v6611_v4 = vpop.f32.mrb[90].mxu1  ;;  %v9456_v3 = vld [vmem:[%s9818_s20 + $0x8] sm:$0xff]  }
0x2339   : > { %v6622_v5 = vadd.f32 %v7898_v63, %v6614_v2  ;;  %v8994_v6 = vpop.f32.mrb[91].mxu1  ;;  %v9455_v2 = vld [vmem:[%s9818_s20] sm:$0xff]   ;;  %v9457_v4 = vld [vmem:[%s9818_s20 + $0x10] sm:$0xff]  }
0x233b   : > { %v6623_v7 = vadd.f32 %v6622_v5, %v10363_v10  ;;  %v9436_v10 = vld [vmem:[%s10854_s2 + $0x28] sm:$0xff]   ;;  %s10857_s2 = sld [smem:[#allocation26_spill]]  ;;  %v9458_v5 = vld [vmem:[%s9818_s20 + $0x18] sm:$0xff]  }
0x233c   : > { %9006 = vmatpush3.bf16.msra.mxu1 %v9436_v10 }
0x233d   : > { %6626 = vadd.xlane.f32.xlu0 %v6623_v7  ;;  %v6629_v8 = vmul.f32 %v6623_v7, %v6623_v7  ;;  %9007 = vmatprep.subr.bf16.mxu1 %v9611_v18 }
0x233f   : > { %6630 = vadd.xlane.f32.xlu1 %v6629_v8 }
0x2340   : > { %9008 = vmatpush3.bf16.msra.mxu1 %v9437_v15 }
0x2341   : > { %9009 = vmatprep.subr.bf16.mxu1 %v9611_v18  ;;  %v7899_v32 = vld [vmem:[%s10857_s2] ss:$0 sm:$0xff]  ;;  %s10862_s2 = sld [smem:[#allocation35_spill]] }
0x2344   : > { %9010 = vmatpush3.bf16.msra.mxu1 %v9438_v16  ;;  %v7919_v16 = vld [vmem:[%s10863_s9] ss:$0 sm:$0xff]  ;;  %s7937_s9 = sshll.u32 %s9851_s0, 4  ;;  %s9614_s0 = smov [#allocation2]  }
0x2345   : > { %9035 = vmatprep.subr.bf16.mxu1 %v9611_v18  ;;  %s10738_s3 = scalar_lea.hbm %s9828_s4, %s7937_s9  ;;  %s9510_s13 = sshll.u32 %s9614_s0, 4  ;;  %s9511_s13 = int_to_ptr.vmem [resolvable:$false] %s9510_s13 }
0x2346   : > { %s9512_s14 = scalar_lea.vmem %s9511_s13, 32 }
0x2347   : > { %v9447_v58 = vld [vmem:[%s10862_s2] sm:$0xff]   ;;  %v9448_v59 = vld [vmem:[%s10862_s2 + $0x8] sm:$0xff]   ;;  %v9449_v61 = vld [vmem:[%s10862_s2 + $0x10] sm:$0xff]  }
0x2348   : > { %v9450_v0 = vld [vmem:[%s10862_s2 + $0x18] sm:$0xff]   ;;  %v9451_v57 = vld [vmem:[%s10862_s2 + $0x20] sm:$0xff]   ;;  %v9452_v60 = vld [vmem:[%s10862_s2 + $0x28] sm:$0xff]  }
0x2349   : > { %v9453_v1 = vld [vmem:[%s10862_s2 + $0x30] sm:$0xff]   ;;  %v9454_v63 = vld [vmem:[%s10862_s2 + $0x38] sm:$0xff]   ;;  %s7148_s2 = sshll.u32 %s1230_s8, 4  ;;  %s10740_s2 = int_to_ptr.vmem [resolvable:$true] %s7148_s2 }
0x234a   : > { %s9506_s12 = scalar_lea.vmem %s10740_s2, 16  ;;  %p9513_p0 = scmp.lt.s32.totalorder %s10740_s2, %s9511_s13 }
0x234b   : > { %p9507_p11 = scmp.ne.s32.totalorder %s10740_s2, %s9506_s12  ;;  %p9514_p1 = scmp.lt.s32.totalorder %s9512_s14, %s9506_s12 }
0x234d   : > { %p9508_p12 = pnand %p9507_p11, %p9868_p5  ;;  %p9515_p2 = por %p9514_p1, %p9513_p0 }
0x234f   : > { %p9509_p13 = pneg %p9508_p12 }
0x2351   : > { %p9516_p3 = pnand %p9515_p2, %p9509_p13 }
0x23ca   : > { %v6627_v25 = vpop.xlane.xlu0 %6626 }
0x23cb   : > { %v6628_v26 = vmul.f32 0.03125, %v6627_v25 }
0x23cc   : > { %v6631_v27 = vpop.xlane.xlu1 %6630 }
0x23cd   : > { %v6633_v62 = vmul.f32 %v6628_v26, %v6628_v26  ;;  %v6632_v28 = vmul.f32 0.03125, %v6631_v27  ;;  %v6635_v31 = vsub.f32 %v6623_v7, %v6628_v26 }
0x23cf   : > { %v6634_v29 = vsub.f32 %v6632_v28, %v6633_v62 }
0x23d1   : > { %v6636_v30 = vadd.f32 1e-05, %v6634_v29 }
0x23d3   : > { %9499 = vrsqrt.f32 %v6636_v30 }
0x23dd   : > { %v9500_v22 = vpop.eup %9499 }
0x23de   : > { %v6638_v33 = vmul.f32 %v9500_v22, %v6635_v31  ;;  %v9459_v31 = vld [vmem:[%s9818_s20 + $0x20] sm:$0xff]   ;;  %v9460_v22 = vld [vmem:[%s9818_s20 + $0x28] sm:$0xff]  }
0x23e0   : > { %v6645_v35 = vmul.f32 %v7899_v32, %v6638_v33  ;;  %v9461_v32 = vld [vmem:[%s9818_s20 + $0x30] sm:$0xff]   ;;  %v9462_v33 = vld [vmem:[%s9818_s20 + $0x38] sm:$0xff]  }
0x23e2   : > { %v6652_v36 = vadd.f32 %v7900_v34, %v6645_v35  ;;  %v6938_v34 = vld [vmem:[%s10865_s6] sm:$0x1]  ;;  %s7136_s6 = scalar_lea.sflag [#allocation3], %s1229_s5 }
0x23e4   : > { %v6653_v37 = vpack.c.bf16 %v6652_v36, %v6652_v36 }
0x23e6   : > { %9012 = vmatmul.mubr.bf16.vlgmr.msra.gmra.mrb[92].mxu1 %v6653_v37 }
0x23e7   : > { %9051 = vmatprep.mubr.msk.bf16.mxu1 %vm9612_vm0, %v9611_v18  ;;  %9036 = vmatpush3.bf16.msra.mxu1 %v9447_v58 }
0x23e8   : > { %9037 = vmatprep.subr.bf16.mxu1 %v9611_v18 }
0x23eb   : > { %9038 = vmatpush3.bf16.msra.mxu1 %v9448_v59 }
0x23ec   : > { %9039 = vmatprep.subr.bf16.mxu1 %v9611_v18 }
0x23ef   : > { %9040 = vmatpush3.bf16.msra.mxu1 %v9449_v61 }
0x23f0   : > { %9041 = vmatprep.subr.bf16.mxu1 %v9611_v18 }
0x23f3   : > { %9042 = vmatpush3.bf16.msra.mxu1 %v9450_v0 }
0x23f4   : > { %9043 = vmatprep.subr.bf16.mxu1 %v9611_v18 }
0x23f7   : > { %9044 = vmatpush3.bf16.msra.mxu1 %v9451_v57 }
0x23f8   : > { %9045 = vmatprep.subr.bf16.mxu1 %v9611_v18 }
0x23fb   : > { %9046 = vmatpush3.bf16.msra.mxu1 %v9452_v60 }
0x23fc   : > { %9047 = vmatprep.subr.bf16.mxu1 %v9611_v18 }
0x23ff   : > { %9048 = vmatpush3.bf16.msra.mxu1 %v9453_v1 }
0x2400   : > { %9049 = vmatprep.subr.bf16.mxu1 %v9611_v18 }
0x2403   : > { %9050 = vmatpush3.bf16.msra.mxu1 %v9454_v63 }
0x24b9   : > { %v6759_v40 = vpop.f32.mrb[92].mxu1 }
0x24ba   : > { %v6760_v41 = vadd.f32 %v7901_v12, %v6759_v40  ;;  %v9013_v42 = vpop.f32.mrb[93].mxu1 }
0x24bb   : > { %v6762_v44 = vpop.f32.mrb[94].mxu1 }
0x24bc   : > { %v6765_v43 = vmax.f32 %v6760_v41, 0.0  ;;  %v9014_v45 = vpop.f32.mrb[95].mxu1  ;;  %v7045_v41 = vld [vmem:[%s9823_s30] sm:$0x1] }
0x24be   : > { %v6766_v46 = vpack.c.bf16 %v6765_v43, %v6765_v43 }
0x24c0   : > { %9032 = vmatmul.mubr.bf16.vlgmr.msra.gmra.mrb[96].mxu0 %v6766_v46 }
0x24c1   : > { %9071 = vmatprep.mubr.msk.bf16.mxu0 %vm9612_vm0, %v9611_v18  ;;  %9056 = vmatpush3.bf16.msra.mxu0 %v9455_v2 }
0x24c2   : > { %9057 = vmatprep.subr.bf16.mxu0 %v9611_v18 }
0x24c5   : > { %9058 = vmatpush3.bf16.msra.mxu0 %v9456_v3 }
0x24c6   : > { %9059 = vmatprep.subr.bf16.mxu0 %v9611_v18 }
0x24c9   : > { %9060 = vmatpush3.bf16.msra.mxu0 %v9457_v4 }
0x24ca   : > { %9061 = vmatprep.subr.bf16.mxu0 %v9611_v18 }
0x24cd   : > { %9062 = vmatpush3.bf16.msra.mxu0 %v9458_v5 }
0x24ce   : > { %9063 = vmatprep.subr.bf16.mxu0 %v9611_v18 }
0x24d1   : > { %9064 = vmatpush3.bf16.msra.mxu0 %v9459_v31 }
0x24d2   : > { %9065 = vmatprep.subr.bf16.mxu0 %v9611_v18 }
0x24d5   : > { %9066 = vmatpush3.bf16.msra.mxu0 %v9460_v22 }
0x24d6   : > { %9067 = vmatprep.subr.bf16.mxu0 %v9611_v18 }
0x24d9   : > { %9068 = vmatpush3.bf16.msra.mxu0 %v9461_v32 }
0x24da   : > { %9069 = vmatprep.subr.bf16.mxu0 %v9611_v18 }
0x24dd   : > { %9070 = vmatpush3.bf16.msra.mxu0 %v9462_v33 }
0x2593   : > { %v6872_v49 = vpop.f32.mrb[96].mxu0 }
0x2594   : > { %v6873_v50 = vadd.f32 %v7910_v48, %v6872_v49  ;;  %v9033_v51 = vpop.f32.mrb[97].mxu0 }
0x2595   : > { %v6875_v52 = vpop.f32.mrb[98].mxu0 }
0x2596   : > { %v6878_v53 = vadd.f32 %v6873_v50, %v6652_v36  ;;  %v9034_v54 = vpop.f32.mrb[99].mxu0 }
0x2598   : > { %6881 = vadd.xlane.f32.xlu0 %v6878_v53  ;;  %v6884_v55 = vmul.f32 %v6878_v53, %v6878_v53 }
0x259a   : > { %6885 = vadd.xlane.f32.xlu1 %v6884_v55 }
0x25ae   : > { %6911 = vperm.xlu0 %9158, %v6908_v56  }
0x2625   : > { %v6882_v6 = vpop.xlane.xlu0 %6881 }
0x2626   : > { %v6883_v7 = vmul.f32 0.03125, %v6882_v6 }
0x2627   : > { %v6886_v8 = vpop.xlane.xlu1 %6885 }
0x2628   : > { %v6888_v9 = vmul.f32 %v6883_v7, %v6883_v7  ;;  %v6887_v11 = vmul.f32 0.03125, %v6886_v8  ;;  %v6890_v10 = vsub.f32 %v6878_v53, %v6883_v7 }
0x262a   : > { %v6889_v13 = vsub.f32 %v6887_v11, %v6888_v9 }
0x262c   : > { %v6891_v14 = vadd.f32 1e-05, %v6889_v13 }
0x262d   : > { %v6912_v21 = vpop.permute.xlu0 %6911 }
0x262e   : > { %9501 = vrsqrt.f32 %v6891_v14 }
0x2638   : > { %v9502_v15 = vpop.eup %9501 }
0x2639   : > { %v6893_v17 = vmul.f32 %v9502_v15, %v6890_v10 }
0x263b   : > { %v6900_v20 = vmul.f32 %v7919_v16, %v6893_v17 }
0x263d   : > { %v6907_v23 = vadd.f32 %v7920_v19, %v6900_v20 }
0x263f   : > { %v6914_v24 = vmul.f32 %v6912_v21, %v6907_v23 }
0x2641   : > { %v6915_v25 = vrot.slane %v6914_v24, 4 }
0x2643   : > { %v6916_v26 = vadd.f32 %v6915_v25, %v6914_v24 }
0x2645   : > { %v6917_v27 = vrot.slane %v6916_v26, 2 }
0x2647   : > { %v6918_v62 = vadd.f32 %v6917_v27, %v6916_v26 }
0x2649   : > { %v6919_v28 = vrot.slane %v6918_v62, 1 }
0x264b   : > { %v6920_v29 = vadd.f32 %v6919_v28, %v6918_v62 }
0x264d   : > { %v6921_v30 = vpack.c.bf16 %v6920_v29, %v6920_v29 }
0x264f   : > { %9052 = vmatmul.mubr.bf16.vlgmr.msra.gmra.mrb[96].mxu1 %v6921_v30 }
0x2722   : > { %v7021_v35 = vpop.f32.mrb[96].mxu1 }
0x2723   : > { %v7022_v36 = vadd.f32 %v7021_v35, %v6938_v34  ;;  %v9053_v37 = vpop.f32.mrb[97].mxu1 }
0x2724   : > { %v7024_v38 = vpop.f32.mrb[98].mxu1 }
0x2725   : > { %9503 = vtanh.f32 %v7022_v36  ;;  %v9054_v39 = vpop.f32.mrb[99].mxu1 }
0x272f   : > { %v9504_v12 = vpop.eup %9503 }
0x2730   : > { %v7028_v40 = vpack.c.bf16 %v9504_v12, %v9504_v12 }
0x2732   : > { %9072 = vmatmul.mubr.bf16.vlgmr.msra.gmra.mrb[100].mxu0 %v7028_v40 }
0x2805   : > { %v7128_v18 = vpop.f32.mrb[100].mxu0 }
0x2806   : > { %v7129_v42 = vadd.f32 %v7128_v18, %v7045_v41  ;;  %v9073_v44 = vpop.f32.mrb[101].mxu0 }
0x2807   : > { %v7131_v43 = vpop.f32.mrb[102].mxu0 }
0x2808   : > { %7134 = vst [vmem:[%s1230_s8] sm:$0x1] %v7129_v42  ;;  %v9074_v45 = vpop.f32.mrb[103].mxu0 }
0x2809   : > { %9519 = shalt.err (!%p9516_p3)
}
0x280a   : > { %s9520_s5 = scalar_lea.hbm %s10738_s3, 16  ;;  %s9524_s9 = scalar_lea.hbm %s9828_s4, 32 }
0x280b   : > { %p9521_p4 = scmp.ne.s32.totalorder %s10738_s3, %s9520_s5  ;;  %p9525_p9 = scmp.lt.u32.totalorder %s10738_s3, %s9828_s4 }
0x280c   : > { %p9526_p10 = scmp.lt.u32.totalorder %s9524_s9, %s9520_s5  ;;  %p9528_p12 = scmp.lt.u32.totalorder %s9520_s5, %s10738_s3 }
0x280d   : > { %p9522_p7 = pnand %p9521_p4, %p9868_p5 }
0x280e   : > { %p9527_p11 = por %p9526_p10, %p9525_p9 }
0x280f   : > { %p9523_p8 = pneg %p9522_p7 }
0x2810   : > { %p9529_p0 = por %p9528_p12, %p9527_p11 }
0x2812   : > { %p9530_p13 = pnand %p9529_p0, %p9523_p8 }
0x2814   : > { %9533 = shalt.err (!%p9530_p13)
}
0x2815   : > { %9075 = dma.vmem_to_hbm [thread:$0]  (%p9868_p5), %s10740_s2, 16, %s10738_s3, %s7136_s6  }
0x2816 PF: > { %p9081_p1 = scmp.ge.s32.totalorder %s9568_s15, 2  ;;  %s7160_s13 = sand.u32 1, %s9556_s7  }
0x2817   : > { %s7161_s14 = scalar_lea.sflag [#allocation3], %s7160_s13 }
0x2818   : > { %p9078_p2 = pnand %p9081_p1, %p9872_p6 }
0x281a   : > { %9551 = dma.done.wait (!%p9078_p2), %s7161_s14, 16  }
0x281b   : > { %9553 = vsyncadd (!%p9078_p2), %s7161_s14, 4294967280  ;;  %p93_p3 = scmp.ge.s32.totalorder %s9855_s18, 4   ;;  %s10866_s7 = smov %s9560_s10 }
0x281c   : > { %s10867_s10 = smov %s9564_s11  ;;  %s10868_s11 = smov %s9866_s26 }
0x281d   : > { %s10869_s15 = smov %s9855_s18  ;;  %95 = sbr.rel (!%p93_p3) target bundleno = 78 (0x4e), region = 302 }
0x2824   :  { %7165 = vsyncpa [#allocation3], 1 }
0x2825   :  { %7167 = vsyncpa [#allocation3 + $0x1], 1 }

</bundles_post_ra>
